<compile_context>
chip_gen: v5e
topology: v5e:2x2
jax: 0.10.0
libtpu: 0.0.40
codegen_flags: <defaults>
</compile_context>

<pallas_src>
import functools

import jax
import jax.numpy as jnp
from jax.experimental import pallas as pl
from jax.experimental.pallas import tpu as pltpu


def _layernorm(v, g, b, eps=1e-5):
    mu = jnp.mean(v, axis=-1, keepdims=True)
    var = jnp.mean(jnp.square(v - mu), axis=-1, keepdims=True)
    return (v - mu) * jax.lax.rsqrt(var + eps) * g + b


def block_kernel(x_q_ref, x_kv_ref,
                 g1_ref, b1_ref,
                 wq_ref, wk_ref, wv_ref,
                 proj_w_ref, proj_b_ref,
                 g2_ref, b2_ref,
                 fc1_w_ref, fc1_b_ref,
                 fc2_w_ref, fc2_b_ref,
                 o_ref,
                 k_cache, v_cache,
                 *, num_heads, kv_tile):
    f32 = jnp.float32
    bf16 = jnp.bfloat16

    H = num_heads
    tN, C = x_q_ref.shape[1], x_q_ref.shape[2]
    N = x_kv_ref.shape[1]
    hd = C // H
    tK = kv_tile
    n_kv = N // tK

    g1 = g1_ref[0]
    b1 = b1_ref[0]

    # ---- per-batch K/V cache: built once per batch (t == 0), reused by every
    #      query tile; the tile axis is "arbitrary" so scratch persists. ----
    @pl.when(pl.program_id(1) == 0)
    def _build_kv_cache():
        xkv = x_kv_ref[0].astype(f32)                              # (N, C)
        xkv_n = _layernorm(xkv, g1, b1).astype(bf16)
        k = jnp.dot(xkv_n, wk_ref[...], preferred_element_type=f32)
        v = jnp.dot(xkv_n, wv_ref[...], preferred_element_type=f32)
        # head-major (H, N, hd); transpose cost paid once per batch, not per tile
        k_cache[...] = jnp.transpose(k.reshape(N, H, hd), (1, 0, 2)).astype(bf16)
        v_cache[...] = jnp.transpose(v.reshape(N, H, hd), (1, 0, 2)).astype(bf16)

    # ---------------------- attention (this query tile) ----------------------
    xq = x_q_ref[0].astype(f32)                                    # (tN, C)
    xq_n = _layernorm(xq, g1, b1).astype(bf16)
    # softmax scale is folded into wq on the host
    q = jnp.dot(xq_n, wq_ref[...], preferred_element_type=f32)     # (tN, C)
    qh = jnp.transpose(q.reshape(tN, H, hd), (1, 0, 2)).astype(bf16)  # (H,tN,hd)

    def kv_step(j, carry):
        m_i, l_i, acc = carry
        start = j * tK
        if not isinstance(start, int):
            start = pl.multiple_of(start, tK)
        kh = k_cache[:, pl.ds(start, tK), :]                       # (H, tK, hd)
        vh = v_cache[:, pl.ds(start, tK), :]
        s = jnp.einsum('hqd,hkd->hqk', qh, kh,
                       preferred_element_type=f32)                 # (H, tN, tK)
        m_new = jnp.maximum(m_i, jnp.max(s, axis=-1, keepdims=True))
        alpha = jnp.exp(m_i - m_new)
        p = jnp.exp(s - m_new)
        l_new = alpha * l_i + jnp.sum(p, axis=-1, keepdims=True)
        acc_new = alpha * acc + jnp.einsum('hqk,hkd->hqd', p.astype(bf16), vh,
                                           preferred_element_type=f32)
        return m_new, l_new, acc_new

    m0 = jnp.full((H, tN, 1), -jnp.inf, f32)
    l0 = jnp.zeros((H, tN, 1), f32)
    a0 = jnp.zeros((H, tN, hd), f32)
    if n_kv == 1:                       # static: single KV chunk, no loop
        m_i, l_i, acc = kv_step(0, (m0, l0, a0))
    else:                               # flash-style online softmax over chunks
        m_i, l_i, acc = jax.lax.fori_loop(0, n_kv, kv_step, (m0, l0, a0))

    # Normalize AFTER the PV matmul: H*tN*hd multiplies instead of H*tN*N.
    oh = acc * pl.reciprocal(l_i, approx=True)                     # (H, tN, hd)

    # One sublane-level transpose of (tN, C) per tile; a single (tN,C)@(C,C)
    # proj matmul is more MXU-efficient than H narrow hd-deep matmuls.
    attn = jnp.transpose(oh, (1, 0, 2)).reshape(tN, C)
    attn_out = jnp.dot(attn.astype(bf16), proj_w_ref[...],
                       preferred_element_type=f32) + proj_b_ref[0]
    x1 = xq + attn_out                                             # residual 1

    # -------------------------------- MLP ------------------------------------
    xn2 = _layernorm(x1, g2_ref[0], b2_ref[0]).astype(bf16)
    h1 = jnp.dot(xn2, fc1_w_ref[...], preferred_element_type=f32) + fc1_b_ref[0]
    # exact (erf) GELU, matching torch.nn.GELU() default, kept in f32
    h1 = 0.5 * h1 * (1.0 + jax.lax.erf(h1 * (2.0 ** -0.5)))
    h2 = jnp.dot(h1.astype(bf16), fc2_w_ref[...],
                 preferred_element_type=f32) + fc2_b_ref[0]
    o_ref[0] = (x1 + h2).astype(o_ref.dtype)                       # residual 2


def _pick_tile(n, candidates):
    for c in candidates:
        if n % c == 0:
            return c
    return n


def transformer_block(x, params, *, num_heads, block_tokens=None, kv_block=None):
    B, N, C = x.shape
    H = num_heads
    hd = C // H
    scale = float(hd) ** -0.5

    (g1, b1, qkv_w, proj_w, proj_b, g2, b2,
     fc1_w, fc1_b, fc2_w, fc2_b) = params

    bf16 = jnp.bfloat16
    # Split fused qkv weight (columns [q | k | v], matching the PyTorch
    # reshape(B,N,3,H,hd).permute ordering); fold the softmax scale into Wq
    # on the host; ship all big matmul weights as bf16 (f32 accumulation).
    wq = (qkv_w[:, :C] * scale).astype(bf16)
    wk = qkv_w[:, C:2 * C].astype(bf16)
    wv = qkv_w[:, 2 * C:].astype(bf16)
    proj_w_bf = proj_w.astype(bf16)
    fc1_w_bf = fc1_w.astype(bf16)
    fc2_w_bf = fc2_w.astype(bf16)

    # >=128 query rows keeps the MXU fed everywhere, 256 fills the 256-wide
    # v6e/v7x MXU; KV chunks of 256-512 bound the live (H,tN,tK) score block.
    if block_tokens is None:
        block_tokens = _pick_tile(N, (256, 128))
    tN = block_tokens
    n_tiles = N // tN
    if kv_block is None:
        kv_block = _pick_tile(N, (512, 256, 128))
    tK = kv_block

    # Generation-aware VMEM limit: leave headroom on v7x (64 MiB physical),
    # use most of v5e/v6e's 128 MiB.
    try:
        cap = pltpu.get_tpu_info().vmem_capacity_bytes
        vmem_limit = max(32 * 1024 * 1024,
                         min(int(cap * 0.85), cap - 12 * 1024 * 1024))
    except Exception:
        vmem_limit = 48 * 1024 * 1024

    weight_args = (g1, b1, wq, wk, wv, proj_w_bf, proj_b, g2, b2,
                   fc1_w_bf, fc1_b, fc2_w_bf, fc2_b)

    kernel = functools.partial(block_kernel, num_heads=H, kv_tile=tK)

    def _weight_spec(arr, pipeline_mode):
        nd = arr.ndim
        if pipeline_mode is None:
            return pl.BlockSpec(arr.shape, lambda b, t: (0,) * nd)
        return pl.BlockSpec(arr.shape, lambda b, t: (0,) * nd,
                            pipeline_mode=pipeline_mode)

    def _run(weight_mode):
        in_specs = [
            # query / residual / MLP rows for this tile
            pl.BlockSpec((1, tN, C), lambda b, t: (b, t, 0)),
            # full sequence (per-batch K/V cache build; same block for all t)
            pl.BlockSpec((1, N, C), lambda b, t: (b, 0, 0)),
        ] + [_weight_spec(a, weight_mode) for a in weight_args]
        return pl.pallas_call(
            kernel,
            out_shape=jax.ShapeDtypeStruct((B, N, C), x.dtype),
            grid_spec=pltpu.PrefetchScalarGridSpec(
                num_scalar_prefetch=0,
                grid=(B, n_tiles),
                in_specs=in_specs,
                out_specs=pl.BlockSpec((1, tN, C), lambda b, t: (b, t, 0)),
                scratch_shapes=[
                    pltpu.VMEM((H, N, hd), jnp.bfloat16),   # K cache (per batch)
                    pltpu.VMEM((H, N, hd), jnp.bfloat16),   # V cache (per batch)
                ],
            ),
            # B stays "parallel" (megacore-sharded); the tile axis is
            # "arbitrary" so the per-batch K/V scratch cache survives tiles.
            # TODO(synk): if B == 1 on v7x, precompute K/V in a separate
            # pallas_call and keep the tile axis "parallel" to use both cores.
            compiler_params=pltpu.CompilerParams(
                dimension_semantics=("parallel", "arbitrary"),
                vmem_limit_bytes=vmem_limit),
        )(x, x, *weight_args)

    try:
        # Grid-invariant weights never change block index -> single buffer
        # halves their VMEM footprint (matters on v7x's 64 MiB).
        return _run(pl.Buffered(1))
    except Exception:
        # TODO(synk): remove fallback once pl.Buffered(1) single-buffering is
        # supported by the installed jax/pallas version.
        return _run(None)


def init_params(key, dim, num_heads, mlp_ratio=2):
    hidden = int(dim * mlp_ratio)
    ks = jax.random.split(key, 6)
    std = 0.02
    # LayerNorm: gamma=1, beta=0 (PyTorch defaults)
    g1 = jnp.ones((1, dim), jnp.float32)
    b1 = jnp.zeros((1, dim), jnp.float32)
    g2 = jnp.ones((1, dim), jnp.float32)
    b2 = jnp.zeros((1, dim), jnp.float32)
    # Linear weights stored as (in, out); qkv has no bias (qkv_bias=False)
    qkv_w = std * jax.random.normal(ks[0], (dim, 3 * dim), jnp.float32)
    proj_w = std * jax.random.normal(ks[1], (dim, dim), jnp.float32)
    proj_b = std * jax.random.normal(ks[2], (1, dim), jnp.float32)
    fc1_w = std * jax.random.normal(ks[3], (dim, hidden), jnp.float32)
    fc1_b = std * jax.random.normal(ks[4], (1, hidden), jnp.float32)
    fc2_w = std * jax.random.normal(ks[5], (hidden, dim), jnp.float32)
    fc2_b = jnp.zeros((1, dim), jnp.float32)
    return (g1, b1, qkv_w, proj_w, proj_b, g2, b2, fc1_w, fc1_b, fc2_w, fc2_b)


if __name__ == "__main__":
    B, N, C = 2, 8, 32
    num_heads = 4          # head_dim = 8
    mlp_ratio = 2          # hidden = 64

    key = jax.random.PRNGKey(0)
    kx, kp = jax.random.split(key)
    x = jax.random.normal(kx, (B, N, C), jnp.float32)
    params = init_params(kp, C, num_heads, mlp_ratio)

    out = transformer_block(x, params, num_heads=num_heads)
    jax.block_until_ready(out)
    assert out.shape == (B, N, C)
    assert bool(jnp.all(jnp.isfinite(out)))
    print("KERNEL_OK")
</pallas_src>

<mosaic_0001>
module attributes {stable_mosaic.version = 11 : i64} {
  func.func @block_kernel(%arg0: i32, %arg1: i32, %arg2: memref<1x8x32xf32, #tpu.memory_space<vmem>>, %arg3: memref<1x8x32xf32, #tpu.memory_space<vmem>>, %arg4: memref<1x32xf32, #tpu.memory_space<vmem>>, %arg5: memref<1x32xf32, #tpu.memory_space<vmem>>, %arg6: memref<32x32xbf16, #tpu.memory_space<vmem>>, %arg7: memref<32x32xbf16, #tpu.memory_space<vmem>>, %arg8: memref<32x32xbf16, #tpu.memory_space<vmem>>, %arg9: memref<32x32xbf16, #tpu.memory_space<vmem>>, %arg10: memref<1x32xf32, #tpu.memory_space<vmem>>, %arg11: memref<1x32xf32, #tpu.memory_space<vmem>>, %arg12: memref<1x32xf32, #tpu.memory_space<vmem>>, %arg13: memref<32x64xbf16, #tpu.memory_space<vmem>>, %arg14: memref<1x64xf32, #tpu.memory_space<vmem>>, %arg15: memref<64x32xbf16, #tpu.memory_space<vmem>>, %arg16: memref<1x32xf32, #tpu.memory_space<vmem>>, %arg17: memref<1x8x32xf32, #tpu.memory_space<vmem>>, %arg18: memref<4x8x8xbf16, #tpu.memory_space<vmem>>, %arg19: memref<4x8x8xbf16, #tpu.memory_space<vmem>>) attributes {dimension_semantics = [#tpu.dimension_semantics<parallel>, #tpu.dimension_semantics<arbitrary>], iteration_bounds = array<i64: 2, 1>, scalar_prefetch = 0 : i64, scratch_operands = 2 : i64, tpu.core_type = #tpu.core_type<tc>, window_params = [{transform_indices = @transform_0, window_bounds = array<i64: 1, 8, 32>}, {transform_indices = @transform_1, window_bounds = array<i64: 1, 8, 32>}, {pipeline_mode = #tpu.pipeline_mode<synchronous>, transform_indices = @transform_2, window_bounds = array<i64: 1, 32>}, {pipeline_mode = #tpu.pipeline_mode<synchronous>, transform_indices = @transform_3, window_bounds = array<i64: 1, 32>}, {pipeline_mode = #tpu.pipeline_mode<synchronous>, transform_indices = @transform_4, window_bounds = array<i64: 32, 32>}, {pipeline_mode = #tpu.pipeline_mode<synchronous>, transform_indices = @transform_5, window_bounds = array<i64: 32, 32>}, {pipeline_mode = #tpu.pipeline_mode<synchronous>, transform_indices = @transform_6, window_bounds = array<i64: 32, 32>}, {pipeline_mode = #tpu.pipeline_mode<synchronous>, transform_indices = @transform_7, window_bounds = array<i64: 32, 32>}, {pipeline_mode = #tpu.pipeline_mode<synchronous>, transform_indices = @transform_8, window_bounds = array<i64: 1, 32>}, {pipeline_mode = #tpu.pipeline_mode<synchronous>, transform_indices = @transform_9, window_bounds = array<i64: 1, 32>}, {pipeline_mode = #tpu.pipeline_mode<synchronous>, transform_indices = @transform_10, window_bounds = array<i64: 1, 32>}, {pipeline_mode = #tpu.pipeline_mode<synchronous>, transform_indices = @transform_11, window_bounds = array<i64: 32, 64>}, {pipeline_mode = #tpu.pipeline_mode<synchronous>, transform_indices = @transform_12, window_bounds = array<i64: 1, 64>}, {pipeline_mode = #tpu.pipeline_mode<synchronous>, transform_indices = @transform_13, window_bounds = array<i64: 64, 32>}, {pipeline_mode = #tpu.pipeline_mode<synchronous>, transform_indices = @transform_14, window_bounds = array<i64: 1, 32>}, {transform_indices = @transform_15, window_bounds = array<i64: 1, 8, 32>}]} {
    %c0 = arith.constant 0 : index
    %c0_0 = arith.constant 0 : index
    %0 = vector.load %arg4[%c0, %c0_0] : memref<1x32xf32, #tpu.memory_space<vmem>>, vector<1x32xf32>
    %1 = vector.shape_cast %0 : vector<1x32xf32> to vector<32xf32>
    %c0_1 = arith.constant 0 : index
    %c0_2 = arith.constant 0 : index
    %2 = vector.load %arg5[%c0_1, %c0_2] : memref<1x32xf32, #tpu.memory_space<vmem>>, vector<1x32xf32>
    %3 = vector.shape_cast %2 : vector<1x32xf32> to vector<32xf32>
    %c0_i32 = arith.constant 0 : i32
    %4 = arith.cmpi eq, %arg1, %c0_i32 : i32
    %5 = arith.extui %4 : i1 to i32
    %c0_i32_3 = arith.constant 0 : i32
    %6 = arith.cmpi ne, %5, %c0_i32_3 : i32
    scf.if %6 {
      %c0_57 = arith.constant 0 : index
      %c0_58 = arith.constant 0 : index
      %c0_59 = arith.constant 0 : index
      %132 = vector.load %arg3[%c0_57, %c0_58, %c0_59] : memref<1x8x32xf32, #tpu.memory_space<vmem>>, vector<1x8x32xf32>
      %133 = vector.shape_cast %132 : vector<1x8x32xf32> to vector<8x32xf32>
      %cst_60 = arith.constant dense<0.000000e+00> : vector<8xf32>
      %134 = vector.multi_reduction <add>, %133, %cst_60 [1] : vector<8x32xf32> to vector<8xf32>
      %135 = vector.shape_cast %134 : vector<8xf32> to vector<8x1xf32>
      %cst_61 = arith.constant 3.200000e+01 : f32
      %136 = vector.broadcast %cst_61 : f32 to vector<8x1xf32>
      %137 = arith.divf %135, %136 : vector<8x1xf32>
      %138 = vector.broadcast %137 : vector<8x1xf32> to vector<8x32xf32>
      %139 = arith.subf %133, %138 : vector<8x32xf32>
      %140 = arith.mulf %139, %139 : vector<8x32xf32>
      %cst_62 = arith.constant dense<0.000000e+00> : vector<8xf32>
      %141 = vector.multi_reduction <add>, %140, %cst_62 [1] : vector<8x32xf32> to vector<8xf32>
      %142 = vector.shape_cast %141 : vector<8xf32> to vector<8x1xf32>
      %cst_63 = arith.constant 3.200000e+01 : f32
      %143 = vector.broadcast %cst_63 : f32 to vector<8x1xf32>
      %144 = arith.divf %142, %143 : vector<8x1xf32>
      %145 = vector.broadcast %137 : vector<8x1xf32> to vector<8x32xf32>
      %146 = arith.subf %133, %145 : vector<8x32xf32>
      %cst_64 = arith.constant 9.99999974E-6 : f32
      %147 = vector.broadcast %cst_64 : f32 to vector<8x1xf32>
      %148 = arith.addf %144, %147 : vector<8x1xf32>
      %149 = math.rsqrt %148 : vector<8x1xf32>
      %150 = vector.broadcast %149 : vector<8x1xf32> to vector<8x32xf32>
      %151 = arith.mulf %146, %150 : vector<8x32xf32>
      %152 = vector.shape_cast %1 : vector<32xf32> to vector<1x32xf32>
      %153 = vector.broadcast %152 : vector<1x32xf32> to vector<8x32xf32>
      %154 = arith.mulf %151, %153 : vector<8x32xf32>
      %155 = vector.shape_cast %3 : vector<32xf32> to vector<1x32xf32>
      %156 = vector.broadcast %155 : vector<1x32xf32> to vector<8x32xf32>
      %157 = arith.addf %154, %156 : vector<8x32xf32>
      %158 = arith.truncf %157 : vector<8x32xf32> to vector<8x32xbf16>
      %c0_65 = arith.constant 0 : index
      %c0_66 = arith.constant 0 : index
      %159 = vector.load %arg7[%c0_65, %c0_66] : memref<32x32xbf16, #tpu.memory_space<vmem>>, vector<32x32xbf16>
      %cst_67 = arith.constant dense<0.000000e+00> : vector<8x32xf32>
      %160 = tpu.matmul %158, %159, %cst_67 {dimension_numbers = #tpu.dot_dimension_numbers<[1], [0], [0], [1], [0, 0, 1, 1], [], []>} : vector<8x32xbf16>, vector<32x32xbf16>, vector<8x32xf32> -> vector<8x32xf32>
      %c0_68 = arith.constant 0 : index
      %c0_69 = arith.constant 0 : index
      %161 = vector.load %arg8[%c0_68, %c0_69] : memref<32x32xbf16, #tpu.memory_space<vmem>>, vector<32x32xbf16>
      %cst_70 = arith.constant dense<0.000000e+00> : vector<8x32xf32>
      %162 = tpu.matmul %158, %161, %cst_70 {dimension_numbers = #tpu.dot_dimension_numbers<[1], [0], [0], [1], [0, 0, 1, 1], [], []>} : vector<8x32xbf16>, vector<32x32xbf16>, vector<8x32xf32> -> vector<8x32xf32>
      %163 = vector.shape_cast %160 : vector<8x32xf32> to vector<8x4x8xf32>
      %164 = tpu.transpose %163, [1, 0, 2] : vector<8x4x8xf32> -> vector<4x8x8xf32>
      %165 = arith.truncf %164 : vector<4x8x8xf32> to vector<4x8x8xbf16>
      %c0_71 = arith.constant 0 : index
      %c0_72 = arith.constant 0 : index
      %c0_73 = arith.constant 0 : index
      %166 = vector.load %arg18[%c0_71, %c0_72, %c0_73] : memref<4x8x8xbf16, #tpu.memory_space<vmem>>, vector<4x8x8xbf16>
      tpu.vector_store %arg18[%c0_71, %c0_72, %c0_73], %165 {strides = array<i32>} : memref<4x8x8xbf16, #tpu.memory_space<vmem>>, vector<4x8x8xbf16>,
      %167 = vector.shape_cast %162 : vector<8x32xf32> to vector<8x4x8xf32>
      %168 = tpu.transpose %167, [1, 0, 2] : vector<8x4x8xf32> -> vector<4x8x8xf32>
      %169 = arith.truncf %168 : vector<4x8x8xf32> to vector<4x8x8xbf16>
      %c0_74 = arith.constant 0 : index
      %c0_75 = arith.constant 0 : index
      %c0_76 = arith.constant 0 : index
      %170 = vector.load %arg19[%c0_74, %c0_75, %c0_76] : memref<4x8x8xbf16, #tpu.memory_space<vmem>>, vector<4x8x8xbf16>
      tpu.vector_store %arg19[%c0_74, %c0_75, %c0_76], %169 {strides = array<i32>} : memref<4x8x8xbf16, #tpu.memory_space<vmem>>, vector<4x8x8xbf16>,
    } else {
    }
    %c0_4 = arith.constant 0 : index
    %c0_5 = arith.constant 0 : index
    %c0_6 = arith.constant 0 : index
    %7 = vector.load %arg2[%c0_4, %c0_5, %c0_6] : memref<1x8x32xf32, #tpu.memory_space<vmem>>, vector<1x8x32xf32>
    %8 = vector.shape_cast %7 : vector<1x8x32xf32> to vector<8x32xf32>
    %cst = arith.constant dense<0.000000e+00> : vector<8xf32>
    %9 = vector.multi_reduction <add>, %8, %cst [1] : vector<8x32xf32> to vector<8xf32>
    %10 = vector.shape_cast %9 : vector<8xf32> to vector<8x1xf32>
    %cst_7 = arith.constant 3.200000e+01 : f32
    %11 = vector.broadcast %cst_7 : f32 to vector<8x1xf32>
    %12 = arith.divf %10, %11 : vector<8x1xf32>
    %13 = vector.broadcast %12 : vector<8x1xf32> to vector<8x32xf32>
    %14 = arith.subf %8, %13 : vector<8x32xf32>
    %15 = arith.mulf %14, %14 : vector<8x32xf32>
    %cst_8 = arith.constant dense<0.000000e+00> : vector<8xf32>
    %16 = vector.multi_reduction <add>, %15, %cst_8 [1] : vector<8x32xf32> to vector<8xf32>
    %17 = vector.shape_cast %16 : vector<8xf32> to vector<8x1xf32>
    %cst_9 = arith.constant 3.200000e+01 : f32
    %18 = vector.broadcast %cst_9 : f32 to vector<8x1xf32>
    %19 = arith.divf %17, %18 : vector<8x1xf32>
    %20 = vector.broadcast %12 : vector<8x1xf32> to vector<8x32xf32>
    %21 = arith.subf %8, %20 : vector<8x32xf32>
    %cst_10 = arith.constant 9.99999974E-6 : f32
    %22 = vector.broadcast %cst_10 : f32 to vector<8x1xf32>
    %23 = arith.addf %19, %22 : vector<8x1xf32>
    %24 = math.rsqrt %23 : vector<8x1xf32>
    %25 = vector.broadcast %24 : vector<8x1xf32> to vector<8x32xf32>
    %26 = arith.mulf %21, %25 : vector<8x32xf32>
    %27 = vector.shape_cast %1 : vector<32xf32> to vector<1x32xf32>
    %28 = vector.broadcast %27 : vector<1x32xf32> to vector<8x32xf32>
    %29 = arith.mulf %26, %28 : vector<8x32xf32>
    %30 = vector.shape_cast %3 : vector<32xf32> to vector<1x32xf32>
    %31 = vector.broadcast %30 : vector<1x32xf32> to vector<8x32xf32>
    %32 = arith.addf %29, %31 : vector<8x32xf32>
    %33 = arith.truncf %32 : vector<8x32xf32> to vector<8x32xbf16>
    %c0_11 = arith.constant 0 : index
    %c0_12 = arith.constant 0 : index
    %34 = vector.load %arg6[%c0_11, %c0_12] : memref<32x32xbf16, #tpu.memory_space<vmem>>, vector<32x32xbf16>
    %cst_13 = arith.constant dense<0.000000e+00> : vector<8x32xf32>
    %35 = tpu.matmul %33, %34, %cst_13 {dimension_numbers = #tpu.dot_dimension_numbers<[1], [0], [0], [1], [0, 0, 1, 1], [], []>} : vector<8x32xbf16>, vector<32x32xbf16>, vector<8x32xf32> -> vector<8x32xf32>
    %36 = vector.shape_cast %35 : vector<8x32xf32> to vector<8x4x8xf32>
    %37 = tpu.transpose %36, [1, 0, 2] : vector<8x4x8xf32> -> vector<4x8x8xf32>
    %38 = arith.truncf %37 : vector<4x8x8xf32> to vector<4x8x8xbf16>
    %cst_14 = arith.constant 0xFF800000 : f32
    %39 = vector.broadcast %cst_14 : f32 to vector<4x8x1xf32>
    %cst_15 = arith.constant 0.000000e+00 : f32
    %40 = vector.broadcast %cst_15 : f32 to vector<4x8x1xf32>
    %cst_16 = arith.constant 0.000000e+00 : f32
    %41 = vector.broadcast %cst_16 : f32 to vector<4x8x8xf32>
    %c0_17 = arith.constant 0 : index
    %c0_18 = arith.constant 0 : index
    %c0_19 = arith.constant 0 : index
    %42 = vector.load %arg18[%c0_17, %c0_18, %c0_19] : memref<4x8x8xbf16, #tpu.memory_space<vmem>>, vector<4x8x8xbf16>
    %c0_20 = arith.constant 0 : index
    %c0_21 = arith.constant 0 : index
    %c0_22 = arith.constant 0 : index
    %43 = vector.load %arg19[%c0_20, %c0_21, %c0_22] : memref<4x8x8xbf16, #tpu.memory_space<vmem>>, vector<4x8x8xbf16>
    "tpu.trace_start"() <{level = 10 : i32, message = "hqd,hkd->hqk"}> : () -> ()
    %cst_23 = arith.constant dense<0.000000e+00> : vector<4x8x8xf32>
    %44 = tpu.matmul %38, %42, %cst_23 {dimension_numbers = #tpu.dot_dimension_numbers<[2], [2], [1], [1], [0, 0, 0, 1, 1, 1], [0], [0]>} : vector<4x8x8xbf16>, vector<4x8x8xbf16>, vector<4x8x8xf32> -> vector<4x8x8xf32>
    "tpu.trace_stop"() : () -> ()
    %cst_24 = arith.constant dense<0xFF800000> : vector<4x8xf32>
    %45 = vector.multi_reduction <maximumf>, %44, %cst_24 [2] : vector<4x8x8xf32> to vector<4x8xf32>
    %46 = vector.shape_cast %45 : vector<4x8xf32> to vector<4x8x1xf32>
    %47 = arith.maximumf %39, %46 : vector<4x8x1xf32>
    %48 = arith.subf %39, %47 : vector<4x8x1xf32>
    %49 = math.exp %48 : vector<4x8x1xf32>
    %50 = vector.broadcast %47 : vector<4x8x1xf32> to vector<4x8x8xf32>
    %51 = arith.subf %44, %50 : vector<4x8x8xf32>
    %52 = math.exp %51 : vector<4x8x8xf32>
    %53 = arith.mulf %49, %40 : vector<4x8x1xf32>
    %cst_25 = arith.constant dense<0.000000e+00> : vector<4x8xf32>
    %54 = vector.multi_reduction <add>, %52, %cst_25 [2] : vector<4x8x8xf32> to vector<4x8xf32>
    %55 = vector.shape_cast %54 : vector<4x8xf32> to vector<4x8x1xf32>
    %56 = arith.addf %53, %55 : vector<4x8x1xf32>
    %57 = vector.broadcast %49 : vector<4x8x1xf32> to vector<4x8x8xf32>
    %58 = arith.mulf %57, %41 : vector<4x8x8xf32>
    %59 = arith.truncf %52 : vector<4x8x8xf32> to vector<4x8x8xbf16>
    "tpu.trace_start"() <{level = 10 : i32, message = "hqk,hkd->hqd"}> : () -> ()
    %cst_26 = arith.constant dense<0.000000e+00> : vector<4x8x8xf32>
    %60 = tpu.matmul %59, %43, %cst_26 {dimension_numbers = #tpu.dot_dimension_numbers<[2], [1], [1], [2], [0, 0, 0, 1, 1, 2], [0], [0]>} : vector<4x8x8xbf16>, vector<4x8x8xbf16>, vector<4x8x8xf32> -> vector<4x8x8xf32>
    "tpu.trace_stop"() : () -> ()
    %61 = arith.addf %58, %60 : vector<4x8x8xf32>
    %62 = tpu.reciprocal %56 {approx = true} : vector<4x8x1xf32> -> vector<4x8x1xf32>
    %63 = vector.broadcast %62 : vector<4x8x1xf32> to vector<4x8x8xf32>
    %64 = arith.mulf %61, %63 : vector<4x8x8xf32>
    %65 = tpu.transpose %64, [1, 0, 2] : vector<4x8x8xf32> -> vector<8x4x8xf32>
    %66 = vector.shape_cast %65 : vector<8x4x8xf32> to vector<8x32xf32>
    %67 = arith.truncf %66 : vector<8x32xf32> to vector<8x32xbf16>
    %c0_27 = arith.constant 0 : index
    %c0_28 = arith.constant 0 : index
    %68 = vector.load %arg9[%c0_27, %c0_28] : memref<32x32xbf16, #tpu.memory_space<vmem>>, vector<32x32xbf16>
    %cst_29 = arith.constant dense<0.000000e+00> : vector<8x32xf32>
    %69 = tpu.matmul %67, %68, %cst_29 {dimension_numbers = #tpu.dot_dimension_numbers<[1], [0], [0], [1], [0, 0, 1, 1], [], []>} : vector<8x32xbf16>, vector<32x32xbf16>, vector<8x32xf32> -> vector<8x32xf32>
    %c0_30 = arith.constant 0 : index
    %c0_31 = arith.constant 0 : index
    %70 = vector.load %arg10[%c0_30, %c0_31] : memref<1x32xf32, #tpu.memory_space<vmem>>, vector<1x32xf32>
    %71 = vector.shape_cast %70 : vector<1x32xf32> to vector<32xf32>
    %72 = vector.shape_cast %71 : vector<32xf32> to vector<1x32xf32>
    %73 = vector.broadcast %72 : vector<1x32xf32> to vector<8x32xf32>
    %74 = arith.addf %69, %73 : vector<8x32xf32>
    %75 = arith.addf %8, %74 : vector<8x32xf32>
    %c0_32 = arith.constant 0 : index
    %c0_33 = arith.constant 0 : index
    %76 = vector.load %arg11[%c0_32, %c0_33] : memref<1x32xf32, #tpu.memory_space<vmem>>, vector<1x32xf32>
    %77 = vector.shape_cast %76 : vector<1x32xf32> to vector<32xf32>
    %c0_34 = arith.constant 0 : index
    %c0_35 = arith.constant 0 : index
    %78 = vector.load %arg12[%c0_34, %c0_35] : memref<1x32xf32, #tpu.memory_space<vmem>>, vector<1x32xf32>
    %79 = vector.shape_cast %78 : vector<1x32xf32> to vector<32xf32>
    %cst_36 = arith.constant dense<0.000000e+00> : vector<8xf32>
    %80 = vector.multi_reduction <add>, %75, %cst_36 [1] : vector<8x32xf32> to vector<8xf32>
    %81 = vector.shape_cast %80 : vector<8xf32> to vector<8x1xf32>
    %cst_37 = arith.constant 3.200000e+01 : f32
    %82 = vector.broadcast %cst_37 : f32 to vector<8x1xf32>
    %83 = arith.divf %81, %82 : vector<8x1xf32>
    %84 = vector.broadcast %83 : vector<8x1xf32> to vector<8x32xf32>
    %85 = arith.subf %75, %84 : vector<8x32xf32>
    %86 = arith.mulf %85, %85 : vector<8x32xf32>
    %cst_38 = arith.constant dense<0.000000e+00> : vector<8xf32>
    %87 = vector.multi_reduction <add>, %86, %cst_38 [1] : vector<8x32xf32> to vector<8xf32>
    %88 = vector.shape_cast %87 : vector<8xf32> to vector<8x1xf32>
    %cst_39 = arith.constant 3.200000e+01 : f32
    %89 = vector.broadcast %cst_39 : f32 to vector<8x1xf32>
    %90 = arith.divf %88, %89 : vector<8x1xf32>
    %91 = vector.broadcast %83 : vector<8x1xf32> to vector<8x32xf32>
    %92 = arith.subf %75, %91 : vector<8x32xf32>
    %cst_40 = arith.constant 9.99999974E-6 : f32
    %93 = vector.broadcast %cst_40 : f32 to vector<8x1xf32>
    %94 = arith.addf %90, %93 : vector<8x1xf32>
    %95 = math.rsqrt %94 : vector<8x1xf32>
    %96 = vector.broadcast %95 : vector<8x1xf32> to vector<8x32xf32>
    %97 = arith.mulf %92, %96 : vector<8x32xf32>
    %98 = vector.shape_cast %77 : vector<32xf32> to vector<1x32xf32>
    %99 = vector.broadcast %98 : vector<1x32xf32> to vector<8x32xf32>
    %100 = arith.mulf %97, %99 : vector<8x32xf32>
    %101 = vector.shape_cast %79 : vector<32xf32> to vector<1x32xf32>
    %102 = vector.broadcast %101 : vector<1x32xf32> to vector<8x32xf32>
    %103 = arith.addf %100, %102 : vector<8x32xf32>
    %104 = arith.truncf %103 : vector<8x32xf32> to vector<8x32xbf16>
    %c0_41 = arith.constant 0 : index
    %c0_42 = arith.constant 0 : index
    %105 = vector.load %arg13[%c0_41, %c0_42] : memref<32x64xbf16, #tpu.memory_space<vmem>>, vector<32x64xbf16>
    %cst_43 = arith.constant dense<0.000000e+00> : vector<8x64xf32>
    %106 = tpu.matmul %104, %105, %cst_43 {dimension_numbers = #tpu.dot_dimension_numbers<[1], [0], [0], [1], [0, 0, 1, 1], [], []>} : vector<8x32xbf16>, vector<32x64xbf16>, vector<8x64xf32> -> vector<8x64xf32>
    %c0_44 = arith.constant 0 : index
    %c0_45 = arith.constant 0 : index
    %107 = vector.load %arg14[%c0_44, %c0_45] : memref<1x64xf32, #tpu.memory_space<vmem>>, vector<1x64xf32>
    %108 = vector.shape_cast %107 : vector<1x64xf32> to vector<64xf32>
    %109 = vector.shape_cast %108 : vector<64xf32> to vector<1x64xf32>
    %110 = vector.broadcast %109 : vector<1x64xf32> to vector<8x64xf32>
    %111 = arith.addf %106, %110 : vector<8x64xf32>
    %cst_46 = arith.constant 5.000000e-01 : f32
    %112 = vector.broadcast %cst_46 : f32 to vector<8x64xf32>
    %113 = arith.mulf %112, %111 : vector<8x64xf32>
    %cst_47 = arith.constant 0.707106769 : f32
    %114 = vector.broadcast %cst_47 : f32 to vector<8x64xf32>
    %115 = arith.mulf %111, %114 : vector<8x64xf32>
    %116 = math.erf %115 : vector<8x64xf32>
    %cst_48 = arith.constant 1.000000e+00 : f32
    %117 = vector.broadcast %cst_48 : f32 to vector<8x64xf32>
    %118 = arith.addf %117, %116 : vector<8x64xf32>
    %119 = arith.mulf %113, %118 : vector<8x64xf32>
    %120 = arith.truncf %119 : vector<8x64xf32> to vector<8x64xbf16>
    %c0_49 = arith.constant 0 : index
    %c0_50 = arith.constant 0 : index
    %121 = vector.load %arg15[%c0_49, %c0_50] : memref<64x32xbf16, #tpu.memory_space<vmem>>, vector<64x32xbf16>
    %cst_51 = arith.constant dense<0.000000e+00> : vector<8x32xf32>
    %122 = tpu.matmul %120, %121, %cst_51 {dimension_numbers = #tpu.dot_dimension_numbers<[1], [0], [0], [1], [0, 0, 1, 1], [], []>} : vector<8x64xbf16>, vector<64x32xbf16>, vector<8x32xf32> -> vector<8x32xf32>
    %c0_52 = arith.constant 0 : index
    %c0_53 = arith.constant 0 : index
    %123 = vector.load %arg16[%c0_52, %c0_53] : memref<1x32xf32, #tpu.memory_space<vmem>>, vector<1x32xf32>
    %124 = vector.shape_cast %123 : vector<1x32xf32> to vector<32xf32>
    %125 = vector.shape_cast %124 : vector<32xf32> to vector<1x32xf32>
    %126 = vector.broadcast %125 : vector<1x32xf32> to vector<8x32xf32>
    %127 = arith.addf %122, %126 : vector<8x32xf32>
    %128 = arith.addf %75, %127 : vector<8x32xf32>
    %c0_54 = arith.constant 0 : index
    %c0_55 = arith.constant 0 : index
    %c0_56 = arith.constant 0 : index
    %129 = vector.load %arg17[%c0_54, %c0_55, %c0_56] : memref<1x8x32xf32, #tpu.memory_space<vmem>>, vector<1x8x32xf32>
    %130 = vector.shape_cast %129 : vector<1x8x32xf32> to vector<8x32xf32>
    %131 = vector.shape_cast %128 : vector<8x32xf32> to vector<1x8x32xf32>
    tpu.vector_store %arg17[%c0_54, %c0_55, %c0_56], %131 {strides = array<i32>} : memref<1x8x32xf32, #tpu.memory_space<vmem>>, vector<1x8x32xf32>,
    return
  }
  func.func @transform_0(%arg0: i32, %arg1: i32) -> (i32, i32, i32) {
    %c0_i32 = arith.constant 0 : i32
    %c0_i32_0 = arith.constant 0 : i32
    return %arg0, %arg1, %c0_i32 : i32, i32, i32
  }
  func.func @transform_1(%arg0: i32, %arg1: i32) -> (i32, i32, i32) {
    %c0_i32 = arith.constant 0 : i32
    %c0_i32_0 = arith.constant 0 : i32
    %c0_i32_1 = arith.constant 0 : i32
    return %arg0, %c0_i32, %c0_i32_0 : i32, i32, i32
  }
  func.func @transform_2(%arg0: i32, %arg1: i32) -> (i32, i32) {
    %c0_i32 = arith.constant 0 : i32
    %c0_i32_0 = arith.constant 0 : i32
    %c0_i32_1 = arith.constant 0 : i32
    return %c0_i32, %c0_i32_0 : i32, i32
  }
  func.func @transform_3(%arg0: i32, %arg1: i32) -> (i32, i32) {
    %c0_i32 = arith.constant 0 : i32
    %c0_i32_0 = arith.constant 0 : i32
    %c0_i32_1 = arith.constant 0 : i32
    return %c0_i32, %c0_i32_0 : i32, i32
  }
  func.func @transform_4(%arg0: i32, %arg1: i32) -> (i32, i32) {
    %c0_i32 = arith.constant 0 : i32
    %c0_i32_0 = arith.constant 0 : i32
    %c0_i32_1 = arith.constant 0 : i32
    return %c0_i32, %c0_i32_0 : i32, i32
  }
  func.func @transform_5(%arg0: i32, %arg1: i32) -> (i32, i32) {
    %c0_i32 = arith.constant 0 : i32
    %c0_i32_0 = arith.constant 0 : i32
    %c0_i32_1 = arith.constant 0 : i32
    return %c0_i32, %c0_i32_0 : i32, i32
  }
  func.func @transform_6(%arg0: i32, %arg1: i32) -> (i32, i32) {
    %c0_i32 = arith.constant 0 : i32
    %c0_i32_0 = arith.constant 0 : i32
    %c0_i32_1 = arith.constant 0 : i32
    return %c0_i32, %c0_i32_0 : i32, i32
  }
  func.func @transform_7(%arg0: i32, %arg1: i32) -> (i32, i32) {
    %c0_i32 = arith.constant 0 : i32
    %c0_i32_0 = arith.constant 0 : i32
    %c0_i32_1 = arith.constant 0 : i32
    return %c0_i32, %c0_i32_0 : i32, i32
  }
  func.func @transform_8(%arg0: i32, %arg1: i32) -> (i32, i32) {
    %c0_i32 = arith.constant 0 : i32
    %c0_i32_0 = arith.constant 0 : i32
    %c0_i32_1 = arith.constant 0 : i32
    return %c0_i32, %c0_i32_0 : i32, i32
  }
  func.func @transform_9(%arg0: i32, %arg1: i32) -> (i32, i32) {
    %c0_i32 = arith.constant 0 : i32
    %c0_i32_0 = arith.constant 0 : i32
    %c0_i32_1 = arith.constant 0 : i32
    return %c0_i32, %c0_i32_0 : i32, i32
  }
  func.func @transform_10(%arg0: i32, %arg1: i32) -> (i32, i32) {
    %c0_i32 = arith.constant 0 : i32
    %c0_i32_0 = arith.constant 0 : i32
    %c0_i32_1 = arith.constant 0 : i32
    return %c0_i32, %c0_i32_0 : i32, i32
  }
  func.func @transform_11(%arg0: i32, %arg1: i32) -> (i32, i32) {
    %c0_i32 = arith.constant 0 : i32
    %c0_i32_0 = arith.constant 0 : i32
    %c0_i32_1 = arith.constant 0 : i32
    return %c0_i32, %c0_i32_0 : i32, i32
  }
  func.func @transform_12(%arg0: i32, %arg1: i32) -> (i32, i32) {
    %c0_i32 = arith.constant 0 : i32
    %c0_i32_0 = arith.constant 0 : i32
    %c0_i32_1 = arith.constant 0 : i32
    return %c0_i32, %c0_i32_0 : i32, i32
  }
  func.func @transform_13(%arg0: i32, %arg1: i32) -> (i32, i32) {
    %c0_i32 = arith.constant 0 : i32
    %c0_i32_0 = arith.constant 0 : i32
    %c0_i32_1 = arith.constant 0 : i32
    return %c0_i32, %c0_i32_0 : i32, i32
  }
  func.func @transform_14(%arg0: i32, %arg1: i32) -> (i32, i32) {
    %c0_i32 = arith.constant 0 : i32
    %c0_i32_0 = arith.constant 0 : i32
    %c0_i32_1 = arith.constant 0 : i32
    return %c0_i32, %c0_i32_0 : i32, i32
  }
  func.func @transform_15(%arg0: i32, %arg1: i32) -> (i32, i32, i32) {
    %c0_i32 = arith.constant 0 : i32
    %c0_i32_0 = arith.constant 0 : i32
    return %arg0, %arg1, %c0_i32 : i32, i32, i32
  }
}

module attributes {stable_mosaic.version = 11 : i64} {
  func.func @block_kernel(%arg0: i32, %arg1: i32, %arg2: memref<1x8x32xf32, #tpu.memory_space<vmem>>, %arg3: memref<1x8x32xf32, #tpu.memory_space<vmem>>, %arg4: memref<1x32xf32, #tpu.memory_space<vmem>>, %arg5: memref<1x32xf32, #tpu.memory_space<vmem>>, %arg6: memref<32x32xbf16, #tpu.memory_space<vmem>>, %arg7: memref<32x32xbf16, #tpu.memory_space<vmem>>, %arg8: memref<32x32xbf16, #tpu.memory_space<vmem>>, %arg9: memref<32x32xbf16, #tpu.memory_space<vmem>>, %arg10: memref<1x32xf32, #tpu.memory_space<vmem>>, %arg11: memref<1x32xf32, #tpu.memory_space<vmem>>, %arg12: memref<1x32xf32, #tpu.memory_space<vmem>>, %arg13: memref<32x64xbf16, #tpu.memory_space<vmem>>, %arg14: memref<1x64xf32, #tpu.memory_space<vmem>>, %arg15: memref<64x32xbf16, #tpu.memory_space<vmem>>, %arg16: memref<1x32xf32, #tpu.memory_space<vmem>>, %arg17: memref<1x8x32xf32, #tpu.memory_space<vmem>>, %arg18: memref<4x8x8xbf16, #tpu.memory_space<vmem>>, %arg19: memref<4x8x8xbf16, #tpu.memory_space<vmem>>) attributes {dimension_semantics = [#tpu.dimension_semantics<parallel>, #tpu.dimension_semantics<arbitrary>], iteration_bounds = array<i64: 2, 1>, scalar_prefetch = 0 : i64, scratch_operands = 2 : i64, tpu.core_type = #tpu.core_type<tc>, window_params = [{transform_indices = @transform_0, window_bounds = array<i64: 1, 8, 32>}, {transform_indices = @transform_1, window_bounds = array<i64: 1, 8, 32>}, {pipeline_mode = #tpu.pipeline_mode<synchronous>, transform_indices = @transform_2, window_bounds = array<i64: 1, 32>}, {pipeline_mode = #tpu.pipeline_mode<synchronous>, transform_indices = @transform_3, window_bounds = array<i64: 1, 32>}, {pipeline_mode = #tpu.pipeline_mode<synchronous>, transform_indices = @transform_4, window_bounds = array<i64: 32, 32>}, {pipeline_mode = #tpu.pipeline_mode<synchronous>, transform_indices = @transform_5, window_bounds = array<i64: 32, 32>}, {pipeline_mode = #tpu.pipeline_mode<synchronous>, transform_indices = @transform_6, window_bounds = array<i64: 32, 32>}, {pipeline_mode = #tpu.pipeline_mode<synchronous>, transform_indices = @transform_7, window_bounds = array<i64: 32, 32>}, {pipeline_mode = #tpu.pipeline_mode<synchronous>, transform_indices = @transform_8, window_bounds = array<i64: 1, 32>}, {pipeline_mode = #tpu.pipeline_mode<synchronous>, transform_indices = @transform_9, window_bounds = array<i64: 1, 32>}, {pipeline_mode = #tpu.pipeline_mode<synchronous>, transform_indices = @transform_10, window_bounds = array<i64: 1, 32>}, {pipeline_mode = #tpu.pipeline_mode<synchronous>, transform_indices = @transform_11, window_bounds = array<i64: 32, 64>}, {pipeline_mode = #tpu.pipeline_mode<synchronous>, transform_indices = @transform_12, window_bounds = array<i64: 1, 64>}, {pipeline_mode = #tpu.pipeline_mode<synchronous>, transform_indices = @transform_13, window_bounds = array<i64: 64, 32>}, {pipeline_mode = #tpu.pipeline_mode<synchronous>, transform_indices = @transform_14, window_bounds = array<i64: 1, 32>}, {transform_indices = @transform_15, window_bounds = array<i64: 1, 8, 32>}]} {
    %c0 = arith.constant 0 : index
    %c0_0 = arith.constant 0 : index
    %0 = vector.load %arg4[%c0, %c0_0] : memref<1x32xf32, #tpu.memory_space<vmem>>, vector<1x32xf32>
    %1 = vector.shape_cast %0 : vector<1x32xf32> to vector<32xf32>
    %c0_1 = arith.constant 0 : index
    %c0_2 = arith.constant 0 : index
    %2 = vector.load %arg5[%c0_1, %c0_2] : memref<1x32xf32, #tpu.memory_space<vmem>>, vector<1x32xf32>
    %3 = vector.shape_cast %2 : vector<1x32xf32> to vector<32xf32>
    %c0_i32 = arith.constant 0 : i32
    %4 = arith.cmpi eq, %arg1, %c0_i32 : i32
    %5 = arith.extui %4 : i1 to i32
    %c0_i32_3 = arith.constant 0 : i32
    %6 = arith.cmpi ne, %5, %c0_i32_3 : i32
    scf.if %6 {
      %c0_57 = arith.constant 0 : index
      %c0_58 = arith.constant 0 : index
      %c0_59 = arith.constant 0 : index
      %132 = vector.load %arg3[%c0_57, %c0_58, %c0_59] : memref<1x8x32xf32, #tpu.memory_space<vmem>>, vector<1x8x32xf32>
      %133 = vector.shape_cast %132 : vector<1x8x32xf32> to vector<8x32xf32>
      %cst_60 = arith.constant dense<0.000000e+00> : vector<8xf32>
      %134 = vector.multi_reduction <add>, %133, %cst_60 [1] : vector<8x32xf32> to vector<8xf32>
      %135 = vector.shape_cast %134 : vector<8xf32> to vector<8x1xf32>
      %cst_61 = arith.constant 3.200000e+01 : f32
      %136 = vector.broadcast %cst_61 : f32 to vector<8x1xf32>
      %137 = arith.divf %135, %136 : vector<8x1xf32>
      %138 = vector.broadcast %137 : vector<8x1xf32> to vector<8x32xf32>
      %139 = arith.subf %133, %138 : vector<8x32xf32>
      %140 = arith.mulf %139, %139 : vector<8x32xf32>
      %cst_62 = arith.constant dense<0.000000e+00> : vector<8xf32>
      %141 = vector.multi_reduction <add>, %140, %cst_62 [1] : vector<8x32xf32> to vector<8xf32>
      %142 = vector.shape_cast %141 : vector<8xf32> to vector<8x1xf32>
      %cst_63 = arith.constant 3.200000e+01 : f32
      %143 = vector.broadcast %cst_63 : f32 to vector<8x1xf32>
      %144 = arith.divf %142, %143 : vector<8x1xf32>
      %145 = vector.broadcast %137 : vector<8x1xf32> to vector<8x32xf32>
      %146 = arith.subf %133, %145 : vector<8x32xf32>
      %cst_64 = arith.constant 9.99999974E-6 : f32
      %147 = vector.broadcast %cst_64 : f32 to vector<8x1xf32>
      %148 = arith.addf %144, %147 : vector<8x1xf32>
      %149 = math.rsqrt %148 : vector<8x1xf32>
      %150 = vector.broadcast %149 : vector<8x1xf32> to vector<8x32xf32>
      %151 = arith.mulf %146, %150 : vector<8x32xf32>
      %152 = vector.shape_cast %1 : vector<32xf32> to vector<1x32xf32>
      %153 = vector.broadcast %152 : vector<1x32xf32> to vector<8x32xf32>
      %154 = arith.mulf %151, %153 : vector<8x32xf32>
      %155 = vector.shape_cast %3 : vector<32xf32> to vector<1x32xf32>
      %156 = vector.broadcast %155 : vector<1x32xf32> to vector<8x32xf32>
      %157 = arith.addf %154, %156 : vector<8x32xf32>
      %158 = arith.truncf %157 : vector<8x32xf32> to vector<8x32xbf16>
      %c0_65 = arith.constant 0 : index
      %c0_66 = arith.constant 0 : index
      %159 = vector.load %arg7[%c0_65, %c0_66] : memref<32x32xbf16, #tpu.memory_space<vmem>>, vector<32x32xbf16>
      %cst_67 = arith.constant dense<0.000000e+00> : vector<8x32xf32>
      %160 = tpu.matmul %158, %159, %cst_67 {dimension_numbers = #tpu.dot_dimension_numbers<[1], [0], [0], [1], [0, 0, 1, 1], [], []>} : vector<8x32xbf16>, vector<32x32xbf16>, vector<8x32xf32> -> vector<8x32xf32>
      %c0_68 = arith.constant 0 : index
      %c0_69 = arith.constant 0 : index
      %161 = vector.load %arg8[%c0_68, %c0_69] : memref<32x32xbf16, #tpu.memory_space<vmem>>, vector<32x32xbf16>
      %cst_70 = arith.constant dense<0.000000e+00> : vector<8x32xf32>
      %162 = tpu.matmul %158, %161, %cst_70 {dimension_numbers = #tpu.dot_dimension_numbers<[1], [0], [0], [1], [0, 0, 1, 1], [], []>} : vector<8x32xbf16>, vector<32x32xbf16>, vector<8x32xf32> -> vector<8x32xf32>
      %163 = vector.shape_cast %160 : vector<8x32xf32> to vector<8x4x8xf32>
      %164 = tpu.transpose %163, [1, 0, 2] : vector<8x4x8xf32> -> vector<4x8x8xf32>
      %165 = arith.truncf %164 : vector<4x8x8xf32> to vector<4x8x8xbf16>
      %c0_71 = arith.constant 0 : index
      %c0_72 = arith.constant 0 : index
      %c0_73 = arith.constant 0 : index
      %166 = vector.load %arg18[%c0_71, %c0_72, %c0_73] : memref<4x8x8xbf16, #tpu.memory_space<vmem>>, vector<4x8x8xbf16>
      tpu.vector_store %arg18[%c0_71, %c0_72, %c0_73], %165 {strides = array<i32>} : memref<4x8x8xbf16, #tpu.memory_space<vmem>>, vector<4x8x8xbf16>,
      %167 = vector.shape_cast %162 : vector<8x32xf32> to vector<8x4x8xf32>
      %168 = tpu.transpose %167, [1, 0, 2] : vector<8x4x8xf32> -> vector<4x8x8xf32>
      %169 = arith.truncf %168 : vector<4x8x8xf32> to vector<4x8x8xbf16>
      %c0_74 = arith.constant 0 : index
      %c0_75 = arith.constant 0 : index
      %c0_76 = arith.constant 0 : index
      %170 = vector.load %arg19[%c0_74, %c0_75, %c0_76] : memref<4x8x8xbf16, #tpu.memory_space<vmem>>, vector<4x8x8xbf16>
      tpu.vector_store %arg19[%c0_74, %c0_75, %c0_76], %169 {strides = array<i32>} : memref<4x8x8xbf16, #tpu.memory_space<vmem>>, vector<4x8x8xbf16>,
    } else {
    }
    %c0_4 = arith.constant 0 : index
    %c0_5 = arith.constant 0 : index
    %c0_6 = arith.constant 0 : index
    %7 = vector.load %arg2[%c0_4, %c0_5, %c0_6] : memref<1x8x32xf32, #tpu.memory_space<vmem>>, vector<1x8x32xf32>
    %8 = vector.shape_cast %7 : vector<1x8x32xf32> to vector<8x32xf32>
    %cst = arith.constant dense<0.000000e+00> : vector<8xf32>
    %9 = vector.multi_reduction <add>, %8, %cst [1] : vector<8x32xf32> to vector<8xf32>
    %10 = vector.shape_cast %9 : vector<8xf32> to vector<8x1xf32>
    %cst_7 = arith.constant 3.200000e+01 : f32
    %11 = vector.broadcast %cst_7 : f32 to vector<8x1xf32>
    %12 = arith.divf %10, %11 : vector<8x1xf32>
    %13 = vector.broadcast %12 : vector<8x1xf32> to vector<8x32xf32>
    %14 = arith.subf %8, %13 : vector<8x32xf32>
    %15 = arith.mulf %14, %14 : vector<8x32xf32>
    %cst_8 = arith.constant dense<0.000000e+00> : vector<8xf32>
    %16 = vector.multi_reduction <add>, %15, %cst_8 [1] : vector<8x32xf32> to vector<8xf32>
    %17 = vector.shape_cast %16 : vector<8xf32> to vector<8x1xf32>
    %cst_9 = arith.constant 3.200000e+01 : f32
    %18 = vector.broadcast %cst_9 : f32 to vector<8x1xf32>
    %19 = arith.divf %17, %18 : vector<8x1xf32>
    %20 = vector.broadcast %12 : vector<8x1xf32> to vector<8x32xf32>
    %21 = arith.subf %8, %20 : vector<8x32xf32>
    %cst_10 = arith.constant 9.99999974E-6 : f32
    %22 = vector.broadcast %cst_10 : f32 to vector<8x1xf32>
    %23 = arith.addf %19, %22 : vector<8x1xf32>
    %24 = math.rsqrt %23 : vector<8x1xf32>
    %25 = vector.broadcast %24 : vector<8x1xf32> to vector<8x32xf32>
    %26 = arith.mulf %21, %25 : vector<8x32xf32>
    %27 = vector.shape_cast %1 : vector<32xf32> to vector<1x32xf32>
    %28 = vector.broadcast %27 : vector<1x32xf32> to vector<8x32xf32>
    %29 = arith.mulf %26, %28 : vector<8x32xf32>
    %30 = vector.shape_cast %3 : vector<32xf32> to vector<1x32xf32>
    %31 = vector.broadcast %30 : vector<1x32xf32> to vector<8x32xf32>
    %32 = arith.addf %29, %31 : vector<8x32xf32>
    %33 = arith.truncf %32 : vector<8x32xf32> to vector<8x32xbf16>
    %c0_11 = arith.constant 0 : index
    %c0_12 = arith.constant 0 : index
    %34 = vector.load %arg6[%c0_11, %c0_12] : memref<32x32xbf16, #tpu.memory_space<vmem>>, vector<32x32xbf16>
    %cst_13 = arith.constant dense<0.000000e+00> : vector<8x32xf32>
    %35 = tpu.matmul %33, %34, %cst_13 {dimension_numbers = #tpu.dot_dimension_numbers<[1], [0], [0], [1], [0, 0, 1, 1], [], []>} : vector<8x32xbf16>, vector<32x32xbf16>, vector<8x32xf32> -> vector<8x32xf32>
    %36 = vector.shape_cast %35 : vector<8x32xf32> to vector<8x4x8xf32>
    %37 = tpu.transpose %36, [1, 0, 2] : vector<8x4x8xf32> -> vector<4x8x8xf32>
    %38 = arith.truncf %37 : vector<4x8x8xf32> to vector<4x8x8xbf16>
    %cst_14 = arith.constant 0xFF800000 : f32
    %39 = vector.broadcast %cst_14 : f32 to vector<4x8x1xf32>
    %cst_15 = arith.constant 0.000000e+00 : f32
    %40 = vector.broadcast %cst_15 : f32 to vector<4x8x1xf32>
    %cst_16 = arith.constant 0.000000e+00 : f32
    %41 = vector.broadcast %cst_16 : f32 to vector<4x8x8xf32>
    %c0_17 = arith.constant 0 : index
    %c0_18 = arith.constant 0 : index
    %c0_19 = arith.constant 0 : index
    %42 = vector.load %arg18[%c0_17, %c0_18, %c0_19] : memref<4x8x8xbf16, #tpu.memory_space<vmem>>, vector<4x8x8xbf16>
    %c0_20 = arith.constant 0 : index
    %c0_21 = arith.constant 0 : index
    %c0_22 = arith.constant 0 : index
    %43 = vector.load %arg19[%c0_20, %c0_21, %c0_22] : memref<4x8x8xbf16, #tpu.memory_space<vmem>>, vector<4x8x8xbf16>
    "tpu.trace_start"() <{level = 10 : i32, message = "hqd,hkd->hqk"}> : () -> ()
    %cst_23 = arith.constant dense<0.000000e+00> : vector<4x8x8xf32>
    %44 = tpu.matmul %38, %42, %cst_23 {dimension_numbers = #tpu.dot_dimension_numbers<[2], [2], [1], [1], [0, 0, 0, 1, 1, 1], [0], [0]>} : vector<4x8x8xbf16>, vector<4x8x8xbf16>, vector<4x8x8xf32> -> vector<4x8x8xf32>
    "tpu.trace_stop"() : () -> ()
    %cst_24 = arith.constant dense<0xFF800000> : vector<4x8xf32>
    %45 = vector.multi_reduction <maximumf>, %44, %cst_24 [2] : vector<4x8x8xf32> to vector<4x8xf32>
    %46 = vector.shape_cast %45 : vector<4x8xf32> to vector<4x8x1xf32>
    %47 = arith.maximumf %39, %46 : vector<4x8x1xf32>
    %48 = arith.subf %39, %47 : vector<4x8x1xf32>
    %49 = math.exp %48 : vector<4x8x1xf32>
    %50 = vector.broadcast %47 : vector<4x8x1xf32> to vector<4x8x8xf32>
    %51 = arith.subf %44, %50 : vector<4x8x8xf32>
    %52 = math.exp %51 : vector<4x8x8xf32>
    %53 = arith.mulf %49, %40 : vector<4x8x1xf32>
    %cst_25 = arith.constant dense<0.000000e+00> : vector<4x8xf32>
    %54 = vector.multi_reduction <add>, %52, %cst_25 [2] : vector<4x8x8xf32> to vector<4x8xf32>
    %55 = vector.shape_cast %54 : vector<4x8xf32> to vector<4x8x1xf32>
    %56 = arith.addf %53, %55 : vector<4x8x1xf32>
    %57 = vector.broadcast %49 : vector<4x8x1xf32> to vector<4x8x8xf32>
    %58 = arith.mulf %57, %41 : vector<4x8x8xf32>
    %59 = arith.truncf %52 : vector<4x8x8xf32> to vector<4x8x8xbf16>
    "tpu.trace_start"() <{level = 10 : i32, message = "hqk,hkd->hqd"}> : () -> ()
    %cst_26 = arith.constant dense<0.000000e+00> : vector<4x8x8xf32>
    %60 = tpu.matmul %59, %43, %cst_26 {dimension_numbers = #tpu.dot_dimension_numbers<[2], [1], [1], [2], [0, 0, 0, 1, 1, 2], [0], [0]>} : vector<4x8x8xbf16>, vector<4x8x8xbf16>, vector<4x8x8xf32> -> vector<4x8x8xf32>
    "tpu.trace_stop"() : () -> ()
    %61 = arith.addf %58, %60 : vector<4x8x8xf32>
    %62 = tpu.reciprocal %56 {approx = true} : vector<4x8x1xf32> -> vector<4x8x1xf32>
    %63 = vector.broadcast %62 : vector<4x8x1xf32> to vector<4x8x8xf32>
    %64 = arith.mulf %61, %63 : vector<4x8x8xf32>
    %65 = tpu.transpose %64, [1, 0, 2] : vector<4x8x8xf32> -> vector<8x4x8xf32>
    %66 = vector.shape_cast %65 : vector<8x4x8xf32> to vector<8x32xf32>
    %67 = arith.truncf %66 : vector<8x32xf32> to vector<8x32xbf16>
    %c0_27 = arith.constant 0 : index
    %c0_28 = arith.constant 0 : index
    %68 = vector.load %arg9[%c0_27, %c0_28] : memref<32x32xbf16, #tpu.memory_space<vmem>>, vector<32x32xbf16>
    %cst_29 = arith.constant dense<0.000000e+00> : vector<8x32xf32>
    %69 = tpu.matmul %67, %68, %cst_29 {dimension_numbers = #tpu.dot_dimension_numbers<[1], [0], [0], [1], [0, 0, 1, 1], [], []>} : vector<8x32xbf16>, vector<32x32xbf16>, vector<8x32xf32> -> vector<8x32xf32>
    %c0_30 = arith.constant 0 : index
    %c0_31 = arith.constant 0 : index
    %70 = vector.load %arg10[%c0_30, %c0_31] : memref<1x32xf32, #tpu.memory_space<vmem>>, vector<1x32xf32>
    %71 = vector.shape_cast %70 : vector<1x32xf32> to vector<32xf32>
    %72 = vector.shape_cast %71 : vector<32xf32> to vector<1x32xf32>
    %73 = vector.broadcast %72 : vector<1x32xf32> to vector<8x32xf32>
    %74 = arith.addf %69, %73 : vector<8x32xf32>
    %75 = arith.addf %8, %74 : vector<8x32xf32>
    %c0_32 = arith.constant 0 : index
    %c0_33 = arith.constant 0 : index
    %76 = vector.load %arg11[%c0_32, %c0_33] : memref<1x32xf32, #tpu.memory_space<vmem>>, vector<1x32xf32>
    %77 = vector.shape_cast %76 : vector<1x32xf32> to vector<32xf32>
    %c0_34 = arith.constant 0 : index
    %c0_35 = arith.constant 0 : index
    %78 = vector.load %arg12[%c0_34, %c0_35] : memref<1x32xf32, #tpu.memory_space<vmem>>, vector<1x32xf32>
    %79 = vector.shape_cast %78 : vector<1x32xf32> to vector<32xf32>
    %cst_36 = arith.constant dense<0.000000e+00> : vector<8xf32>
    %80 = vector.multi_reduction <add>, %75, %cst_36 [1] : vector<8x32xf32> to vector<8xf32>
    %81 = vector.shape_cast %80 : vector<8xf32> to vector<8x1xf32>
    %cst_37 = arith.constant 3.200000e+01 : f32
    %82 = vector.broadcast %cst_37 : f32 to vector<8x1xf32>
    %83 = arith.divf %81, %82 : vector<8x1xf32>
    %84 = vector.broadcast %83 : vector<8x1xf32> to vector<8x32xf32>
    %85 = arith.subf %75, %84 : vector<8x32xf32>
    %86 = arith.mulf %85, %85 : vector<8x32xf32>
    %cst_38 = arith.constant dense<0.000000e+00> : vector<8xf32>
    %87 = vector.multi_reduction <add>, %86, %cst_38 [1] : vector<8x32xf32> to vector<8xf32>
    %88 = vector.shape_cast %87 : vector<8xf32> to vector<8x1xf32>
    %cst_39 = arith.constant 3.200000e+01 : f32
    %89 = vector.broadcast %cst_39 : f32 to vector<8x1xf32>
    %90 = arith.divf %88, %89 : vector<8x1xf32>
    %91 = vector.broadcast %83 : vector<8x1xf32> to vector<8x32xf32>
    %92 = arith.subf %75, %91 : vector<8x32xf32>
    %cst_40 = arith.constant 9.99999974E-6 : f32
    %93 = vector.broadcast %cst_40 : f32 to vector<8x1xf32>
    %94 = arith.addf %90, %93 : vector<8x1xf32>
    %95 = math.rsqrt %94 : vector<8x1xf32>
    %96 = vector.broadcast %95 : vector<8x1xf32> to vector<8x32xf32>
    %97 = arith.mulf %92, %96 : vector<8x32xf32>
    %98 = vector.shape_cast %77 : vector<32xf32> to vector<1x32xf32>
    %99 = vector.broadcast %98 : vector<1x32xf32> to vector<8x32xf32>
    %100 = arith.mulf %97, %99 : vector<8x32xf32>
    %101 = vector.shape_cast %79 : vector<32xf32> to vector<1x32xf32>
    %102 = vector.broadcast %101 : vector<1x32xf32> to vector<8x32xf32>
    %103 = arith.addf %100, %102 : vector<8x32xf32>
    %104 = arith.truncf %103 : vector<8x32xf32> to vector<8x32xbf16>
    %c0_41 = arith.constant 0 : index
    %c0_42 = arith.constant 0 : index
    %105 = vector.load %arg13[%c0_41, %c0_42] : memref<32x64xbf16, #tpu.memory_space<vmem>>, vector<32x64xbf16>
    %cst_43 = arith.constant dense<0.000000e+00> : vector<8x64xf32>
    %106 = tpu.matmul %104, %105, %cst_43 {dimension_numbers = #tpu.dot_dimension_numbers<[1], [0], [0], [1], [0, 0, 1, 1], [], []>} : vector<8x32xbf16>, vector<32x64xbf16>, vector<8x64xf32> -> vector<8x64xf32>
    %c0_44 = arith.constant 0 : index
    %c0_45 = arith.constant 0 : index
    %107 = vector.load %arg14[%c0_44, %c0_45] : memref<1x64xf32, #tpu.memory_space<vmem>>, vector<1x64xf32>
    %108 = vector.shape_cast %107 : vector<1x64xf32> to vector<64xf32>
    %109 = vector.shape_cast %108 : vector<64xf32> to vector<1x64xf32>
    %110 = vector.broadcast %109 : vector<1x64xf32> to vector<8x64xf32>
    %111 = arith.addf %106, %110 : vector<8x64xf32>
    %cst_46 = arith.constant 5.000000e-01 : f32
    %112 = vector.broadcast %cst_46 : f32 to vector<8x64xf32>
    %113 = arith.mulf %112, %111 : vector<8x64xf32>
    %cst_47 = arith.constant 0.707106769 : f32
    %114 = vector.broadcast %cst_47 : f32 to vector<8x64xf32>
    %115 = arith.mulf %111, %114 : vector<8x64xf32>
    %116 = math.erf %115 : vector<8x64xf32>
    %cst_48 = arith.constant 1.000000e+00 : f32
    %117 = vector.broadcast %cst_48 : f32 to vector<8x64xf32>
    %118 = arith.addf %117, %116 : vector<8x64xf32>
    %119 = arith.mulf %113, %118 : vector<8x64xf32>
    %120 = arith.truncf %119 : vector<8x64xf32> to vector<8x64xbf16>
    %c0_49 = arith.constant 0 : index
    %c0_50 = arith.constant 0 : index
    %121 = vector.load %arg15[%c0_49, %c0_50] : memref<64x32xbf16, #tpu.memory_space<vmem>>, vector<64x32xbf16>
    %cst_51 = arith.constant dense<0.000000e+00> : vector<8x32xf32>
    %122 = tpu.matmul %120, %121, %cst_51 {dimension_numbers = #tpu.dot_dimension_numbers<[1], [0], [0], [1], [0, 0, 1, 1], [], []>} : vector<8x64xbf16>, vector<64x32xbf16>, vector<8x32xf32> -> vector<8x32xf32>
    %c0_52 = arith.constant 0 : index
    %c0_53 = arith.constant 0 : index
    %123 = vector.load %arg16[%c0_52, %c0_53] : memref<1x32xf32, #tpu.memory_space<vmem>>, vector<1x32xf32>
    %124 = vector.shape_cast %123 : vector<1x32xf32> to vector<32xf32>
    %125 = vector.shape_cast %124 : vector<32xf32> to vector<1x32xf32>
    %126 = vector.broadcast %125 : vector<1x32xf32> to vector<8x32xf32>
    %127 = arith.addf %122, %126 : vector<8x32xf32>
    %128 = arith.addf %75, %127 : vector<8x32xf32>
    %c0_54 = arith.constant 0 : index
    %c0_55 = arith.constant 0 : index
    %c0_56 = arith.constant 0 : index
    %129 = vector.load %arg17[%c0_54, %c0_55, %c0_56] : memref<1x8x32xf32, #tpu.memory_space<vmem>>, vector<1x8x32xf32>
    %130 = vector.shape_cast %129 : vector<1x8x32xf32> to vector<8x32xf32>
    %131 = vector.shape_cast %128 : vector<8x32xf32> to vector<1x8x32xf32>
    tpu.vector_store %arg17[%c0_54, %c0_55, %c0_56], %131 {strides = array<i32>} : memref<1x8x32xf32, #tpu.memory_space<vmem>>, vector<1x8x32xf32>,
    return
  }
  func.func @transform_0(%arg0: i32, %arg1: i32) -> (i32, i32, i32) {
    %c0_i32 = arith.constant 0 : i32
    %c0_i32_0 = arith.constant 0 : i32
    return %arg0, %arg1, %c0_i32 : i32, i32, i32
  }
  func.func @transform_1(%arg0: i32, %arg1: i32) -> (i32, i32, i32) {
    %c0_i32 = arith.constant 0 : i32
    %c0_i32_0 = arith.constant 0 : i32
    %c0_i32_1 = arith.constant 0 : i32
    return %arg0, %c0_i32, %c0_i32_0 : i32, i32, i32
  }
  func.func @transform_2(%arg0: i32, %arg1: i32) -> (i32, i32) {
    %c0_i32 = arith.constant 0 : i32
    %c0_i32_0 = arith.constant 0 : i32
    %c0_i32_1 = arith.constant 0 : i32
    return %c0_i32, %c0_i32_0 : i32, i32
  }
  func.func @transform_3(%arg0: i32, %arg1: i32) -> (i32, i32) {
    %c0_i32 = arith.constant 0 : i32
    %c0_i32_0 = arith.constant 0 : i32
    %c0_i32_1 = arith.constant 0 : i32
    return %c0_i32, %c0_i32_0 : i32, i32
  }
  func.func @transform_4(%arg0: i32, %arg1: i32) -> (i32, i32) {
    %c0_i32 = arith.constant 0 : i32
    %c0_i32_0 = arith.constant 0 : i32
    %c0_i32_1 = arith.constant 0 : i32
    return %c0_i32, %c0_i32_0 : i32, i32
  }
  func.func @transform_5(%arg0: i32, %arg1: i32) -> (i32, i32) {
    %c0_i32 = arith.constant 0 : i32
    %c0_i32_0 = arith.constant 0 : i32
    %c0_i32_1 = arith.constant 0 : i32
    return %c0_i32, %c0_i32_0 : i32, i32
  }
  func.func @transform_6(%arg0: i32, %arg1: i32) -> (i32, i32) {
    %c0_i32 = arith.constant 0 : i32
    %c0_i32_0 = arith.constant 0 : i32
    %c0_i32_1 = arith.constant 0 : i32
    return %c0_i32, %c0_i32_0 : i32, i32
  }
  func.func @transform_7(%arg0: i32, %arg1: i32) -> (i32, i32) {
    %c0_i32 = arith.constant 0 : i32
    %c0_i32_0 = arith.constant 0 : i32
    %c0_i32_1 = arith.constant 0 : i32
    return %c0_i32, %c0_i32_0 : i32, i32
  }
  func.func @transform_8(%arg0: i32, %arg1: i32) -> (i32, i32) {
    %c0_i32 = arith.constant 0 : i32
    %c0_i32_0 = arith.constant 0 : i32
    %c0_i32_1 = arith.constant 0 : i32
    return %c0_i32, %c0_i32_0 : i32, i32
  }
  func.func @transform_9(%arg0: i32, %arg1: i32) -> (i32, i32) {
    %c0_i32 = arith.constant 0 : i32
    %c0_i32_0 = arith.constant 0 : i32
    %c0_i32_1 = arith.constant 0 : i32
    return %c0_i32, %c0_i32_0 : i32, i32
  }
  func.func @transform_10(%arg0: i32, %arg1: i32) -> (i32, i32) {
    %c0_i32 = arith.constant 0 : i32
    %c0_i32_0 = arith.constant 0 : i32
    %c0_i32_1 = arith.constant 0 : i32
    return %c0_i32, %c0_i32_0 : i32, i32
  }
  func.func @transform_11(%arg0: i32, %arg1: i32) -> (i32, i32) {
    %c0_i32 = arith.constant 0 : i32
    %c0_i32_0 = arith.constant 0 : i32
    %c0_i32_1 = arith.constant 0 : i32
    return %c0_i32, %c0_i32_0 : i32, i32
  }
  func.func @transform_12(%arg0: i32, %arg1: i32) -> (i32, i32) {
    %c0_i32 = arith.constant 0 : i32
    %c0_i32_0 = arith.constant 0 : i32
    %c0_i32_1 = arith.constant 0 : i32
    return %c0_i32, %c0_i32_0 : i32, i32
  }
  func.func @transform_13(%arg0: i32, %arg1: i32) -> (i32, i32) {
    %c0_i32 = arith.constant 0 : i32
    %c0_i32_0 = arith.constant 0 : i32
    %c0_i32_1 = arith.constant 0 : i32
    return %c0_i32, %c0_i32_0 : i32, i32
  }
  func.func @transform_14(%arg0: i32, %arg1: i32) -> (i32, i32) {
    %c0_i32 = arith.constant 0 : i32
    %c0_i32_0 = arith.constant 0 : i32
    %c0_i32_1 = arith.constant 0 : i32
    return %c0_i32, %c0_i32_0 : i32, i32
  }
  func.func @transform_15(%arg0: i32, %arg1: i32) -> (i32, i32, i32) {
    %c0_i32 = arith.constant 0 : i32
    %c0_i32_0 = arith.constant 0 : i32
    return %arg0, %arg1, %c0_i32 : i32, i32, i32
  }
}

</mosaic_0001>

<bundles_post_ra>
// kernel: tpu_custom_call.1
= control target key start
LH: loop header
LB: loop body
LE: loop exit
PB: predicated region body
PF: predicated region fallthrough
CT: control target
= control target key end

     0   :  { %s2882_s0 = inlined_call_operand.vmem [shape: f32[2,8,32], index: 0, kind: input, shape index: {}]   ;;  %s2883_s1 = inlined_call_operand.vmem [shape: f32[2,8,32], index: 1, kind: input, shape index: {}]   ;;  %s2884_s2 = inlined_call_operand.vmem [shape: f32[1,32], index: 2, kind: input, shape index: {}]   ;;  %s2885_s3 = inlined_call_operand.vmem [shape: f32[1,32], index: 3, kind: input, shape index: {}]   ;;  %s2886_s4 = inlined_call_operand.vmem [shape: bf16[32,32], index: 4, kind: input, shape index: {}]   ;;  %s2887_s5 = inlined_call_operand.hbm [shape: bf16[32,32], index: 5, kind: input, shape index: {}]   ;;  %s2888_s6 = inlined_call_operand.hbm [shape: bf16[32,32], index: 6, kind: input, shape index: {}]   ;;  %s2889_s7 = inlined_call_operand.hbm [shape: bf16[32,32], index: 7, kind: input, shape index: {}]   ;;  %s2890_s8 = inlined_call_operand.vmem [shape: f32[1,32], index: 8, kind: input, shape index: {}]   ;;  %s2891_s9 = inlined_call_operand.vmem [shape: f32[1,32], index: 9, kind: input, shape index: {}]   ;;  %s2892_s10 = inlined_call_operand.vmem [shape: f32[1,32], index: 10, kind: input, shape index: {}]   ;;  %s2893_s11 = inlined_call_operand.hbm [shape: bf16[32,64], index: 11, kind: input, shape index: {}]   ;;  %s2894_s12 = inlined_call_operand.vmem [shape: f32[1,64], index: 12, kind: input, shape index: {}]   ;;  %s2895_s13 = inlined_call_operand.vmem [shape: bf16[64,32], index: 13, kind: input, shape index: {}]   ;;  %s2896_s14 = inlined_call_operand.vmem [shape: f32[1,32], index: 14, kind: input, shape index: {}]   ;;  %s2897_s15 = inlined_call_operand.hbm [shape: f32[2,8,32], index: 15, kind: output, shape index: {}]  }
   0x1   :  { %2910 = sst [smem:[#allocation26_spill]] %s2888_s6 }
   0x2   :  { %2911 = sst [smem:[#allocation27_spill]] %s2895_s13 }
   0x3   :  { %2912 = sst [smem:[#allocation28_spill]] %s2896_s14 }
   0x4   :  { %2913 = sst [smem:[#allocation29_spill]] %s2897_s15 }
   0x5   :  { %20 = vsyncpa [#allocation5], 0 }
   0x6   :  { %21 = vsyncpa [#allocation8], 0 }
   0x7   :  { %22 = vsyncpa [#allocation11], 0 }
   0x8   :  { %23 = vsyncpa [#allocation6], 0 }
   0x9   :  { %25 = vsyncpa [#allocation6 + $0x1], 0  ;;  %s2432_s18 = smov 0   ;;  %s2434_s19 = smov 0  }
   0xa   :  { %s2436_s20 = smov 0   ;;  %s2438_s21 = smov 0  }
   0xb   :  { %s2440_s22 = smov 0   ;;  %s2442_s23 = smov 0  }
   0xc LB: > { %2914 = sst [smem:[#allocation17_spill]] %s2315_s18  ;;  %s1871_s24 = sadd.s32 4294967295, %s2335_s23   ;;  %s2335_s23 = sphi %s2442_s23, %s31_s23   ;;  %s2331_s22 = sphi %s2440_s22, %s2941_s22   ;;  %s2327_s21 = sphi %s2438_s21, %s2940_s21   ;;  %s2323_s20 = sphi %s2436_s20, %s2939_s20   ;;  %s2319_s19 = sphi %s2434_s19, %s2938_s19   ;;  %s2315_s18 = sphi %s2432_s18, %s2937_s18  }
   0xd   : > { %2915 = sst [smem:[#allocation18_spill]] %s2319_s19  ;;  %s1872_s25 = sadd.s32 4294967294, %s2335_s23  }
   0xe   : > { %2916 = sst [smem:[#allocation19_spill]] %s2323_s20  ;;  %s43_s26 = sadd.s32 1, %s2331_s22 }
   0xf   : > { %2917 = sst [smem:[#allocation20_spill]] %s2331_s22  ;;  %s379_s27 = sadd.s32 1, %s2323_s20 }
  0x10   : > { %2918 = sst [smem:[#allocation21_spill]] %s2335_s23  ;;  %p45_p0 = scmp.ge.s32.totalorder %s43_s26, 2 }
  0x11   : > { %p389_p1 = scmp.ne.s32.totalorder %s2323_s20, %s2319_s19  ;;  %p390_p2 = scmp.eq.s32.totalorder %s1871_s24, 1 }
  0x12   : > { %p395_p3 = scmp.ne.s32.totalorder %s2319_s19, %s2315_s18  ;;  %s2943_s26 = smov (%p45_p0, %s43_s26), 0 }
  0x13   : > { %2919 = sst [smem:[#allocation22_spill]] %s2943_s26  ;;  %p2472_p4 = por %p390_p2, %p389_p1 }
  0x14   : > { %p396_p5 = scmp.eq.s32.totalorder %s1872_s25, 1  ;;  %s374_s29 = ssub.s32 %s2331_s22, %s2943_s26 }
  0x15   : > { %s2920_s28 = scalar_select %p2472_p4, 1, 0 }
  0x16   : > { %p1873_p6 = scmp.ge.s32.totalorder %s2335_s23, 1  ;;  %p377_p7 = scmp.eq.s32.totalorder %s374_s29, 0 }
  0x17   : > { %2921 = sst [smem:[#allocation23_spill]] %s2920_s28  ;;  %p2479_p8 = por %p396_p5, %p395_p3 }
  0x18   : > { %p403_p9 = scmp.lt.s32.totalorder %s2335_s23, 3  ;;  %p2491_p11 = scmp.eq.s32.totalorder %s1871_s24, 0 }
  0x19   : > { %s2922_s30 = scalar_select %p2479_p8, 1, 0 }
  0x1a   : > { %s2485_s16 = scalar_select %p377_p7, %s2323_s20, %s379_s27  }
  0x1b   : > { %2923 = sst [smem:[#allocation24_spill]] %s2922_s30  ;;  %p2487_p10 = pnand %p1873_p6, %p403_p9 }
  0x1c   : > { %2924 = sst [smem:[#allocation25_spill]] %s2485_s16  ;;  %s2337_s22 = smov [#allocation7]  }
  0x1d   : > { %p1994_p12 = pneg %p2487_p10  ;;  %s2927_s6 = sld [smem:[#allocation26_spill]] }
  0x1e   : > { %s439_s24 = sshll.u32 %s2337_s22, 4  ;;  %s2338_s16 = smov 64   ;;  %s440_s24 = int_to_ptr.vmem [resolvable:$true] %s439_s24 }
  0x1f   : > { %p2502_p13 = pnand %p2491_p11, %p1994_p12  ;;  %s2339_s20 = smov 4  }
  0x20   : > { %s423_s25 = sshll.u32 %s2887_s5, 4  ;;  %s2340_s29 = smov [#allocation4]   ;;  %s424_s25 = int_to_ptr.hbm [resolvable:$true] %s423_s25 }
  0x21   : > { %s451_s14 = sshll.u32 %s2889_s7, 4  ;;  %s2341_s22 = smov [#allocation9]   ;;  %s452_s14 = int_to_ptr.hbm [resolvable:$true] %s451_s14 }
  0x22   : > { %s453_s19 = sshll.u32 %s2341_s22, 4  ;;  %s2342_s23 = smov [#allocation10]   ;;  %s454_s19 = int_to_ptr.vmem [resolvable:$true] %s453_s19 }
  0x23   : > { %s437_s26 = sshll.u32 %s2927_s6, 4  ;;  %s425_s6 = sshll.u32 %s2340_s29, 4  ;;  %s438_s26 = int_to_ptr.hbm [resolvable:$true] %s437_s26  ;;  %s426_s6 = int_to_ptr.vmem [resolvable:$true] %s425_s6 }
  0x24   : > { %2000 = dma.hbm_to_vmem [thread:$0]  (!%p2502_p13), %s438_s26, 256, %s440_s24, [#allocation8], %s2338_s16, %s2338_s16, %s2339_s20  }
  0x25   : > { %1997 = dma.hbm_to_vmem [thread:$0]  (!%p2502_p13), %s424_s25, 256, %s426_s6, [#allocation5], %s2338_s16, %s2338_s16, %s2339_s20  }
  0x26   : > { %s474_s24 = sshll.u32 %s2893_s11, 4  ;;  %s476_s30 = sshll.u32 %s2342_s23, 4  ;;  %s475_s24 = int_to_ptr.hbm [resolvable:$true] %s474_s24  ;;  %s477_s30 = int_to_ptr.vmem [resolvable:$true] %s476_s30 }
  0x27   : > { %2003 = dma.hbm_to_vmem [thread:$0]  (!%p2502_p13), %s452_s14, 256, %s454_s19, [#allocation8], %s2338_s16, %s2338_s16, %s2339_s20  }
  0x28   : > { %2006 = dma.hbm_to_vmem [thread:$0]  (!%p2502_p13), %s475_s24, 256, %s477_s30, [#allocation11], %s2338_s16, %s2338_s16, %s2339_s20  }
  0x29   : > { %518 = sbr.rel (%p2487_p10) target bundleno = 1882 (0x75a), region = 80 }
  0x2e   : > { %2298 = dma.done.wait (%p2491_p11), [#allocation5], 256  }
  0x2f   : > { %2300 = vsyncadd (%p2491_p11), [#allocation5], 4294967040 }
  0x30   : > { %2302 = dma.done.wait (%p2491_p11), [#allocation8], 512  }
  0x31   : > { %2304 = vsyncadd (%p2491_p11), [#allocation8], 4294966784 }
  0x32   : > { %2306 = dma.done.wait (%p2491_p11), [#allocation11], 256  }
  0x33   : > { %2308 = vsyncadd (%p2491_p11), [#allocation11], 4294967040  ;;  %p588_p0 = scmp.lt.s32.totalorder %s2327_s21, 1  ;;  %vm607_vm0 = vcmask 261120   ;;  %v2343_v4 = vmov 32.0   ;;  %v1963_v21 = vld [vmem:[#allocation4 + $0x8] sm:$0xff] }
  0x34   : > { %2090 = vrcp.f32 %v2343_v4  ;;  %v1965_v22 = vld [vmem:[#allocation7 + $0x8] sm:$0xff]  ;;  %671 = vmatpush.bf16.msra.mxu0 %v1963_v21  ;;  %v1962_v23 = vld [vmem:[#allocation4] sm:$0xff]  ;;  %v1964_v24 = vld [vmem:[#allocation7] sm:$0xff]  ;;  %s2344_s23 = smov 104   ;;  %s2345_s30 = smov 120   ;;  %vm718_vm8 = vcmask 1047556  }
  0x35   : > { %s589_s6 = scalar_select %p588_p0, %s2327_s21, 1  ;;  %700 = vmatpush.bf16.msra.mxu1 %v1965_v22  ;;  %v1967_v25 = vld [vmem:[%s2886_s4 + $0x8] sm:$0xff]  ;;  %v1966_v27 = vld [vmem:[%s2886_s4] sm:$0xff]  ;;  %vm832_vm9 = vcmask 60416   ;;  %vm1170_vm10 = vcmask 64512   ;;  %vm1310_vm11 = vcmask 1043456  }
  0x36   : > { %1030 = vmatpush.bf16.msra.mxu2 %v1967_v25  ;;  %v2083_v41 = vld [vmem:[%s2884_s2] ss:$0 sm:$0xff]  ;;  %s2350_s14 = smov 16   ;;  %s2351_s15 = smov 8   ;;  %vm1519_vm12 = vcmask 130048   ;;  %vm1521_vm13 = vcmask 195584  }
  0x37   : > { %s1885_s13 = sshll.u32 %s589_s6, 3  ;;  %v2084_v45 = vld [vmem:[%s2885_s3] ss:$0 sm:$0xff]  ;;  %s2346_s6 = smov 112  }
  0x38   : > { %s598_s19 = scalar_lea.vmem %s2883_s1, %s1885_s13  ;;  %s2546_s16 = scalar_lea.vmem %s2882_s0, %s1885_s13  ;;  %672 = vmatpush.bf16.msra.mxu0 %v1962_v23 }
  0x39   : > { %v606_v0 = vld [vmem:[%s598_s19] sm:$0xff]  ;;  %701 = vmatpush.bf16.msra.mxu1 %v1964_v24  ;;  %s2349_s13 = smov 24   ;;  %s2929_s26 = sld [smem:[#allocation27_spill]] }
  0x3a   : > { %v608_v1 = vsel %vm607_vm0, %v606_v0, 0.0  ;;  %v965_v2 = vld [vmem:[%s2546_s16] sm:$0xff]  ;;  %v2091_v5 = vpop.eup %2090  ;;  %1031 = vmatpush.bf16.msra.mxu2 %v1966_v27  ;;  %s1959_s28 = sshll.u32 %s2327_s21, 3  ;;  %s2931_s17 = sld [smem:[#allocation28_spill]] }
  0x3b   : > { %609 = vadd.xlane.f32.xlu0 %v608_v1  ;;  %v967_v3 = vsel %vm607_vm0, %v965_v2, 0.0  ;;  %v612_v6 = vmul.f32 32.0, %v2091_v5  ;;  %vm616_vm1 = vweird.f32 %v2091_v5  ;;  %v2347_v1 = vmov 1983009808   ;;  %s2932_s29 = sld [smem:[#allocation29_spill]] }
  0x3d   : > { %v613_v7 = vsub.f32 1.0, %v612_v6 }
  0x3f   : > { %v614_v8 = vmul.f32 %v2091_v5, %v613_v7 }
  0x41   : > { %v615_v9 = vadd.f32 %v2091_v5, %v614_v8  ;;  %s1742_s24 = scalar_lea.hbm %s2932_s29, %s1959_s28 }
  0x43   : > { %968 = vadd.xlane.f32.xlu0 %v967_v3  ;;  %v2550_v10 = vsel %vm616_vm1, %v2091_v5, %v615_v9 }
  0xae   : > { %v610_v11 = vpop.xlane.xlu0 %609 }
  0xaf   : > { %v618_v12 = vmul.f32 %v2550_v10, %v610_v11  ;;  %v2348_v11 = vmov 1934713408  }
  0xb1   : > { %v619_v13 = vsub.f32 %v606_v0, %v618_v12  ;;  %v747_v12 = vunpack.c.l.s4 %v2348_v11 }
  0xb3   : > { %v620_v14 = vmul.f32 %v619_v13, %v619_v13  ;;  %v2588_v21 = vunpack.c.0.s8 %v747_v12 }
  0xb5   : > { %v621_v15 = vsel %vm607_vm0, %v620_v14, 0.0 }
  0xb6   : > { %622 = vadd.xlane.f32.xlu1 %v621_v15  ;;  %v969_v16 = vpop.xlane.xlu0 %968 }
  0xb7   : > { %v977_v17 = vmul.f32 %v969_v16, %v2550_v10 }
  0xb9   : > { %v978_v18 = vsub.f32 %v965_v2, %v977_v17  ;;  %v723_v2 = vunpack.c.l.s4 %v2347_v1 }
  0xbb   : > { %v979_v19 = vmul.f32 %v978_v18, %v978_v18  ;;  %v2578_v6 = vunpack.c.0.s8 %v723_v2 }
  0xbd   : > { %v980_v20 = vsel %vm607_vm0, %v979_v19, 0.0 }
  0xbe   : > { %981 = vadd.xlane.f32.xlu1 %v980_v20 }
 0x129   : > { %v623_v26 = vpop.xlane.xlu1 %622 }
 0x12a   : > { %v624_v28 = vmul.f32 %v623_v26, %v2550_v10 }
 0x12c   : > { %v625_v29 = vadd.f32 1e-05, %v624_v28 }
 0x12e   : > { %2092 = vrsqrt.f32 %v625_v29  ;;  %vm632_vm3 = vweird.f32 %v625_v29 }
 0x131   : > { %v982_v30 = vpop.xlane.xlu1 %981 }
 0x132   : > { %v983_v31 = vmul.f32 %v982_v30, %v2550_v10 }
 0x134   : > { %v2093_v32 = vpop.eup %2092  ;;  %v984_v33 = vadd.f32 1e-05, %v983_v31 }
 0x135   : > { %v627_v34 = vmul.f32 %v2093_v32, %v625_v29  ;;  %vm633_vm2 = vweird.f32 %v2093_v32 }
 0x136   : > { %2094 = vrsqrt.f32 %v984_v33  ;;  %vm634_vm4 = vmor %vm632_vm3, %vm633_vm2  ;;  %vm991_vm6 = vweird.f32 %v984_v33 }
 0x137   : > { %v628_v35 = vmul.f32 %v2093_v32, %v627_v34 }
 0x139   : > { %v629_v36 = vmul.f32 0.5, %v628_v35 }
 0x13b   : > { %v630_v37 = vsub.f32 1.5, %v629_v36 }
 0x13c   : > { %v2095_v38 = vpop.eup %2094 }
 0x13d   : > { %v631_v39 = vmul.f32 %v2093_v32, %v630_v37  ;;  %v986_v40 = vmul.f32 %v2095_v38, %v984_v33  ;;  %vm992_vm5 = vweird.f32 %v2095_v38 }
 0x13e   : > { %vm993_vm7 = vmor %vm991_vm6, %vm992_vm5  ;;  %vm1711_vm6 = vcmask 523264  }
 0x13f   : > { %v635_v42 = vsel %vm634_vm4, %v2093_v32, %v631_v39  ;;  %v987_v43 = vmul.f32 %v2095_v38, %v986_v40 }
 0x140   : > { %v636_v44 = vmul.f32 %v635_v42, %v619_v13 }
 0x141   : > { %v988_v46 = vmul.f32 0.5, %v987_v43 }
 0x142   : > { %v640_v47 = vmul.f32 %v2083_v41, %v636_v44 }
 0x143   : > { %v989_v48 = vsub.f32 1.5, %v988_v46 }
 0x144   : > { %v644_v49 = vadd.f32 %v2084_v45, %v640_v47 }
 0x145   : > { %v990_v50 = vmul.f32 %v2095_v38, %v989_v48 }
 0x146   : > { %v645_v51 = vpack.c.bf16 %v644_v49, %v644_v49 }
 0x147   : > { %v994_v52 = vsel %vm993_vm7, %v2095_v38, %v990_v50 }
 0x148   : > { %1895 = vmatmul.msk.bf16.vlgmr.msra.gmra.mxu0 %vm607_vm0, %v645_v51  ;;  %1904 = vmatmul.msk.bf16.vlgmr.msra.gmra.mxu1 %vm607_vm0, %v645_v51  ;;  %v995_v53 = vmul.f32 %v994_v52, %v978_v18 }
 0x14a   : > { %v999_v54 = vmul.f32 %v2083_v41, %v995_v53 }
 0x14c   : > { %v1003_v55 = vadd.f32 %v2084_v45, %v999_v54 }
 0x14e   : > { %v1004_v56 = vpack.c.bf16 %v1003_v55, %v1003_v55 }
 0x150   : > { %1913 = vmatmul.msk.bf16.vlgmr.msra.gmra.mxu2 %vm607_vm0, %v1004_v56 }
 0x1c5   : > { %v674_v57 = vpop.f32.mrf.mxu0  ;;  %v2573_v58 = vpop.f32.mrf.mxu1 }
 0x1c6   : > { %714 = vrot.lane.b32.xlu0 %v674_v57, %s2344_s23  ;;  %708 = vrot.lane.b32.xlu2 %v674_v57, %s2345_s30  ;;  %v720_v5 = vrot.slane %v674_v57, 4  ;;  %v849_v40 = vrot.slane %v2573_v58, 4 }
 0x1cd   : > { %v676_v59 = vpop.f32.mrf.mxu0  ;;  %v705_v60 = vpop.f32.mrf.mxu1 }
 0x1ce   : > { %841 = vrot.lane.b32.xlu0 %v2573_v58, %s2346_s6  ;;  %711 = vrot.lane.b32.xlu2 %v674_v57, %s2346_s6 }
 0x1d3   : > { %v1033_v61 = vpop.f32.mrf.mxu2 }
 0x1d4   : > { %1038 = vrot.lane.b32.xlu1 %v1033_v61, %s2345_s30  ;;  %v1050_v14 = vrot.slane %v1033_v61, 4 }
 0x1d6   : > { %1041 = vrot.lane.b32.xlu2 %v1033_v61, %s2346_s6  ;;  %s1746_s6 = sshll.u32 %s1742_s24, 4  ;;  %s1747_s6 = int_to_ptr.hbm [resolvable:$true] %s1746_s6 }
 0x1db   : > { %v1035_v62 = vpop.f32.mrf.mxu2 }
 0x1de   : > { %1044 = vrot.lane.b32.xlu2 %v1033_v61, %s2344_s23 }
 0x1e6   : > { %838 = vrot.lane.b32.xlu2 %v2573_v58, %s2345_s30 }
 0x1ee   : > { %844 = vrot.lane.b32.xlu2 %v2573_v58, %s2344_s23 }
 0x220   : > { %v709_v63 = vpop.permute.xlu2 %708 }
 0x221   : > { %v732_v15 = vrot.slane %v709_v63, 4 }
 0x228   : > { %v712_v0 = vpop.permute.xlu2 %711 }
 0x229   : > { %v717_v3 = vrot.slane %v712_v0, 4  ;;  %v721_v7 = vsel %vm718_vm8, %v712_v0, %v720_v5 }
 0x22a   : > { %v729_v13 = vperm.slane %v721_v7, %v2578_v6 }
 0x22b   : > { %v719_v8 = vsel %vm718_vm8, %v717_v3, %v674_v57 }
 0x22c   : > { %v725_v16 = vperm.slane %v719_v8, %v2578_v6  ;;  %v756_v24 = vrot.slane %v729_v13, 4 }
 0x22e   : > { %v744_v26 = vrot.slane %v725_v16, 4 }
 0x230   : > { %v1042_v4 = vpop.permute.xlu2 %1041 }
 0x231   : > { %v1047_v9 = vrot.slane %v1042_v4, 4  ;;  %v1051_v17 = vsel %vm718_vm8, %v1042_v4, %v1050_v14 }
 0x232   : > { %v2593_v27 = vperm.slane %v1051_v17, %v2578_v6 }
 0x233   : > { %v1049_v20 = vsel %vm718_vm8, %v1047_v9, %v1033_v61 }
 0x234   : > { %v2597_v29 = vperm.slane %v1049_v20, %v2578_v6  ;;  %v1086_v42 = vrot.slane %v2593_v27, 4 }
 0x236   : > { %v1074_v41 = vrot.slane %v2597_v29, 4 }
 0x238   : > { %v715_v18 = vpop.permute.xlu0 %714  ;;  %v2585_v19 = vpop.permute.xlu2 %1044 }
 0x239   : > { %v730_v22 = vrot.slane %v715_v18, 4  ;;  %v733_v23 = vsel %vm718_vm8, %v715_v18, %v732_v15  ;;  %v1060_v44 = vrot.slane %v2585_v19, 4 }
 0x23a   : > { %v741_v25 = vperm.slane %v733_v23, %v2578_v6 }
 0x23b   : > { %v731_v28 = vsel %vm718_vm8, %v730_v22, %v709_v63 }
 0x23c   : > { %v737_v30 = vperm.slane %v731_v28, %v2578_v6  ;;  %v754_v31 = vrot.slane %v741_v25, 4  ;;  %v757_v32 = vsel %vm718_vm8, %v741_v25, %v756_v24 }
 0x23d   : > { %v765_v33 = vperm.slane %v757_v32, %v2588_v21 }
 0x23e   : > { %v742_v34 = vrot.slane %v737_v30, 4  ;;  %v745_v35 = vsel %vm718_vm8, %v737_v30, %v744_v26  ;;  %v755_v36 = vsel %vm718_vm8, %v754_v31, %v729_v13 }
 0x23f   : > { %v753_v37 = vperm.slane %v745_v35, %v2588_v21  ;;  %v761_v38 = vperm.slane %v755_v36, %v2588_v21  ;;  %v772_v39 = vrot.slane %v765_v33, 4 }
 0x240   : > { %v743_v43 = vsel %vm718_vm8, %v742_v34, %v725_v16  ;;  %v842_v45 = vpop.permute.xlu0 %841  ;;  %v2611_v46 = vpop.permute.xlu2 %838 }
 0x241   : > { %v749_v47 = vperm.slane %v743_v43, %v2588_v21  ;;  %v768_v48 = vrot.slane %v753_v37, 4  ;;  %v770_v49 = vrot.slane %v761_v38, 4  ;;  %v773_v50 = vsel %vm718_vm8, 0.0, %v772_v39 }
 0x242   : > { %v785_v51 = vsel %vm718_vm8, %v772_v39, %v761_v38  ;;  %v790_v52 = vrot.slane %v773_v50, 4  ;;  %v847_v53 = vrot.slane %v842_v45, 4  ;;  %v850_v54 = vsel %vm718_vm8, %v842_v45, %v849_v40 }
 0x243   : > { %v766_v55 = vrot.slane %v749_v47, 4  ;;  %v769_v56 = vsel %vm718_vm8, 0.0, %v768_v48  ;;  %v771_v57 = vsel %vm718_vm8, 0.0, %v770_v49  ;;  %v774_v59 = vsel %vm718_vm8, %v768_v48, %v749_v47 }
 0x244   : > { %v778_v60 = vperm.slane %v774_v59, %v2578_v6  ;;  %v779_v61 = vrot.slane %v769_v56, 4  ;;  %v789_v62 = vperm.slane %v785_v51, %v2578_v6  ;;  %v791_v63 = vsel %vm718_vm8, %v790_v52, %v771_v57 }
 0x245   : > { %v767_v0 = vsel %vm718_vm8, 0.0, %v766_v55  ;;  %v795_v1 = vperm.slane %v791_v63, %v2578_v6  ;;  %v848_v2 = vsel %vm718_vm8, %v847_v53, %v2573_v58  ;;  %v2628_v3 = vperm.slane %v850_v54, %v2578_v6 }
 0x246   : > { %v780_v4 = vsel %vm718_vm8, %v779_v61, %v767_v0  ;;  %v798_v5 = vrot.slane %v778_v60, 4  ;;  %v810_v7 = vrot.slane %v789_v62, 4  ;;  %v2632_v8 = vperm.slane %v848_v2, %v2578_v6  ;;  %v1039_v9 = vpop.permute.xlu1 %1038 }
 0x247   : > { %v784_v11 = vperm.slane %v780_v4, %v2578_v6  ;;  %v808_v12 = vrot.slane %v795_v1, 4  ;;  %v885_v13 = vrot.slane %v2628_v3, 4  ;;  %v861_v14 = vrot.slane %v2611_v46, 4 }
 0x248   : > { %v811_v58 = vsel %vm718_vm8, %v795_v1, %v810_v7  ;;  %v873_v15 = vrot.slane %v2632_v8, 4  ;;  %v1061_v16 = vsel %vm718_vm8, %v1060_v44, %v1039_v9  ;;  %v1062_v17 = vrot.slane %v1039_v9, 4  ;;  %v845_v18 = vpop.permute.xlu2 %844 }
 0x249   : > { %v796_v20 = vrot.slane %v784_v11, 4  ;;  %v799_v22 = vsel %vm718_vm8, %v784_v11, %v798_v5  ;;  %v809_v23 = vsel %vm718_vm8, %v808_v12, %v789_v62  ;;  %v819_v24 = vperm.slane %v811_v58, %v2588_v21 }
 0x24a   : > { %v807_v25 = vperm.slane %v799_v22, %v2588_v21  ;;  %v815_v26 = vperm.slane %v809_v23, %v2588_v21  ;;  %v1063_v28 = vsel %vm718_vm8, %v2585_v19, %v1062_v17  ;;  %v1067_v30 = vperm.slane %v1061_v16, %v2578_v6 }
 0x24b   : > { %v797_v31 = vsel %vm718_vm8, %v796_v20, %v778_v60  ;;  %v824_v32 = vrot.slane %v819_v24, 4  ;;  %v1071_v33 = vperm.slane %v1063_v28, %v2578_v6  ;;  %v859_v34 = vrot.slane %v845_v18, 4 }
 0x24c   : > { %v803_v35 = vperm.slane %v797_v31, %v2588_v21  ;;  %v820_v36 = vrot.slane %v815_v26, 4  ;;  %v826_v37 = vrot.slane %v807_v25, 4  ;;  %v1072_v38 = vrot.slane %v1067_v30, 4 }
 0x24d   : > { %v825_v39 = vsel %vm718_vm8, %v824_v32, %v807_v25  ;;  %v1075_v40 = vsel %vm718_vm8, %v1067_v30, %v1074_v41  ;;  %v1084_v43 = vrot.slane %v1071_v33, 4  ;;  %v1087_v19 = vsel %vm718_vm8, %v1071_v33, %v1086_v42 }
 0x24e   : > { %v821_v44 = vsel %vm718_vm8, %v820_v36, %v803_v35  ;;  %v822_v45 = vrot.slane %v803_v35, 4  ;;  %v827_v47 = vsel %vm718_vm8, %v819_v24, %v826_v37  ;;  %v830_v48 = vpack.c.bf16 %v825_v39, %v825_v39 }
 0x24f   : > { %v828_v49 = vpack.c.bf16 %v821_v44, %v821_v44  ;;  %v831_v50 = vpack.c.bf16 %v827_v47, %v827_v47  ;;  %v1073_v51 = vsel %vm718_vm8, %v1072_v38, %v2597_v29  ;;  %v1083_v52 = vperm.slane %v1075_v40, %v2588_v21 }
 0x250   : > { %v823_v53 = vsel %vm718_vm8, %v815_v26, %v822_v45  ;;  %835 = vst.msk [vmem:[#allocation2 + $0x8] sm:$0xf] %vm832_vm9, %v830_v48  ;;  %v1079_v41 = vperm.slane %v1073_v51, %v2588_v21  ;;  %v1085_v42 = vsel %vm718_vm8, %v1084_v43, %v2593_v27  ;;  %v1095_v54 = vperm.slane %v1087_v19, %v2588_v21 }
 0x251   : > { %v829_v55 = vpack.c.bf16 %v823_v53, %v823_v53  ;;  %833 = vst.msk [vmem:[#allocation2] sm:$0xf] %vm832_vm9, %v828_v49  ;;  %v1091_v56 = vperm.slane %v1085_v42, %v2588_v21  ;;  %v1098_v57 = vrot.slane %v1083_v52, 4  ;;  %v860_v29 = vsel %vm718_vm8, %v859_v34, %v2611_v46 }
 0x252   : > { %836 = vst.msk [vmem:[#allocation2 + $0xc] sm:$0xf] %vm832_vm9, %v831_v50  ;;  %v1096_v59 = vrot.slane %v1079_v41, 4  ;;  %v1102_v60 = vrot.slane %v1095_v54, 4  ;;  %v862_v61 = vsel %vm718_vm8, %v845_v18, %v861_v14  ;;  %v866_v62 = vperm.slane %v860_v29, %v2578_v6 }
 0x253   : > { %834 = vst.msk [vmem:[#allocation2 + $0x4] sm:$0xf] %vm832_vm9, %v829_v55  ;;  %v1099_v27 = vsel %vm718_vm8, 0.0, %v1098_v57  ;;  %v1100_v63 = vrot.slane %v1091_v56, 4  ;;  %v1104_v0 = vsel %vm718_vm8, %v1098_v57, %v1079_v41  ;;  %v870_v1 = vperm.slane %v862_v61, %v2578_v6 }
 0x254   : > { %v1097_v2 = vsel %vm718_vm8, 0.0, %v1096_v59  ;;  %v1103_v46 = vsel %vm718_vm8, 0.0, %v1102_v60  ;;  %v2679_v4 = vperm.slane %v1104_v0, %v2578_v6  ;;  %v1109_v5 = vrot.slane %v1099_v27, 4 }
 0x255   : > { %v1101_v7 = vsel %vm718_vm8, 0.0, %v1100_v63  ;;  %v1115_v9 = vsel %vm718_vm8, %v1102_v60, %v1091_v56  ;;  %v1120_v11 = vrot.slane %v1103_v46, 4  ;;  %v871_v12 = vrot.slane %v866_v62, 4 }
 0x256   : > { %v1110_v14 = vsel %vm718_vm8, %v1109_v5, %v1097_v2  ;;  %v1119_v58 = vperm.slane %v1115_v9, %v2578_v6  ;;  %v1128_v16 = vrot.slane %v2679_v4, 4  ;;  %v874_v17 = vsel %vm718_vm8, %v866_v62, %v873_v15 }
 0x257   : > { %v1114_v18 = vperm.slane %v1110_v14, %v2578_v6  ;;  %v1121_v20 = vsel %vm718_vm8, %v1120_v11, %v1101_v7  ;;  %v872_v22 = vsel %vm718_vm8, %v871_v12, %v2632_v8  ;;  %v882_v23 = vperm.slane %v874_v17, %v2588_v21  ;;  %v1164_v24 = vld [vmem:[#allocation2 + $0x8] sm:$0xf] }
 0x258   : > { %v878_v25 = vperm.slane %v872_v22, %v2588_v21  ;;  %v883_v26 = vrot.slane %v870_v1, 4  ;;  %v886_v28 = vsel %vm718_vm8, %v870_v1, %v885_v13  ;;  %v1162_v30 = vld [vmem:[#allocation2] sm:$0xf]  ;;  %v1213_v32 = vsel %vm1170_vm10, %v1164_v24, 0 }
 0x259   : > { %v894_v15 = vperm.slane %v886_v28, %v2588_v21  ;;  %v897_v31 = vrot.slane %v882_v23, 4  ;;  %v1175_v33 = vsel %vm1170_vm10, %v1162_v30, 0  ;;  %v1165_v8 = vld [vmem:[#allocation2 + $0xc] sm:$0xf]  ;;  %1222 = vmatpush.bf16.xpose.msrb.mxu1 %v1213_v32  ;;  %v1125_v13 = vperm.slane %v1121_v20, %v2578_v6 }
 0x25a   : > { %v884_v34 = vsel %vm718_vm8, %v883_v26, %v2628_v3  ;;  %v895_v35 = vrot.slane %v878_v25, 4  ;;  %1184 = vmatpush.bf16.xpose.msra.mxu3 %v1175_v33  ;;  %v1232_v36 = vsel %vm1170_vm10, %v1165_v8, 0  ;;  %v1163_v37 = vld [vmem:[#allocation2 + $0x4] sm:$0xf]  ;;  %v1129_v50 = vsel %vm718_vm8, %v1114_v18, %v1128_v16 }
 0x25b   : > { %v890_v38 = vperm.slane %v884_v34, %v2588_v21  ;;  %v898_v39 = vsel %vm718_vm8, 0.0, %v897_v31  ;;  %v901_v40 = vrot.slane %v894_v15, 4  ;;  %v903_v43 = vsel %vm718_vm8, %v897_v31, %v878_v25  ;;  %1241 = vmatpush.bf16.xpose.msrb.mxu2 %v1232_v36 }
 0x25c   : > { %v896_v19 = vsel %vm718_vm8, 0.0, %v895_v35  ;;  %v907_v3 = vperm.slane %v903_v43, %v2578_v6  ;;  %v908_v44 = vrot.slane %v898_v39, 4  ;;  %v1194_v45 = vsel %vm1170_vm10, %v1163_v37, 0 }
 0x25d   : > { %v899_v47 = vrot.slane %v890_v38, 4  ;;  %v902_v48 = vsel %vm718_vm8, 0.0, %v901_v40  ;;  %v914_v49 = vsel %vm718_vm8, %v901_v40, %v890_v38  ;;  %1203 = vmatpush.bf16.xpose.msrb.mxu0 %v1194_v45  ;;  %v1137_v55 = vperm.slane %v1129_v50, %v2588_v21 }
 0x25e   : > { %v909_v51 = vsel %vm718_vm8, %v908_v44, %v896_v19  ;;  %v918_v52 = vperm.slane %v914_v49, %v2578_v6  ;;  %v919_v53 = vrot.slane %v902_v48, 4  ;;  %v927_v41 = vrot.slane %v907_v3, 4 }
 0x25f   : > { %v900_v42 = vsel %vm718_vm8, 0.0, %v899_v47  ;;  %v913_v54 = vperm.slane %v909_v51, %v2578_v6  ;;  %v1140_v56 = vrot.slane %v1119_v58, 4  ;;  %v1126_v59 = vrot.slane %v1114_v18, 4 }
 0x260   : > { %v920_v57 = vsel %vm718_vm8, %v919_v53, %v900_v42  ;;  %v939_v29 = vrot.slane %v918_v52, 4  ;;  %v1138_v60 = vrot.slane %v1125_v13, 4  ;;  %v1156_v22 = vrot.slane %v1137_v55, 4 }
 0x261   : > { %v924_v61 = vperm.slane %v920_v57, %v2578_v6  ;;  %v925_v62 = vrot.slane %v913_v54, 4  ;;  %v928_v27 = vsel %vm718_vm8, %v913_v54, %v927_v41  ;;  %v1141_v63 = vsel %vm718_vm8, %v1125_v13, %v1140_v56 }
 0x262   : > { %v936_v0 = vperm.slane %v928_v27, %v2588_v21  ;;  %v1149_v1 = vperm.slane %v1141_v63, %v2588_v21  ;;  %v1127_v2 = vsel %vm718_vm8, %v1126_v59, %v2679_v4  ;;  %v1139_v46 = vsel %vm718_vm8, %v1138_v60, %v1119_v58 }
 0x263   : > { %v926_v5 = vsel %vm718_vm8, %v925_v62, %v907_v3  ;;  %v937_v7 = vrot.slane %v924_v61, 4  ;;  %v940_v9 = vsel %vm718_vm8, %v924_v61, %v939_v29  ;;  %v1133_v11 = vperm.slane %v1127_v2, %v2588_v21 }
 0x264   : > { %v932_v12 = vperm.slane %v926_v5, %v2588_v21  ;;  %v948_v14 = vperm.slane %v940_v9, %v2588_v21  ;;  %v955_v16 = vrot.slane %v936_v0, 4  ;;  %v1154_v17 = vrot.slane %v1149_v1, 4 }
 0x265   : > { %v938_v18 = vsel %vm718_vm8, %v937_v7, %v918_v52  ;;  %v1145_v20 = vperm.slane %v1139_v46, %v2588_v21  ;;  %v1152_v4 = vrot.slane %v1133_v11, 4  ;;  %v1157_v15 = vsel %vm718_vm8, %v1149_v1, %v1156_v22 }
 0x266   : > { %v944_v58 = vperm.slane %v938_v18, %v2588_v21  ;;  %v951_v23 = vrot.slane %v932_v12, 4  ;;  %v953_v24 = vrot.slane %v948_v14, 4  ;;  %v956_v25 = vsel %vm718_vm8, %v948_v14, %v955_v16 }
 0x267   : > { %v960_v26 = vpack.c.bf16 %v956_v25, %v956_v25  ;;  %v1155_v28 = vsel %vm718_vm8, %v1154_v17, %v1137_v55  ;;  %v1150_v30 = vrot.slane %v1145_v20, 4  ;;  %v1161_v37 = vpack.c.bf16 %v1157_v15, %v1157_v15 }
 0x268   : > { %v949_v31 = vrot.slane %v944_v58, 4  ;;  %v952_v32 = vsel %vm718_vm8, %v944_v58, %v951_v23  ;;  %v954_v33 = vsel %vm718_vm8, %v953_v24, %v936_v0  ;;  %v1160_v8 = vpack.c.bf16 %v1155_v28, %v1155_v28 }
 0x269   : > { %v958_v34 = vpack.c.bf16 %v952_v32, %v952_v32  ;;  %v959_v35 = vpack.c.bf16 %v954_v33, %v954_v33  ;;  %964 = vst.msk [vmem:[#allocation3 + $0xc] sm:$0xf] %vm832_vm9, %v960_v26  ;;  %v1151_v36 = vsel %vm718_vm8, %v1150_v30, %v1133_v11  ;;  %v1153_v39 = vsel %vm718_vm8, %v1145_v20, %v1152_v4 }
 0x26a   : > { %v950_v13 = vsel %vm718_vm8, %v949_v31, %v932_v12  ;;  %1916 = vmatmul.msk.bf16.vlgmr.msrb.gmra.mxu1 %vm1170_vm10, %v1160_v8  ;;  %v1158_v38 = vpack.c.bf16 %v1151_v36, %v1151_v36  ;;  %1917 = vmatmul.msk.bf16.vlgmr.msrb.gmra.mxu2 %vm1170_vm10, %v1161_v37  ;;  %v1159_v43 = vpack.c.bf16 %v1153_v39, %v1153_v39 }
 0x26b   : > { %v957_v40 = vpack.c.bf16 %v950_v13, %v950_v13  ;;  %962 = vst.msk [vmem:[#allocation3 + $0x4] sm:$0xf] %vm832_vm9, %v958_v34 }
 0x26c   : > { %963 = vst.msk [vmem:[#allocation3 + $0x8] sm:$0xf] %vm832_vm9, %v959_v35  ;;  %1914 = vmatmul.msk.bf16.vlgmr.msra.gmra.mxu3 %vm1170_vm10, %v1158_v38  ;;  %1915 = vmatmul.msk.bf16.vlgmr.msrb.gmra.mxu0 %vm1170_vm10, %v1159_v43 }
 0x26d   : > { %961 = vst.msk [vmem:[#allocation3] sm:$0xf] %vm832_vm9, %v957_v40 }
 0x270   : > { %v1169_v19 = vld [vmem:[#allocation3 + $0xc] sm:$0xf] }
 0x271   : > { %v1369_v3 = vsel %vm1310_vm11, %v1169_v19, 0 }
 0x272   : > { %1378 = vmatpush.bf16.msra.mxu2 %v1369_v3  ;;  %v1167_v44 = vld [vmem:[#allocation3 + $0x4] sm:$0xf] }
 0x273   : > { %v1168_v45 = vld [vmem:[#allocation3 + $0x8] sm:$0xf]  ;;  %v1331_v47 = vsel %vm1310_vm11, %v1167_v44, 0 }
 0x274   : > { %v1350_v48 = vsel %vm1310_vm11, %v1168_v45, 0  ;;  %v1166_v49 = vld [vmem:[#allocation3] sm:$0xf]  ;;  %1340 = vmatpush.bf16.msra.mxu0 %v1331_v47 }
 0x275   : > { %1359 = vmatpush.bf16.msra.mxu1 %v1350_v48  ;;  %v1312_v50 = vsel %vm1310_vm11, %v1166_v49, 0 }
 0x276   : > { %1321 = vmatpush.bf16.msrb.mxu3 %v1312_v50 }
 0x2e7   : > { %v1224_v51 = vpop.f32.mrf.mxu1 }
 0x2e8   : > { %v1253_v52 = vsel %vm1170_vm10, %v1224_v51, -inf }
 0x2e9   : > { %1254 = vmax.xlane.f32.xlu2 %v1253_v52  ;;  %v1205_v53 = vpop.f32.mrf.mxu0 }
 0x2ea   : > { %v1250_v60 = vsel %vm1170_vm10, %v1205_v53, -inf }
 0x2ed   : > { %v1243_v41 = vpop.f32.mrf.mxu2 }
 0x2ee   : > { %v1256_v55 = vsel %vm1170_vm10, %v1243_v41, -inf }
 0x2ef   : > { %v1186_v42 = vpop.f32.mrf.mxu3  ;;  %v1226_v54 = vpop.f32.mrf.mxu1  ;;  %1257 = vmax.xlane.f32.xlu0 %v1256_v55 }
 0x2f0   : > { %v1247_v56 = vsel %vm1170_vm10, %v1186_v42, -inf }
 0x2f1   : > { %1248 = vmax.xlane.f32.xlu1 %v1247_v56  ;;  %v1207_v57 = vpop.f32.mrf.mxu0 }
 0x2f5   : > { %v1245_v29 = vpop.f32.mrf.mxu2 }
 0x2f7   : > { %v1188_v59 = vpop.f32.mrf.mxu3 }
 0x2f9   : > { %1251 = vmax.xlane.f32.xlu1 %v1250_v60 }
 0x35c   : > { %v1255_v61 = vpop.xlane.xlu2 %1254 }
 0x35d   : > { %v1273_v62 = vsub.f32 %v1224_v51, %v1255_v61  ;;  %v1261_v26 = vsub.f32 -inf, %v1255_v61 }
 0x35f   : > { %v1279_v27 = vmul.f32 1.442695, %v1273_v62  ;;  %v1267_v30 = vmul.f32 1.442695, %v1261_v26 }
 0x361   : > { %2096 = vpow2.f32 %v1279_v27 }
 0x362   : > { %v1258_v63 = vpop.xlane.xlu0 %1257 }
 0x363   : > { %v1274_v0 = vsub.f32 %v1243_v41, %v1258_v63  ;;  %v1262_v28 = vsub.f32 -inf, %v1258_v63 }
 0x364   : > { %v1249_v1 = vpop.xlane.xlu1 %1248 }
 0x365   : > { %v1271_v2 = vsub.f32 %v1186_v42, %v1249_v1  ;;  %v1281_v46 = vmul.f32 1.442695, %v1274_v0  ;;  %v1259_v15 = vsub.f32 -inf, %v1249_v1  ;;  %v1269_v32 = vmul.f32 1.442695, %v1262_v28 }
 0x367   : > { %v1275_v5 = vmul.f32 1.442695, %v1271_v2  ;;  %v2097_v7 = vpop.eup %2096  ;;  %2098 = vpow2.f32 %v1281_v46  ;;  %v1263_v33 = vmul.f32 1.442695, %v1259_v15 }
 0x368   : > { %v1305_v9 = vpack.c.bf16 %v2097_v7, %v2097_v7  ;;  %v1293_v11 = vsel %vm1170_vm10, %v2097_v7, 0.0 }
 0x369   : > { %1294 = vadd.xlane.f32.xlu0 %v1293_v11  ;;  %2100 = vpow2.f32 %v1275_v5 }
 0x36a   : > { %1920 = vmatmul.msk.bf16.vlgmr.msra.gmra.mxu1 %vm1170_vm10, %v1305_v9 }
 0x36c   : > { %v1252_v12 = vpop.xlane.xlu1 %1251 }
 0x36d   : > { %v1272_v14 = vsub.f32 %v1205_v53, %v1252_v12  ;;  %v2099_v16 = vpop.eup %2098  ;;  %v1260_v31 = vsub.f32 -inf, %v1252_v12 }
 0x36e   : > { %v1306_v18 = vpack.c.bf16 %v2099_v16, %v2099_v16  ;;  %v1296_v20 = vsel %vm1170_vm10, %v2099_v16, 0.0 }
 0x36f   : > { %v1277_v17 = vmul.f32 1.442695, %v1272_v14  ;;  %v2101_v4 = vpop.eup %2100  ;;  %1297 = vadd.xlane.f32.xlu1 %v1296_v20  ;;  %v1265_v8 = vmul.f32 1.442695, %v1260_v31 }
 0x370   : > { %v1287_v22 = vsel %vm1170_vm10, %v2101_v4, 0.0  ;;  %v1303_v58 = vpack.c.bf16 %v2101_v4, %v2101_v4  ;;  %1921 = vmatmul.msk.bf16.vlgmr.msra.gmra.mxu2 %vm1170_vm10, %v1306_v18 }
 0x371   : > { %2102 = vpow2.f32 %v1277_v17  ;;  %1288 = vadd.xlane.f32.xlu2 %v1287_v22 }
 0x372   : > { %1918 = vmatmul.msk.bf16.vlgmr.msrb.gmra.mxu3 %vm1170_vm10, %v1303_v58  ;;  %2104 = vpow2.f32 %v1267_v30 }
 0x373   : > { %2106 = vpow2.f32 %v1269_v32 }
 0x374   : > { %2108 = vpow2.f32 %v1263_v33 }
 0x375   : > { %2110 = vpow2.f32 %v1265_v8 }
 0x377   : > { %v2103_v23 = vpop.eup %2102 }
 0x378   : > { %v1304_v24 = vpack.c.bf16 %v2103_v23, %v2103_v23  ;;  %v1290_v25 = vsel %vm1170_vm10, %v2103_v23, 0.0  ;;  %v2105_v35 = vpop.eup %2104 }
 0x379   : > { %1291 = vadd.xlane.f32.xlu0 %v1290_v25  ;;  %v2107_v36 = vpop.eup %2106  ;;  %v1285_v13 = vmul.f32 0.0, %v2105_v35 }
 0x37a   : > { %1919 = vmatmul.msk.bf16.vlgmr.msra.gmra.mxu0 %vm1170_vm10, %v1304_v24  ;;  %v2109_v38 = vpop.eup %2108  ;;  %v1286_v19 = vmul.f32 0.0, %v2107_v36 }
 0x37b   : > { %v2111_v40 = vpop.eup %2110  ;;  %v1283_v44 = vmul.f32 0.0, %v2109_v38 }
 0x37c   : > { %v1284_v48 = vmul.f32 0.0, %v2111_v40 }
 0x3dc   : > { %v1295_v34 = vpop.xlane.xlu0 %1294 }
 0x3dd   : > { %v1301_v43 = vadd.f32 %v1295_v34, %v1285_v13 }
 0x3df   : > { %2112 = vrcp.f32 %v1301_v43 }
 0x3e2   : > { %v1298_v39 = vpop.xlane.xlu1 %1297 }
 0x3e3   : > { %v1302_v45 = vadd.f32 %v1298_v39, %v1286_v19 }
 0x3e4   : > { %v1289_v3 = vpop.xlane.xlu2 %1288 }
 0x3e5   : > { %v1299_v49 = vadd.f32 %v1289_v3, %v1283_v44  ;;  %2114 = vrcp.f32 %v1302_v45  ;;  %v2113_v53 = vpop.eup %2112 }
 0x3e7   : > { %v1361_v37 = vpop.f32.mrf.mxu1  ;;  %2116 = vrcp.f32 %v1299_v49 }
 0x3e8   : > { %v1386_v52 = vadd.f32 %v1361_v37, %v1285_v13 }
 0x3ea   : > { %v1394_v42 = vmul.f32 %v2113_v53, %v1386_v52 }
 0x3eb   : > { %v2115_v55 = vpop.eup %2114 }
 0x3ec   : > { %v1292_v47 = vpop.xlane.xlu0 %1291  ;;  %v1396_v27 = vrot.slane %v1394_v42, 4 }
 0x3ed   : > { %v1300_v50 = vadd.f32 %v1292_v47, %v1284_v48  ;;  %v2117_v60 = vpop.eup %2116 }
 0x3ef   : > { %v1363_v51 = vpop.f32.mrf.mxu1  ;;  %2118 = vrcp.f32 %v1300_v50 }
 0x3f3   : > { %v1380_v41 = vpop.f32.mrf.mxu2 }
 0x3f4   : > { %v1387_v54 = vadd.f32 %v1380_v41, %v1286_v19 }
 0x3f5   : > { %v1323_v56 = vpop.f32.mrf.mxu3  ;;  %v2119_v62 = vpop.eup %2118 }
 0x3f6   : > { %v1384_v57 = vadd.f32 %v1323_v56, %v1283_v44  ;;  %v1395_v29 = vmul.f32 %v2115_v55, %v1387_v54 }
 0x3f7   : > { %v1342_v59 = vpop.f32.mrf.mxu0 }
 0x3f8   : > { %v1385_v61 = vadd.f32 %v1342_v59, %v1284_v48  ;;  %v1392_v63 = vmul.f32 %v2117_v60, %v1384_v57  ;;  %v1408_v0 = vrot.slane %v1395_v29, 4 }
 0x3fa   : > { %v1393_v1 = vmul.f32 %v2119_v62, %v1385_v61  ;;  %v1397_v2 = vsel %vm718_vm8, %v1396_v27, %v1392_v63  ;;  %v1398_v46 = vrot.slane %v1392_v63, 4 }
 0x3fb   : > { %v1403_v5 = vperm.slane %v1397_v2, %v2578_v6  ;;  %v1382_v11 = vpop.f32.mrf.mxu2 }
 0x3fc   : > { %v1409_v7 = vsel %vm718_vm8, %v1408_v0, %v1393_v1  ;;  %v1410_v9 = vrot.slane %v1393_v1, 4  ;;  %v1399_v12 = vsel %vm718_vm8, %v1394_v42, %v1398_v46  ;;  %v1969_v46 = vld [vmem:[#allocation9 + $0x8] sm:$0xff] }
 0x3fd   : > { %v1415_v14 = vperm.slane %v1409_v7, %v2578_v6  ;;  %v1407_v16 = vperm.slane %v1399_v12, %v2578_v6  ;;  %v1422_v17 = vrot.slane %v1403_v5, 4  ;;  %v1325_v20 = vpop.f32.mrf.mxu3  ;;  %1553 = vmatpush.bf16.msra.mxu3 %v1969_v46 }
 0x3fe   : > { %v1411_v18 = vsel %vm718_vm8, %v1395_v29, %v1410_v9 }
 0x3ff   : > { %v1419_v4 = vperm.slane %v1411_v18, %v2578_v6  ;;  %v1420_v22 = vrot.slane %v1415_v14, 4  ;;  %v1344_v58 = vpop.f32.mrf.mxu0  ;;  %v1434_v23 = vrot.slane %v1407_v16, 4  ;;  %v1423_v24 = vsel %vm718_vm8, %v1415_v14, %v1422_v17  ;;  %v2085_v17 = vld [vmem:[%s2890_s8] ss:$0 sm:$0xff] }
 0x400   : > { %v1431_v26 = vperm.slane %v1423_v24, %v2588_v21 }
 0x401   : > { %v1421_v25 = vsel %vm718_vm8, %v1420_v22, %v1403_v5  ;;  %v1432_v28 = vrot.slane %v1419_v4, 4  ;;  %v1435_v15 = vsel %vm718_vm8, %v1419_v4, %v1434_v23  ;;  %v1968_v5 = vld [vmem:[#allocation9] sm:$0xff] }
 0x402   : > { %v1427_v30 = vperm.slane %v1421_v25, %v2588_v21  ;;  %v1443_v32 = vperm.slane %v1435_v15, %v2588_v21  ;;  %v1446_v33 = vrot.slane %v1431_v26, 4  ;;  %1554 = vmatpush.bf16.msra.mxu3 %v1968_v5  ;;  %v2124_v4 = vld [vmem:[%s2546_s16] sm:$0xff]  ;;  %v1971_v15 = vld [vmem:[#allocation10 + $0x8] sm:$0xff] }
 0x403   : > { %v1433_v31 = vsel %vm718_vm8, %v1432_v28, %v1407_v16  ;;  %1623 = vmatpush.bf16.msrb.mxu0 %v1971_v15 }
 0x404   : > { %v1439_v8 = vperm.slane %v1433_v31, %v2588_v21  ;;  %v1444_v34 = vrot.slane %v1427_v30, 4  ;;  %v1447_v35 = vsel %vm718_vm8, 0.0, %v1446_v33  ;;  %v1450_v36 = vrot.slane %v1443_v32, 4  ;;  %v1970_v31 = vld [vmem:[#allocation10] sm:$0xff] }
 0x405   : > { %v1452_v37 = vsel %vm718_vm8, %v1446_v33, %v1427_v30  ;;  %v1457_v13 = vrot.slane %v1447_v35, 4 }
 0x406   : > { %v1445_v38 = vsel %vm718_vm8, 0.0, %v1444_v34  ;;  %v1448_v39 = vrot.slane %v1439_v8, 4  ;;  %v1456_v40 = vperm.slane %v1452_v37, %v2578_v6  ;;  %v1451_v43 = vsel %vm718_vm8, 0.0, %v1450_v36 }
 0x407   : > { %v1463_v19 = vsel %vm718_vm8, %v1450_v36, %v1439_v8  ;;  %v1458_v44 = vsel %vm718_vm8, %v1457_v13, %v1445_v38  ;;  %v1468_v47 = vrot.slane %v1451_v43, 4  ;;  %1624 = vmatpush.bf16.msrb.mxu0 %v1970_v31 }
 0x408   : > { %v1449_v3 = vsel %vm718_vm8, 0.0, %v1448_v39  ;;  %v1467_v45 = vperm.slane %v1463_v19, %v2578_v6  ;;  %v1462_v48 = vperm.slane %v1458_v44, %v2578_v6  ;;  %v1476_v49 = vrot.slane %v1456_v40, 4  ;;  %v2086_v39 = vld [vmem:[%s2891_s9] ss:$0 sm:$0xff] }
 0x409   : > { %v1469_v50 = vsel %vm718_vm8, %v1468_v47, %v1449_v3 }
 0x40a   : > { %v1488_v51 = vrot.slane %v1467_v45, 4  ;;  %v1473_v52 = vperm.slane %v1469_v50, %v2578_v6  ;;  %v1477_v53 = vsel %vm718_vm8, %v1462_v48, %v1476_v49  ;;  %v1474_v41 = vrot.slane %v1462_v48, 4 }
 0x40b   : > { %v1485_v42 = vperm.slane %v1477_v53, %v2588_v21  ;;  %v1975_v53 = vld [vmem:[%s2929_s26 + $0x18] sm:$0xff] }
 0x40c   : > { %v1489_v54 = vsel %vm718_vm8, %v1473_v52, %v1488_v51  ;;  %v1475_v55 = vsel %vm718_vm8, %v1474_v41, %v1456_v40  ;;  %v1486_v56 = vrot.slane %v1473_v52, 4  ;;  %1719 = vmatpush.bf16.msrb.mxu1 %v1975_v53 }
 0x40d   : > { %v1497_v57 = vperm.slane %v1489_v54, %v2588_v21  ;;  %v1504_v29 = vrot.slane %v1485_v42, 4  ;;  %v1481_v59 = vperm.slane %v1475_v55, %v2588_v21 }
 0x40e   : > { %v1487_v60 = vsel %vm718_vm8, %v1486_v56, %v1467_v45  ;;  %v2088_v45 = vld [vmem:[%s2894_s12] ss:$0 sm:$0xff]  ;;  %v1974_v56 = vld [vmem:[%s2929_s26 + $0x10] sm:$0xff] }
 0x40f   : > { %v1505_v61 = vsel %vm718_vm8, %v1497_v57, %v1504_v29  ;;  %v1502_v6 = vrot.slane %v1497_v57, 4  ;;  %v1493_v62 = vperm.slane %v1487_v60, %v2588_v21  ;;  %v1500_v27 = vrot.slane %v1481_v59, 4 }
 0x410   : > { %1515 = vrot.lane.b32.xlu0 %v1505_v61, %s2349_s13  ;;  %1720 = vmatpush.bf16.msrb.mxu1 %v1974_v56  ;;  %v1973_v61 = vld [vmem:[%s2929_s26 + $0x8] sm:$0xff]  ;;  %s2259_s13 = sshra.s32 %s1747_s6, 4  ;;  %s2260_s13 = int_to_ptr.hbm [resolvable:$true] %s2259_s13 }
 0x411   : > { %v1503_v63 = vsel %vm718_vm8, %v1502_v6, %v1485_v42  ;;  %v1498_v0 = vrot.slane %v1493_v62, 4  ;;  %v1501_v1 = vsel %vm718_vm8, %v1493_v62, %v1500_v27  ;;  %p2266_p5 = scmp.lt.s32.totalorder %s2260_s13, %s2932_s29 }
 0x412   : > { %1511 = vrot.lane.b32.xlu1 %v1503_v63, %s2350_s14  ;;  %1507 = vrot.lane.b32.xlu2 %v1501_v1, %s2351_s15  ;;  %v1972_v63 = vld [vmem:[%s2929_s26] sm:$0xff]  ;;  %s2930_s15 = sld [smem:[#allocation18_spill]]  ;;  %s2261_s14 = scalar_lea.hbm %s2260_s13, 8 }
 0x413   : > { %v1499_v2 = vsel %vm718_vm8, %v1498_v0, %v1481_v59  ;;  %p2262_p1 = scmp.ne.s32.totalorder %s2260_s13, %s2261_s14 }
 0x414   : > { %1721 = vmatpush.bf16.msrb.mxu1 %v1973_v61 }
 0x415   : > { %p2263_p2 = pnand %p2262_p1, %p2472_p4 }
 0x417   : > { %p2264_p3 = pneg %p2263_p2 }
 0x418   : > { %1722 = vmatpush.bf16.msrb.mxu1 %v1972_v63  ;;  %s585_s19 = sand.u32 1, %s2930_s15  }
 0x419   : > { %s1884_s20 = sshll.u32 %s585_s19, 3  ;;  %s1731_s21 = scalar_lea.sflag [#allocation6], %s585_s19 }
 0x41a   : > { %s587_s23 = scalar_lea.vmem [#allocation12], %s1884_s20  ;;  %s2265_s20 = scalar_lea.hbm %s2932_s29, 16 }
 0x41b   : > { %s1744_s30 = sshll.u32 %s587_s23, 4  ;;  %p2267_p6 = scmp.lt.s32.totalorder %s2265_s20, %s2261_s14  ;;  %s1745_s30 = int_to_ptr.vmem [resolvable:$true] %s1744_s30 }
 0x41d   : > { %p2268_p7 = por %p2267_p6, %p2266_p5 }
 0x41f   : > { %p2269_p9 = pnand %p2268_p7, %p2264_p3 }
 0x46c   : > { %v1508_v21 = vpop.permute.xlu2 %1507 }
 0x46d   : > { %v1518_v7 = vsel %vm1170_vm10, %v1499_v2, %v1508_v21 }
 0x482   : > { %v1516_v11 = vpop.permute.xlu0 %1515 }
 0x484   : > { %v1512_v9 = vpop.permute.xlu1 %1511 }
 0x485   : > { %v1520_v12 = vsel %vm1519_vm12, %v1518_v7, %v1512_v9 }
 0x486   : > { %v1522_v14 = vsel %vm1521_vm13, %v1520_v12, %v1516_v11 }
 0x487   : > { %v1523_v16 = vpack.c.bf16 %v1522_v14, %v1522_v14 }
 0x489   : > { %1930 = vmatmul.msk.bf16.vlgmr.msra.gmra.mxu3 %vm607_vm0, %v1523_v16 }
 0x50c   : > { %v1556_v18 = vpop.f32.mrf.mxu3 }
 0x50d   : > { %v1557_v20 = vadd.f32 %v2085_v17, %v1556_v18 }
 0x50f   : > { %v2810_v22 = vadd.f32 %v2124_v4, %v1557_v20 }
 0x511   : > { %v1563_v58 = vsel %vm607_vm0, %v2810_v22, 0.0 }
 0x512   : > { %1564 = vadd.xlane.f32.xlu2 %v1563_v58 }
 0x514   : > { %v1558_v23 = vpop.f32.mrf.mxu3 }
 0x585   : > { %v1565_v24 = vpop.xlane.xlu2 %1564 }
 0x586   : > { %v1566_v25 = vmul.f32 %v1565_v24, %v2550_v10 }
 0x588   : > { %v1567_v26 = vsub.f32 %v2810_v22, %v1566_v25 }
 0x58a   : > { %v1568_v28 = vmul.f32 %v1567_v26, %v1567_v26 }
 0x58c   : > { %v1569_v30 = vsel %vm607_vm0, %v1568_v28, 0.0 }
 0x58d   : > { %1570 = vadd.xlane.f32.xlu0 %v1569_v30 }
 0x600   : > { %v1571_v32 = vpop.xlane.xlu0 %1570 }
 0x601   : > { %v1572_v33 = vmul.f32 %v1571_v32, %v2550_v10  ;;  %v2087_v10 = vld [vmem:[%s2892_s10] ss:$0 sm:$0xff] }
 0x603   : > { %v1573_v8 = vadd.f32 1e-05, %v1572_v33  ;;  %v2089_v33 = vld [vmem:[%s2931_s17] ss:$0 sm:$0xff] }
 0x605   : > { %2120 = vrsqrt.f32 %v1573_v8  ;;  %vm1580_vm15 = vweird.f32 %v1573_v8 }
 0x60b   : > { %v2121_v34 = vpop.eup %2120 }
 0x60c   : > { %v1575_v35 = vmul.f32 %v2121_v34, %v1573_v8  ;;  %vm1581_vm14 = vweird.f32 %v2121_v34 }
 0x60d   : > { %vm1582_vm1 = vmor %vm1580_vm15, %vm1581_vm14 }
 0x60e   : > { %v1576_v36 = vmul.f32 %v2121_v34, %v1575_v35 }
 0x610   : > { %v1577_v37 = vmul.f32 0.5, %v1576_v36 }
 0x612   : > { %v1578_v13 = vsub.f32 1.5, %v1577_v37 }
 0x614   : > { %v1579_v38 = vmul.f32 %v2121_v34, %v1578_v13 }
 0x616   : > { %v1583_v40 = vsel %vm1582_vm1, %v2121_v34, %v1579_v38 }
 0x617   : > { %v1584_v43 = vmul.f32 %v1583_v40, %v1567_v26 }
 0x619   : > { %v1588_v19 = vmul.f32 %v2086_v39, %v1584_v43 }
 0x61b   : > { %v1592_v3 = vadd.f32 %v2087_v10, %v1588_v19 }
 0x61d   : > { %v1593_v44 = vpack.c.bf16 %v1592_v3, %v1592_v3 }
 0x61f   : > { %1939 = vmatmul.msk.bf16.vlgmr.msrb.gmra.mxu0 %vm607_vm0, %v1593_v44 }
 0x69c   : > { %v1626_v47 = vpop.f32.mrf.mxu0 }
 0x69d   : > { %v1627_v48 = vadd.f32 %v2088_v45, %v1626_v47 }
 0x69f   : > { %v1631_v49 = vmul.f32 0.70710677, %v1627_v48  ;;  %v1630_v30 = vmul.f32 0.5, %v1627_v48 }
 0x6a1   : > { %v1632_v50 = vmul.f32 %v1631_v49, %v1631_v49 }
 0x6a3   : > { %v1633_v51 = vmin.f32 %v1632_v50, 16.0 }
 0x6a4   : > { %v1628_v52 = vpop.f32.mrf.mxu0 }
 0x6a5   : > { %v1634_v41 = vmul.f32 2.1237322e-06, %v1633_v51  ;;  %v1645_v42 = vmul.f32 3.8918573e-05, %v1633_v51 }
 0x6a7   : > { %v1635_v54 = vadd.f32 0.00028619796, %v1634_v41  ;;  %v1646_v55 = vadd.f32 0.001143296, %v1645_v42 }
 0x6a9   : > { %v1636_v57 = vmul.f32 %v1635_v54, %v1633_v51  ;;  %v1647_v29 = vmul.f32 %v1646_v55, %v1633_v51 }
 0x6ab   : > { %v1648_v59 = vadd.f32 0.014752088, %v1647_v29  ;;  %v1637_v60 = vadd.f32 0.0036580483, %v1636_v57 }
 0x6ad   : > { %v1649_v6 = vmul.f32 %v1648_v59, %v1633_v51  ;;  %v1638_v27 = vmul.f32 %v1637_v60, %v1633_v51 }
 0x6af   : > { %v1650_v62 = vadd.f32 0.112945676, %v1649_v6  ;;  %v1639_v2 = vadd.f32 0.05243302, %v1638_v27 }
 0x6b1   : > { %v1651_v0 = vmul.f32 %v1650_v62, %v1633_v51  ;;  %v1640_v21 = vmul.f32 %v1639_v2, %v1633_v51 }
 0x6b3   : > { %v1652_v1 = vadd.f32 0.4994258, %v1651_v0  ;;  %v1641_v7 = vadd.f32 0.18741608, %v1640_v21 }
 0x6b5   : > { %v1653_v46 = vmul.f32 %v1652_v1, %v1633_v51  ;;  %v1642_v11 = vmul.f32 %v1641_v7, %v1633_v51 }
 0x6b7   : > { %v1654_v5 = vadd.f32 1.0, %v1653_v46  ;;  %v1643_v17 = vadd.f32 1.1283791, %v1642_v11 }
 0x6b9   : > { %2122 = vrcp.f32 %v1654_v5  ;;  %v1666_v16 = vand.u32 2147483648, %v1654_v5  ;;  %v1664_v20 = vand.u32 2147483647, %v1654_v5  ;;  %vm1660_vm3 = vweird.f32 %v1654_v5 }
 0x6ba   : > { %v1644_v23 = vmul.f32 %v1643_v17, %v1631_v49 }
 0x6bb   : > { %v1667_v58 = vor.u32 1.1754944e-38, %v1666_v16  ;;  %vm1665_vm5 = vcmp.eq.f32.partialorder %v1664_v20, 8.507059e+37 }
 0x6bf   : > { %v2123_v9 = vpop.eup %2122 }
 0x6c0   : > { %v1656_v12 = vmul.f32 %v2123_v9, %v1654_v5  ;;  %vm1661_vm2 = vweird.f32 %v2123_v9 }
 0x6c1   : > { %vm1662_vm4 = vmor %vm1660_vm3, %vm1661_vm2 }
 0x6c2   : > { %v1657_v14 = vsub.f32 1.0, %v1656_v12 }
 0x6c4   : > { %v1658_v18 = vmul.f32 %v2123_v9, %v1657_v14 }
 0x6c6   : > { %v1659_v4 = vadd.f32 %v2123_v9, %v1658_v18 }
 0x6c8   : > { %v1663_v24 = vsel %vm1662_vm4, %v2123_v9, %v1659_v4 }
 0x6c9   : > { %v1668_v25 = vsel %vm1665_vm5, %v1667_v58, %v1663_v24 }
 0x6ca   : > { %v1669_v26 = vmul.f32 %v1668_v25, %v1644_v23 }
 0x6cc   : > { %v1940_v28 = vclamps-f32 %v1669_v26, 1.0 }
 0x6ce   : > { %v1672_v15 = vadd.f32 1.0, %v1940_v28 }
 0x6d0   : > { %v1673_v31 = vmul.f32 %v1672_v15, %v1630_v30 }
 0x6d2   : > { %v1674_v32 = vpack.c.bf16 %v1673_v31, %v1673_v31 }
 0x6d4   : > { %1957 = vmatmul.msk.bf16.vlgmr.msrb.gmra.mxu1 %vm1711_vm6, %v1674_v32 }
 0x751   : > { %v1724_v8 = vpop.f32.mrf.mxu1 }
 0x752   : > { %v1725_v34 = vadd.f32 %v2089_v33, %v1724_v8 }
 0x754   : > { %v1728_v35 = vadd.f32 %v1725_v34, %v2810_v22 }
 0x756   : > { %1729 = vst.msk [vmem:[%s587_s23] sm:$0xff] %vm607_vm0, %v1728_v35 }
 0x757   : > { %2272 = shalt.err (!%p2269_p9)
}
 0x758   : > { %1992 = dma.vmem_to_hbm [thread:$0]  (%p2472_p4), %s1745_s30, 128, %s1747_s6, %s1731_s21  }
 0x759   : > { %v1726_v22 = vpop.f32.mrf.mxu1 }
 0x75a PF: > { %s2934_s19 = sld [smem:[#allocation21_spill]] }
 0x75b   : > { %s2935_s17 = sld [smem:[#allocation17_spill]] }
 0x760   : > { %p2019_p10 = scmp.ge.s32.totalorder %s2934_s19, 2 }
 0x761   : > { %s1758_s25 = sand.u32 1, %s2935_s17  }
 0x762   : > { %p2008_p11 = pnand %p2019_p10, %p2479_p8  ;;  %s1759_s24 = scalar_lea.sflag [#allocation6], %s1758_s25 }
 0x764   : > { %p2009_p12 = pneg %p2008_p11 }
 0x766   : > { %2310 = dma.done.wait (%p2009_p12), %s1759_s24, 128  }
 0x767   : > { %2312 = vsyncadd (%p2009_p12), %s1759_s24, 4294967168  ;;  %s31_s23 = sadd.s32 1, %s2934_s19   ;;  %s2937_s18 = sld [smem:[#allocation18_spill]] }
 0x768   : > { %p28_p13 = scmp.ge.s32.totalorder %s31_s23, 4   ;;  %s2938_s19 = sld [smem:[#allocation19_spill]] }
 0x769   : > { %s2939_s20 = sld [smem:[#allocation25_spill]] }
 0x76a   : > { %s2940_s21 = sld [smem:[#allocation20_spill]]  ;;  %30 = sbr.rel (!%p28_p13) target bundleno = 12 (0xc), region = 139 }
 0x76b   : > { %s2941_s22 = sld [smem:[#allocation22_spill]] }
 0x76f   :  { %1765 = vsyncpa [#allocation5], 1 }
 0x770   :  { %1767 = vsyncpa [#allocation5 + $0x1], 1 }
 0x771   :  { %1768 = vsyncpa [#allocation8], 1 }
 0x772   :  { %1769 = vsyncpa [#allocation11], 1 }
 0x773   :  { %1770 = vsyncpa [#allocation6], 1 }
 0x774   :  { %1772 = vsyncpa [#allocation6 + $0x1], 1 }

// kernel: tpu_custom_call.1
= control target key start
LH: loop header
LB: loop body
LE: loop exit
PB: predicated region body
PF: predicated region fallthrough
CT: control target
= control target key end

     0   :  { %s2882_s0 = inlined_call_operand.vmem [shape: f32[2,8,32], index: 0, kind: input, shape index: {}]   ;;  %s2883_s1 = inlined_call_operand.vmem [shape: f32[2,8,32], index: 1, kind: input, shape index: {}]   ;;  %s2884_s2 = inlined_call_operand.vmem [shape: f32[1,32], index: 2, kind: input, shape index: {}]   ;;  %s2885_s3 = inlined_call_operand.vmem [shape: f32[1,32], index: 3, kind: input, shape index: {}]   ;;  %s2886_s4 = inlined_call_operand.vmem [shape: bf16[32,32], index: 4, kind: input, shape index: {}]   ;;  %s2887_s5 = inlined_call_operand.hbm [shape: bf16[32,32], index: 5, kind: input, shape index: {}]   ;;  %s2888_s6 = inlined_call_operand.hbm [shape: bf16[32,32], index: 6, kind: input, shape index: {}]   ;;  %s2889_s7 = inlined_call_operand.hbm [shape: bf16[32,32], index: 7, kind: input, shape index: {}]   ;;  %s2890_s8 = inlined_call_operand.vmem [shape: f32[1,32], index: 8, kind: input, shape index: {}]   ;;  %s2891_s9 = inlined_call_operand.vmem [shape: f32[1,32], index: 9, kind: input, shape index: {}]   ;;  %s2892_s10 = inlined_call_operand.vmem [shape: f32[1,32], index: 10, kind: input, shape index: {}]   ;;  %s2893_s11 = inlined_call_operand.hbm [shape: bf16[32,64], index: 11, kind: input, shape index: {}]   ;;  %s2894_s12 = inlined_call_operand.vmem [shape: f32[1,64], index: 12, kind: input, shape index: {}]   ;;  %s2895_s13 = inlined_call_operand.vmem [shape: bf16[64,32], index: 13, kind: input, shape index: {}]   ;;  %s2896_s14 = inlined_call_operand.vmem [shape: f32[1,32], index: 14, kind: input, shape index: {}]   ;;  %s2897_s15 = inlined_call_operand.hbm [shape: f32[2,8,32], index: 15, kind: output, shape index: {}]  }
   0x1   :  { %2910 = sst [smem:[#allocation26_spill]] %s2888_s6 }
   0x2   :  { %2911 = sst [smem:[#allocation27_spill]] %s2895_s13 }
   0x3   :  { %2912 = sst [smem:[#allocation28_spill]] %s2896_s14 }
   0x4   :  { %2913 = sst [smem:[#allocation29_spill]] %s2897_s15 }
   0x5   :  { %20 = vsyncpa [#allocation5], 0 }
   0x6   :  { %21 = vsyncpa [#allocation8], 0 }
   0x7   :  { %22 = vsyncpa [#allocation11], 0 }
   0x8   :  { %23 = vsyncpa [#allocation6], 0 }
   0x9   :  { %25 = vsyncpa [#allocation6 + $0x1], 0  ;;  %s2432_s18 = smov 0   ;;  %s2434_s19 = smov 0  }
   0xa   :  { %s2436_s20 = smov 0   ;;  %s2438_s21 = smov 0  }
   0xb   :  { %s2440_s22 = smov 0   ;;  %s2442_s23 = smov 0  }
   0xc LB: > { %2914 = sst [smem:[#allocation17_spill]] %s2315_s18  ;;  %s1871_s24 = sadd.s32 4294967295, %s2335_s23   ;;  %s2335_s23 = sphi %s2442_s23, %s31_s23   ;;  %s2331_s22 = sphi %s2440_s22, %s2941_s22   ;;  %s2327_s21 = sphi %s2438_s21, %s2940_s21   ;;  %s2323_s20 = sphi %s2436_s20, %s2939_s20   ;;  %s2319_s19 = sphi %s2434_s19, %s2938_s19   ;;  %s2315_s18 = sphi %s2432_s18, %s2937_s18  }
   0xd   : > { %2915 = sst [smem:[#allocation18_spill]] %s2319_s19  ;;  %s1872_s25 = sadd.s32 4294967294, %s2335_s23  }
   0xe   : > { %2916 = sst [smem:[#allocation19_spill]] %s2323_s20  ;;  %s43_s26 = sadd.s32 1, %s2331_s22 }
   0xf   : > { %2917 = sst [smem:[#allocation20_spill]] %s2331_s22  ;;  %s379_s27 = sadd.s32 1, %s2323_s20 }
  0x10   : > { %2918 = sst [smem:[#allocation21_spill]] %s2335_s23  ;;  %p45_p0 = scmp.ge.s32.totalorder %s43_s26, 2 }
  0x11   : > { %p389_p1 = scmp.ne.s32.totalorder %s2323_s20, %s2319_s19  ;;  %p390_p2 = scmp.eq.s32.totalorder %s1871_s24, 1 }
  0x12   : > { %p395_p3 = scmp.ne.s32.totalorder %s2319_s19, %s2315_s18  ;;  %s2943_s26 = smov (%p45_p0, %s43_s26), 0 }
  0x13   : > { %2919 = sst [smem:[#allocation22_spill]] %s2943_s26  ;;  %p2472_p4 = por %p390_p2, %p389_p1 }
  0x14   : > { %p396_p5 = scmp.eq.s32.totalorder %s1872_s25, 1  ;;  %s374_s29 = ssub.s32 %s2331_s22, %s2943_s26 }
  0x15   : > { %s2920_s28 = scalar_select %p2472_p4, 1, 0 }
  0x16   : > { %p1873_p6 = scmp.ge.s32.totalorder %s2335_s23, 1  ;;  %p377_p7 = scmp.eq.s32.totalorder %s374_s29, 0 }
  0x17   : > { %2921 = sst [smem:[#allocation23_spill]] %s2920_s28  ;;  %p2479_p8 = por %p396_p5, %p395_p3 }
  0x18   : > { %p403_p9 = scmp.lt.s32.totalorder %s2335_s23, 3  ;;  %p2491_p11 = scmp.eq.s32.totalorder %s1871_s24, 0 }
  0x19   : > { %s2922_s30 = scalar_select %p2479_p8, 1, 0 }
  0x1a   : > { %s2485_s16 = scalar_select %p377_p7, %s2323_s20, %s379_s27  }
  0x1b   : > { %2923 = sst [smem:[#allocation24_spill]] %s2922_s30  ;;  %p2487_p10 = pnand %p1873_p6, %p403_p9 }
  0x1c   : > { %2924 = sst [smem:[#allocation25_spill]] %s2485_s16  ;;  %s2337_s22 = smov [#allocation7]  }
  0x1d   : > { %p1994_p12 = pneg %p2487_p10  ;;  %s2927_s6 = sld [smem:[#allocation26_spill]] }
  0x1e   : > { %s439_s24 = sshll.u32 %s2337_s22, 4  ;;  %s2338_s16 = smov 64   ;;  %s440_s24 = int_to_ptr.vmem [resolvable:$true] %s439_s24 }
  0x1f   : > { %p2502_p13 = pnand %p2491_p11, %p1994_p12  ;;  %s2339_s20 = smov 4  }
  0x20   : > { %s423_s25 = sshll.u32 %s2887_s5, 4  ;;  %s2340_s29 = smov [#allocation4]   ;;  %s424_s25 = int_to_ptr.hbm [resolvable:$true] %s423_s25 }
  0x21   : > { %s451_s14 = sshll.u32 %s2889_s7, 4  ;;  %s2341_s22 = smov [#allocation9]   ;;  %s452_s14 = int_to_ptr.hbm [resolvable:$true] %s451_s14 }
  0x22   : > { %s453_s19 = sshll.u32 %s2341_s22, 4  ;;  %s2342_s23 = smov [#allocation10]   ;;  %s454_s19 = int_to_ptr.vmem [resolvable:$true] %s453_s19 }
  0x23   : > { %s437_s26 = sshll.u32 %s2927_s6, 4  ;;  %s425_s6 = sshll.u32 %s2340_s29, 4  ;;  %s438_s26 = int_to_ptr.hbm [resolvable:$true] %s437_s26  ;;  %s426_s6 = int_to_ptr.vmem [resolvable:$true] %s425_s6 }
  0x24   : > { %2000 = dma.hbm_to_vmem [thread:$0]  (!%p2502_p13), %s438_s26, 256, %s440_s24, [#allocation8], %s2338_s16, %s2338_s16, %s2339_s20  }
  0x25   : > { %1997 = dma.hbm_to_vmem [thread:$0]  (!%p2502_p13), %s424_s25, 256, %s426_s6, [#allocation5], %s2338_s16, %s2338_s16, %s2339_s20  }
  0x26   : > { %s474_s24 = sshll.u32 %s2893_s11, 4  ;;  %s476_s30 = sshll.u32 %s2342_s23, 4  ;;  %s475_s24 = int_to_ptr.hbm [resolvable:$true] %s474_s24  ;;  %s477_s30 = int_to_ptr.vmem [resolvable:$true] %s476_s30 }
  0x27   : > { %2003 = dma.hbm_to_vmem [thread:$0]  (!%p2502_p13), %s452_s14, 256, %s454_s19, [#allocation8], %s2338_s16, %s2338_s16, %s2339_s20  }
  0x28   : > { %2006 = dma.hbm_to_vmem [thread:$0]  (!%p2502_p13), %s475_s24, 256, %s477_s30, [#allocation11], %s2338_s16, %s2338_s16, %s2339_s20  }
  0x29   : > { %518 = sbr.rel (%p2487_p10) target bundleno = 1882 (0x75a), region = 80 }
  0x2e   : > { %2298 = dma.done.wait (%p2491_p11), [#allocation5], 256  }
  0x2f   : > { %2300 = vsyncadd (%p2491_p11), [#allocation5], 4294967040 }
  0x30   : > { %2302 = dma.done.wait (%p2491_p11), [#allocation8], 512  }
  0x31   : > { %2304 = vsyncadd (%p2491_p11), [#allocation8], 4294966784 }
  0x32   : > { %2306 = dma.done.wait (%p2491_p11), [#allocation11], 256  }
  0x33   : > { %2308 = vsyncadd (%p2491_p11), [#allocation11], 4294967040  ;;  %p588_p0 = scmp.lt.s32.totalorder %s2327_s21, 1  ;;  %vm607_vm0 = vcmask 261120   ;;  %v2343_v4 = vmov 32.0   ;;  %v1963_v21 = vld [vmem:[#allocation4 + $0x8] sm:$0xff] }
  0x34   : > { %2090 = vrcp.f32 %v2343_v4  ;;  %v1965_v22 = vld [vmem:[#allocation7 + $0x8] sm:$0xff]  ;;  %671 = vmatpush.bf16.msra.mxu0 %v1963_v21  ;;  %v1962_v23 = vld [vmem:[#allocation4] sm:$0xff]  ;;  %v1964_v24 = vld [vmem:[#allocation7] sm:$0xff]  ;;  %s2344_s23 = smov 104   ;;  %s2345_s30 = smov 120   ;;  %vm718_vm8 = vcmask 1047556  }
  0x35   : > { %s589_s6 = scalar_select %p588_p0, %s2327_s21, 1  ;;  %700 = vmatpush.bf16.msra.mxu1 %v1965_v22  ;;  %v1967_v25 = vld [vmem:[%s2886_s4 + $0x8] sm:$0xff]  ;;  %v1966_v27 = vld [vmem:[%s2886_s4] sm:$0xff]  ;;  %vm832_vm9 = vcmask 60416   ;;  %vm1170_vm10 = vcmask 64512   ;;  %vm1310_vm11 = vcmask 1043456  }
  0x36   : > { %1030 = vmatpush.bf16.msra.mxu2 %v1967_v25  ;;  %v2083_v41 = vld [vmem:[%s2884_s2] ss:$0 sm:$0xff]  ;;  %s2350_s14 = smov 16   ;;  %s2351_s15 = smov 8   ;;  %vm1519_vm12 = vcmask 130048   ;;  %vm1521_vm13 = vcmask 195584  }
  0x37   : > { %s1885_s13 = sshll.u32 %s589_s6, 3  ;;  %v2084_v45 = vld [vmem:[%s2885_s3] ss:$0 sm:$0xff]  ;;  %s2346_s6 = smov 112  }
  0x38   : > { %s598_s19 = scalar_lea.vmem %s2883_s1, %s1885_s13  ;;  %s2546_s16 = scalar_lea.vmem %s2882_s0, %s1885_s13  ;;  %672 = vmatpush.bf16.msra.mxu0 %v1962_v23 }
  0x39   : > { %v606_v0 = vld [vmem:[%s598_s19] sm:$0xff]  ;;  %701 = vmatpush.bf16.msra.mxu1 %v1964_v24  ;;  %s2349_s13 = smov 24   ;;  %s2929_s26 = sld [smem:[#allocation27_spill]] }
  0x3a   : > { %v608_v1 = vsel %vm607_vm0, %v606_v0, 0.0  ;;  %v965_v2 = vld [vmem:[%s2546_s16] sm:$0xff]  ;;  %v2091_v5 = vpop.eup %2090  ;;  %1031 = vmatpush.bf16.msra.mxu2 %v1966_v27  ;;  %s1959_s28 = sshll.u32 %s2327_s21, 3  ;;  %s2931_s17 = sld [smem:[#allocation28_spill]] }
  0x3b   : > { %609 = vadd.xlane.f32.xlu0 %v608_v1  ;;  %v967_v3 = vsel %vm607_vm0, %v965_v2, 0.0  ;;  %v612_v6 = vmul.f32 32.0, %v2091_v5  ;;  %vm616_vm1 = vweird.f32 %v2091_v5  ;;  %v2347_v1 = vmov 1983009808   ;;  %s2932_s29 = sld [smem:[#allocation29_spill]] }
  0x3d   : > { %v613_v7 = vsub.f32 1.0, %v612_v6 }
  0x3f   : > { %v614_v8 = vmul.f32 %v2091_v5, %v613_v7 }
  0x41   : > { %v615_v9 = vadd.f32 %v2091_v5, %v614_v8  ;;  %s1742_s24 = scalar_lea.hbm %s2932_s29, %s1959_s28 }
  0x43   : > { %968 = vadd.xlane.f32.xlu0 %v967_v3  ;;  %v2550_v10 = vsel %vm616_vm1, %v2091_v5, %v615_v9 }
  0xae   : > { %v610_v11 = vpop.xlane.xlu0 %609 }
  0xaf   : > { %v618_v12 = vmul.f32 %v2550_v10, %v610_v11  ;;  %v2348_v11 = vmov 1934713408  }
  0xb1   : > { %v619_v13 = vsub.f32 %v606_v0, %v618_v12  ;;  %v747_v12 = vunpack.c.l.s4 %v2348_v11 }
  0xb3   : > { %v620_v14 = vmul.f32 %v619_v13, %v619_v13  ;;  %v2588_v21 = vunpack.c.0.s8 %v747_v12 }
  0xb5   : > { %v621_v15 = vsel %vm607_vm0, %v620_v14, 0.0 }
  0xb6   : > { %622 = vadd.xlane.f32.xlu1 %v621_v15  ;;  %v969_v16 = vpop.xlane.xlu0 %968 }
  0xb7   : > { %v977_v17 = vmul.f32 %v969_v16, %v2550_v10 }
  0xb9   : > { %v978_v18 = vsub.f32 %v965_v2, %v977_v17  ;;  %v723_v2 = vunpack.c.l.s4 %v2347_v1 }
  0xbb   : > { %v979_v19 = vmul.f32 %v978_v18, %v978_v18  ;;  %v2578_v6 = vunpack.c.0.s8 %v723_v2 }
  0xbd   : > { %v980_v20 = vsel %vm607_vm0, %v979_v19, 0.0 }
  0xbe   : > { %981 = vadd.xlane.f32.xlu1 %v980_v20 }
 0x129   : > { %v623_v26 = vpop.xlane.xlu1 %622 }
 0x12a   : > { %v624_v28 = vmul.f32 %v623_v26, %v2550_v10 }
 0x12c   : > { %v625_v29 = vadd.f32 1e-05, %v624_v28 }
 0x12e   : > { %2092 = vrsqrt.f32 %v625_v29  ;;  %vm632_vm3 = vweird.f32 %v625_v29 }
 0x131   : > { %v982_v30 = vpop.xlane.xlu1 %981 }
 0x132   : > { %v983_v31 = vmul.f32 %v982_v30, %v2550_v10 }
 0x134   : > { %v2093_v32 = vpop.eup %2092  ;;  %v984_v33 = vadd.f32 1e-05, %v983_v31 }
 0x135   : > { %v627_v34 = vmul.f32 %v2093_v32, %v625_v29  ;;  %vm633_vm2 = vweird.f32 %v2093_v32 }
 0x136   : > { %2094 = vrsqrt.f32 %v984_v33  ;;  %vm634_vm4 = vmor %vm632_vm3, %vm633_vm2  ;;  %vm991_vm6 = vweird.f32 %v984_v33 }
 0x137   : > { %v628_v35 = vmul.f32 %v2093_v32, %v627_v34 }
 0x139   : > { %v629_v36 = vmul.f32 0.5, %v628_v35 }
 0x13b   : > { %v630_v37 = vsub.f32 1.5, %v629_v36 }
 0x13c   : > { %v2095_v38 = vpop.eup %2094 }
 0x13d   : > { %v631_v39 = vmul.f32 %v2093_v32, %v630_v37  ;;  %v986_v40 = vmul.f32 %v2095_v38, %v984_v33  ;;  %vm992_vm5 = vweird.f32 %v2095_v38 }
 0x13e   : > { %vm993_vm7 = vmor %vm991_vm6, %vm992_vm5  ;;  %vm1711_vm6 = vcmask 523264  }
 0x13f   : > { %v635_v42 = vsel %vm634_vm4, %v2093_v32, %v631_v39  ;;  %v987_v43 = vmul.f32 %v2095_v38, %v986_v40 }
 0x140   : > { %v636_v44 = vmul.f32 %v635_v42, %v619_v13 }
 0x141   : > { %v988_v46 = vmul.f32 0.5, %v987_v43 }
 0x142   : > { %v640_v47 = vmul.f32 %v2083_v41, %v636_v44 }
 0x143   : > { %v989_v48 = vsub.f32 1.5, %v988_v46 }
 0x144   : > { %v644_v49 = vadd.f32 %v2084_v45, %v640_v47 }
 0x145   : > { %v990_v50 = vmul.f32 %v2095_v38, %v989_v48 }
 0x146   : > { %v645_v51 = vpack.c.bf16 %v644_v49, %v644_v49 }
 0x147   : > { %v994_v52 = vsel %vm993_vm7, %v2095_v38, %v990_v50 }
 0x148   : > { %1895 = vmatmul.msk.bf16.vlgmr.msra.gmra.mxu0 %vm607_vm0, %v645_v51  ;;  %1904 = vmatmul.msk.bf16.vlgmr.msra.gmra.mxu1 %vm607_vm0, %v645_v51  ;;  %v995_v53 = vmul.f32 %v994_v52, %v978_v18 }
 0x14a   : > { %v999_v54 = vmul.f32 %v2083_v41, %v995_v53 }
 0x14c   : > { %v1003_v55 = vadd.f32 %v2084_v45, %v999_v54 }
 0x14e   : > { %v1004_v56 = vpack.c.bf16 %v1003_v55, %v1003_v55 }
 0x150   : > { %1913 = vmatmul.msk.bf16.vlgmr.msra.gmra.mxu2 %vm607_vm0, %v1004_v56 }
 0x1c5   : > { %v674_v57 = vpop.f32.mrf.mxu0  ;;  %v2573_v58 = vpop.f32.mrf.mxu1 }
 0x1c6   : > { %714 = vrot.lane.b32.xlu0 %v674_v57, %s2344_s23  ;;  %708 = vrot.lane.b32.xlu2 %v674_v57, %s2345_s30  ;;  %v720_v5 = vrot.slane %v674_v57, 4  ;;  %v849_v40 = vrot.slane %v2573_v58, 4 }
 0x1cd   : > { %v676_v59 = vpop.f32.mrf.mxu0  ;;  %v705_v60 = vpop.f32.mrf.mxu1 }
 0x1ce   : > { %841 = vrot.lane.b32.xlu0 %v2573_v58, %s2346_s6  ;;  %711 = vrot.lane.b32.xlu2 %v674_v57, %s2346_s6 }
 0x1d3   : > { %v1033_v61 = vpop.f32.mrf.mxu2 }
 0x1d4   : > { %1038 = vrot.lane.b32.xlu1 %v1033_v61, %s2345_s30  ;;  %v1050_v14 = vrot.slane %v1033_v61, 4 }
 0x1d6   : > { %1041 = vrot.lane.b32.xlu2 %v1033_v61, %s2346_s6  ;;  %s1746_s6 = sshll.u32 %s1742_s24, 4  ;;  %s1747_s6 = int_to_ptr.hbm [resolvable:$true] %s1746_s6 }
 0x1db   : > { %v1035_v62 = vpop.f32.mrf.mxu2 }
 0x1de   : > { %1044 = vrot.lane.b32.xlu2 %v1033_v61, %s2344_s23 }
 0x1e6   : > { %838 = vrot.lane.b32.xlu2 %v2573_v58, %s2345_s30 }
 0x1ee   : > { %844 = vrot.lane.b32.xlu2 %v2573_v58, %s2344_s23 }
 0x220   : > { %v709_v63 = vpop.permute.xlu2 %708 }
 0x221   : > { %v732_v15 = vrot.slane %v709_v63, 4 }
 0x228   : > { %v712_v0 = vpop.permute.xlu2 %711 }
 0x229   : > { %v717_v3 = vrot.slane %v712_v0, 4  ;;  %v721_v7 = vsel %vm718_vm8, %v712_v0, %v720_v5 }
 0x22a   : > { %v729_v13 = vperm.slane %v721_v7, %v2578_v6 }
 0x22b   : > { %v719_v8 = vsel %vm718_vm8, %v717_v3, %v674_v57 }
 0x22c   : > { %v725_v16 = vperm.slane %v719_v8, %v2578_v6  ;;  %v756_v24 = vrot.slane %v729_v13, 4 }
 0x22e   : > { %v744_v26 = vrot.slane %v725_v16, 4 }
 0x230   : > { %v1042_v4 = vpop.permute.xlu2 %1041 }
 0x231   : > { %v1047_v9 = vrot.slane %v1042_v4, 4  ;;  %v1051_v17 = vsel %vm718_vm8, %v1042_v4, %v1050_v14 }
 0x232   : > { %v2593_v27 = vperm.slane %v1051_v17, %v2578_v6 }
 0x233   : > { %v1049_v20 = vsel %vm718_vm8, %v1047_v9, %v1033_v61 }
 0x234   : > { %v2597_v29 = vperm.slane %v1049_v20, %v2578_v6  ;;  %v1086_v42 = vrot.slane %v2593_v27, 4 }
 0x236   : > { %v1074_v41 = vrot.slane %v2597_v29, 4 }
 0x238   : > { %v715_v18 = vpop.permute.xlu0 %714  ;;  %v2585_v19 = vpop.permute.xlu2 %1044 }
 0x239   : > { %v730_v22 = vrot.slane %v715_v18, 4  ;;  %v733_v23 = vsel %vm718_vm8, %v715_v18, %v732_v15  ;;  %v1060_v44 = vrot.slane %v2585_v19, 4 }
 0x23a   : > { %v741_v25 = vperm.slane %v733_v23, %v2578_v6 }
 0x23b   : > { %v731_v28 = vsel %vm718_vm8, %v730_v22, %v709_v63 }
 0x23c   : > { %v737_v30 = vperm.slane %v731_v28, %v2578_v6  ;;  %v754_v31 = vrot.slane %v741_v25, 4  ;;  %v757_v32 = vsel %vm718_vm8, %v741_v25, %v756_v24 }
 0x23d   : > { %v765_v33 = vperm.slane %v757_v32, %v2588_v21 }
 0x23e   : > { %v742_v34 = vrot.slane %v737_v30, 4  ;;  %v745_v35 = vsel %vm718_vm8, %v737_v30, %v744_v26  ;;  %v755_v36 = vsel %vm718_vm8, %v754_v31, %v729_v13 }
 0x23f   : > { %v753_v37 = vperm.slane %v745_v35, %v2588_v21  ;;  %v761_v38 = vperm.slane %v755_v36, %v2588_v21  ;;  %v772_v39 = vrot.slane %v765_v33, 4 }
 0x240   : > { %v743_v43 = vsel %vm718_vm8, %v742_v34, %v725_v16  ;;  %v842_v45 = vpop.permute.xlu0 %841  ;;  %v2611_v46 = vpop.permute.xlu2 %838 }
 0x241   : > { %v749_v47 = vperm.slane %v743_v43, %v2588_v21  ;;  %v768_v48 = vrot.slane %v753_v37, 4  ;;  %v770_v49 = vrot.slane %v761_v38, 4  ;;  %v773_v50 = vsel %vm718_vm8, 0.0, %v772_v39 }
 0x242   : > { %v785_v51 = vsel %vm718_vm8, %v772_v39, %v761_v38  ;;  %v790_v52 = vrot.slane %v773_v50, 4  ;;  %v847_v53 = vrot.slane %v842_v45, 4  ;;  %v850_v54 = vsel %vm718_vm8, %v842_v45, %v849_v40 }
 0x243   : > { %v766_v55 = vrot.slane %v749_v47, 4  ;;  %v769_v56 = vsel %vm718_vm8, 0.0, %v768_v48  ;;  %v771_v57 = vsel %vm718_vm8, 0.0, %v770_v49  ;;  %v774_v59 = vsel %vm718_vm8, %v768_v48, %v749_v47 }
 0x244   : > { %v778_v60 = vperm.slane %v774_v59, %v2578_v6  ;;  %v779_v61 = vrot.slane %v769_v56, 4  ;;  %v789_v62 = vperm.slane %v785_v51, %v2578_v6  ;;  %v791_v63 = vsel %vm718_vm8, %v790_v52, %v771_v57 }
 0x245   : > { %v767_v0 = vsel %vm718_vm8, 0.0, %v766_v55  ;;  %v795_v1 = vperm.slane %v791_v63, %v2578_v6  ;;  %v848_v2 = vsel %vm718_vm8, %v847_v53, %v2573_v58  ;;  %v2628_v3 = vperm.slane %v850_v54, %v2578_v6 }
 0x246   : > { %v780_v4 = vsel %vm718_vm8, %v779_v61, %v767_v0  ;;  %v798_v5 = vrot.slane %v778_v60, 4  ;;  %v810_v7 = vrot.slane %v789_v62, 4  ;;  %v2632_v8 = vperm.slane %v848_v2, %v2578_v6  ;;  %v1039_v9 = vpop.permute.xlu1 %1038 }
 0x247   : > { %v784_v11 = vperm.slane %v780_v4, %v2578_v6  ;;  %v808_v12 = vrot.slane %v795_v1, 4  ;;  %v885_v13 = vrot.slane %v2628_v3, 4  ;;  %v861_v14 = vrot.slane %v2611_v46, 4 }
 0x248   : > { %v811_v58 = vsel %vm718_vm8, %v795_v1, %v810_v7  ;;  %v873_v15 = vrot.slane %v2632_v8, 4  ;;  %v1061_v16 = vsel %vm718_vm8, %v1060_v44, %v1039_v9  ;;  %v1062_v17 = vrot.slane %v1039_v9, 4  ;;  %v845_v18 = vpop.permute.xlu2 %844 }
 0x249   : > { %v796_v20 = vrot.slane %v784_v11, 4  ;;  %v799_v22 = vsel %vm718_vm8, %v784_v11, %v798_v5  ;;  %v809_v23 = vsel %vm718_vm8, %v808_v12, %v789_v62  ;;  %v819_v24 = vperm.slane %v811_v58, %v2588_v21 }
 0x24a   : > { %v807_v25 = vperm.slane %v799_v22, %v2588_v21  ;;  %v815_v26 = vperm.slane %v809_v23, %v2588_v21  ;;  %v1063_v28 = vsel %vm718_vm8, %v2585_v19, %v1062_v17  ;;  %v1067_v30 = vperm.slane %v1061_v16, %v2578_v6 }
 0x24b   : > { %v797_v31 = vsel %vm718_vm8, %v796_v20, %v778_v60  ;;  %v824_v32 = vrot.slane %v819_v24, 4  ;;  %v1071_v33 = vperm.slane %v1063_v28, %v2578_v6  ;;  %v859_v34 = vrot.slane %v845_v18, 4 }
 0x24c   : > { %v803_v35 = vperm.slane %v797_v31, %v2588_v21  ;;  %v820_v36 = vrot.slane %v815_v26, 4  ;;  %v826_v37 = vrot.slane %v807_v25, 4  ;;  %v1072_v38 = vrot.slane %v1067_v30, 4 }
 0x24d   : > { %v825_v39 = vsel %vm718_vm8, %v824_v32, %v807_v25  ;;  %v1075_v40 = vsel %vm718_vm8, %v1067_v30, %v1074_v41  ;;  %v1084_v43 = vrot.slane %v1071_v33, 4  ;;  %v1087_v19 = vsel %vm718_vm8, %v1071_v33, %v1086_v42 }
 0x24e   : > { %v821_v44 = vsel %vm718_vm8, %v820_v36, %v803_v35  ;;  %v822_v45 = vrot.slane %v803_v35, 4  ;;  %v827_v47 = vsel %vm718_vm8, %v819_v24, %v826_v37  ;;  %v830_v48 = vpack.c.bf16 %v825_v39, %v825_v39 }
 0x24f   : > { %v828_v49 = vpack.c.bf16 %v821_v44, %v821_v44  ;;  %v831_v50 = vpack.c.bf16 %v827_v47, %v827_v47  ;;  %v1073_v51 = vsel %vm718_vm8, %v1072_v38, %v2597_v29  ;;  %v1083_v52 = vperm.slane %v1075_v40, %v2588_v21 }
 0x250   : > { %v823_v53 = vsel %vm718_vm8, %v815_v26, %v822_v45  ;;  %835 = vst.msk [vmem:[#allocation2 + $0x8] sm:$0xf] %vm832_vm9, %v830_v48  ;;  %v1079_v41 = vperm.slane %v1073_v51, %v2588_v21  ;;  %v1085_v42 = vsel %vm718_vm8, %v1084_v43, %v2593_v27  ;;  %v1095_v54 = vperm.slane %v1087_v19, %v2588_v21 }
 0x251   : > { %v829_v55 = vpack.c.bf16 %v823_v53, %v823_v53  ;;  %833 = vst.msk [vmem:[#allocation2] sm:$0xf] %vm832_vm9, %v828_v49  ;;  %v1091_v56 = vperm.slane %v1085_v42, %v2588_v21  ;;  %v1098_v57 = vrot.slane %v1083_v52, 4  ;;  %v860_v29 = vsel %vm718_vm8, %v859_v34, %v2611_v46 }
 0x252   : > { %836 = vst.msk [vmem:[#allocation2 + $0xc] sm:$0xf] %vm832_vm9, %v831_v50  ;;  %v1096_v59 = vrot.slane %v1079_v41, 4  ;;  %v1102_v60 = vrot.slane %v1095_v54, 4  ;;  %v862_v61 = vsel %vm718_vm8, %v845_v18, %v861_v14  ;;  %v866_v62 = vperm.slane %v860_v29, %v2578_v6 }
 0x253   : > { %834 = vst.msk [vmem:[#allocation2 + $0x4] sm:$0xf] %vm832_vm9, %v829_v55  ;;  %v1099_v27 = vsel %vm718_vm8, 0.0, %v1098_v57  ;;  %v1100_v63 = vrot.slane %v1091_v56, 4  ;;  %v1104_v0 = vsel %vm718_vm8, %v1098_v57, %v1079_v41  ;;  %v870_v1 = vperm.slane %v862_v61, %v2578_v6 }
 0x254   : > { %v1097_v2 = vsel %vm718_vm8, 0.0, %v1096_v59  ;;  %v1103_v46 = vsel %vm718_vm8, 0.0, %v1102_v60  ;;  %v2679_v4 = vperm.slane %v1104_v0, %v2578_v6  ;;  %v1109_v5 = vrot.slane %v1099_v27, 4 }
 0x255   : > { %v1101_v7 = vsel %vm718_vm8, 0.0, %v1100_v63  ;;  %v1115_v9 = vsel %vm718_vm8, %v1102_v60, %v1091_v56  ;;  %v1120_v11 = vrot.slane %v1103_v46, 4  ;;  %v871_v12 = vrot.slane %v866_v62, 4 }
 0x256   : > { %v1110_v14 = vsel %vm718_vm8, %v1109_v5, %v1097_v2  ;;  %v1119_v58 = vperm.slane %v1115_v9, %v2578_v6  ;;  %v1128_v16 = vrot.slane %v2679_v4, 4  ;;  %v874_v17 = vsel %vm718_vm8, %v866_v62, %v873_v15 }
 0x257   : > { %v1114_v18 = vperm.slane %v1110_v14, %v2578_v6  ;;  %v1121_v20 = vsel %vm718_vm8, %v1120_v11, %v1101_v7  ;;  %v872_v22 = vsel %vm718_vm8, %v871_v12, %v2632_v8  ;;  %v882_v23 = vperm.slane %v874_v17, %v2588_v21  ;;  %v1164_v24 = vld [vmem:[#allocation2 + $0x8] sm:$0xf] }
 0x258   : > { %v878_v25 = vperm.slane %v872_v22, %v2588_v21  ;;  %v883_v26 = vrot.slane %v870_v1, 4  ;;  %v886_v28 = vsel %vm718_vm8, %v870_v1, %v885_v13  ;;  %v1162_v30 = vld [vmem:[#allocation2] sm:$0xf]  ;;  %v1213_v32 = vsel %vm1170_vm10, %v1164_v24, 0 }
 0x259   : > { %v894_v15 = vperm.slane %v886_v28, %v2588_v21  ;;  %v897_v31 = vrot.slane %v882_v23, 4  ;;  %v1175_v33 = vsel %vm1170_vm10, %v1162_v30, 0  ;;  %v1165_v8 = vld [vmem:[#allocation2 + $0xc] sm:$0xf]  ;;  %1222 = vmatpush.bf16.xpose.msrb.mxu1 %v1213_v32  ;;  %v1125_v13 = vperm.slane %v1121_v20, %v2578_v6 }
 0x25a   : > { %v884_v34 = vsel %vm718_vm8, %v883_v26, %v2628_v3  ;;  %v895_v35 = vrot.slane %v878_v25, 4  ;;  %1184 = vmatpush.bf16.xpose.msra.mxu3 %v1175_v33  ;;  %v1232_v36 = vsel %vm1170_vm10, %v1165_v8, 0  ;;  %v1163_v37 = vld [vmem:[#allocation2 + $0x4] sm:$0xf]  ;;  %v1129_v50 = vsel %vm718_vm8, %v1114_v18, %v1128_v16 }
 0x25b   : > { %v890_v38 = vperm.slane %v884_v34, %v2588_v21  ;;  %v898_v39 = vsel %vm718_vm8, 0.0, %v897_v31  ;;  %v901_v40 = vrot.slane %v894_v15, 4  ;;  %v903_v43 = vsel %vm718_vm8, %v897_v31, %v878_v25  ;;  %1241 = vmatpush.bf16.xpose.msrb.mxu2 %v1232_v36 }
 0x25c   : > { %v896_v19 = vsel %vm718_vm8, 0.0, %v895_v35  ;;  %v907_v3 = vperm.slane %v903_v43, %v2578_v6  ;;  %v908_v44 = vrot.slane %v898_v39, 4  ;;  %v1194_v45 = vsel %vm1170_vm10, %v1163_v37, 0 }
 0x25d   : > { %v899_v47 = vrot.slane %v890_v38, 4  ;;  %v902_v48 = vsel %vm718_vm8, 0.0, %v901_v40  ;;  %v914_v49 = vsel %vm718_vm8, %v901_v40, %v890_v38  ;;  %1203 = vmatpush.bf16.xpose.msrb.mxu0 %v1194_v45  ;;  %v1137_v55 = vperm.slane %v1129_v50, %v2588_v21 }
 0x25e   : > { %v909_v51 = vsel %vm718_vm8, %v908_v44, %v896_v19  ;;  %v918_v52 = vperm.slane %v914_v49, %v2578_v6  ;;  %v919_v53 = vrot.slane %v902_v48, 4  ;;  %v927_v41 = vrot.slane %v907_v3, 4 }
 0x25f   : > { %v900_v42 = vsel %vm718_vm8, 0.0, %v899_v47  ;;  %v913_v54 = vperm.slane %v909_v51, %v2578_v6  ;;  %v1140_v56 = vrot.slane %v1119_v58, 4  ;;  %v1126_v59 = vrot.slane %v1114_v18, 4 }
 0x260   : > { %v920_v57 = vsel %vm718_vm8, %v919_v53, %v900_v42  ;;  %v939_v29 = vrot.slane %v918_v52, 4  ;;  %v1138_v60 = vrot.slane %v1125_v13, 4  ;;  %v1156_v22 = vrot.slane %v1137_v55, 4 }
 0x261   : > { %v924_v61 = vperm.slane %v920_v57, %v2578_v6  ;;  %v925_v62 = vrot.slane %v913_v54, 4  ;;  %v928_v27 = vsel %vm718_vm8, %v913_v54, %v927_v41  ;;  %v1141_v63 = vsel %vm718_vm8, %v1125_v13, %v1140_v56 }
 0x262   : > { %v936_v0 = vperm.slane %v928_v27, %v2588_v21  ;;  %v1149_v1 = vperm.slane %v1141_v63, %v2588_v21  ;;  %v1127_v2 = vsel %vm718_vm8, %v1126_v59, %v2679_v4  ;;  %v1139_v46 = vsel %vm718_vm8, %v1138_v60, %v1119_v58 }
 0x263   : > { %v926_v5 = vsel %vm718_vm8, %v925_v62, %v907_v3  ;;  %v937_v7 = vrot.slane %v924_v61, 4  ;;  %v940_v9 = vsel %vm718_vm8, %v924_v61, %v939_v29  ;;  %v1133_v11 = vperm.slane %v1127_v2, %v2588_v21 }
 0x264   : > { %v932_v12 = vperm.slane %v926_v5, %v2588_v21  ;;  %v948_v14 = vperm.slane %v940_v9, %v2588_v21  ;;  %v955_v16 = vrot.slane %v936_v0, 4  ;;  %v1154_v17 = vrot.slane %v1149_v1, 4 }
 0x265   : > { %v938_v18 = vsel %vm718_vm8, %v937_v7, %v918_v52  ;;  %v1145_v20 = vperm.slane %v1139_v46, %v2588_v21  ;;  %v1152_v4 = vrot.slane %v1133_v11, 4  ;;  %v1157_v15 = vsel %vm718_vm8, %v1149_v1, %v1156_v22 }
 0x266   : > { %v944_v58 = vperm.slane %v938_v18, %v2588_v21  ;;  %v951_v23 = vrot.slane %v932_v12, 4  ;;  %v953_v24 = vrot.slane %v948_v14, 4  ;;  %v956_v25 = vsel %vm718_vm8, %v948_v14, %v955_v16 }
 0x267   : > { %v960_v26 = vpack.c.bf16 %v956_v25, %v956_v25  ;;  %v1155_v28 = vsel %vm718_vm8, %v1154_v17, %v1137_v55  ;;  %v1150_v30 = vrot.slane %v1145_v20, 4  ;;  %v1161_v37 = vpack.c.bf16 %v1157_v15, %v1157_v15 }
 0x268   : > { %v949_v31 = vrot.slane %v944_v58, 4  ;;  %v952_v32 = vsel %vm718_vm8, %v944_v58, %v951_v23  ;;  %v954_v33 = vsel %vm718_vm8, %v953_v24, %v936_v0  ;;  %v1160_v8 = vpack.c.bf16 %v1155_v28, %v1155_v28 }
 0x269   : > { %v958_v34 = vpack.c.bf16 %v952_v32, %v952_v32  ;;  %v959_v35 = vpack.c.bf16 %v954_v33, %v954_v33  ;;  %964 = vst.msk [vmem:[#allocation3 + $0xc] sm:$0xf] %vm832_vm9, %v960_v26  ;;  %v1151_v36 = vsel %vm718_vm8, %v1150_v30, %v1133_v11  ;;  %v1153_v39 = vsel %vm718_vm8, %v1145_v20, %v1152_v4 }
 0x26a   : > { %v950_v13 = vsel %vm718_vm8, %v949_v31, %v932_v12  ;;  %1916 = vmatmul.msk.bf16.vlgmr.msrb.gmra.mxu1 %vm1170_vm10, %v1160_v8  ;;  %v1158_v38 = vpack.c.bf16 %v1151_v36, %v1151_v36  ;;  %1917 = vmatmul.msk.bf16.vlgmr.msrb.gmra.mxu2 %vm1170_vm10, %v1161_v37  ;;  %v1159_v43 = vpack.c.bf16 %v1153_v39, %v1153_v39 }
 0x26b   : > { %v957_v40 = vpack.c.bf16 %v950_v13, %v950_v13  ;;  %962 = vst.msk [vmem:[#allocation3 + $0x4] sm:$0xf] %vm832_vm9, %v958_v34 }
 0x26c   : > { %963 = vst.msk [vmem:[#allocation3 + $0x8] sm:$0xf] %vm832_vm9, %v959_v35  ;;  %1914 = vmatmul.msk.bf16.vlgmr.msra.gmra.mxu3 %vm1170_vm10, %v1158_v38  ;;  %1915 = vmatmul.msk.bf16.vlgmr.msrb.gmra.mxu0 %vm1170_vm10, %v1159_v43 }
 0x26d   : > { %961 = vst.msk [vmem:[#allocation3] sm:$0xf] %vm832_vm9, %v957_v40 }
 0x270   : > { %v1169_v19 = vld [vmem:[#allocation3 + $0xc] sm:$0xf] }
 0x271   : > { %v1369_v3 = vsel %vm1310_vm11, %v1169_v19, 0 }
 0x272   : > { %1378 = vmatpush.bf16.msra.mxu2 %v1369_v3  ;;  %v1167_v44 = vld [vmem:[#allocation3 + $0x4] sm:$0xf] }
 0x273   : > { %v1168_v45 = vld [vmem:[#allocation3 + $0x8] sm:$0xf]  ;;  %v1331_v47 = vsel %vm1310_vm11, %v1167_v44, 0 }
 0x274   : > { %v1350_v48 = vsel %vm1310_vm11, %v1168_v45, 0  ;;  %v1166_v49 = vld [vmem:[#allocation3] sm:$0xf]  ;;  %1340 = vmatpush.bf16.msra.mxu0 %v1331_v47 }
 0x275   : > { %1359 = vmatpush.bf16.msra.mxu1 %v1350_v48  ;;  %v1312_v50 = vsel %vm1310_vm11, %v1166_v49, 0 }
 0x276   : > { %1321 = vmatpush.bf16.msrb.mxu3 %v1312_v50 }
 0x2e7   : > { %v1224_v51 = vpop.f32.mrf.mxu1 }
 0x2e8   : > { %v1253_v52 = vsel %vm1170_vm10, %v1224_v51, -inf }
 0x2e9   : > { %1254 = vmax.xlane.f32.xlu2 %v1253_v52  ;;  %v1205_v53 = vpop.f32.mrf.mxu0 }
 0x2ea   : > { %v1250_v60 = vsel %vm1170_vm10, %v1205_v53, -inf }
 0x2ed   : > { %v1243_v41 = vpop.f32.mrf.mxu2 }
 0x2ee   : > { %v1256_v55 = vsel %vm1170_vm10, %v1243_v41, -inf }
 0x2ef   : > { %v1186_v42 = vpop.f32.mrf.mxu3  ;;  %v1226_v54 = vpop.f32.mrf.mxu1  ;;  %1257 = vmax.xlane.f32.xlu0 %v1256_v55 }
 0x2f0   : > { %v1247_v56 = vsel %vm1170_vm10, %v1186_v42, -inf }
 0x2f1   : > { %1248 = vmax.xlane.f32.xlu1 %v1247_v56  ;;  %v1207_v57 = vpop.f32.mrf.mxu0 }
 0x2f5   : > { %v1245_v29 = vpop.f32.mrf.mxu2 }
 0x2f7   : > { %v1188_v59 = vpop.f32.mrf.mxu3 }
 0x2f9   : > { %1251 = vmax.xlane.f32.xlu1 %v1250_v60 }
 0x35c   : > { %v1255_v61 = vpop.xlane.xlu2 %1254 }
 0x35d   : > { %v1273_v62 = vsub.f32 %v1224_v51, %v1255_v61  ;;  %v1261_v26 = vsub.f32 -inf, %v1255_v61 }
 0x35f   : > { %v1279_v27 = vmul.f32 1.442695, %v1273_v62  ;;  %v1267_v30 = vmul.f32 1.442695, %v1261_v26 }
 0x361   : > { %2096 = vpow2.f32 %v1279_v27 }
 0x362   : > { %v1258_v63 = vpop.xlane.xlu0 %1257 }
 0x363   : > { %v1274_v0 = vsub.f32 %v1243_v41, %v1258_v63  ;;  %v1262_v28 = vsub.f32 -inf, %v1258_v63 }
 0x364   : > { %v1249_v1 = vpop.xlane.xlu1 %1248 }
 0x365   : > { %v1271_v2 = vsub.f32 %v1186_v42, %v1249_v1  ;;  %v1281_v46 = vmul.f32 1.442695, %v1274_v0  ;;  %v1259_v15 = vsub.f32 -inf, %v1249_v1  ;;  %v1269_v32 = vmul.f32 1.442695, %v1262_v28 }
 0x367   : > { %v1275_v5 = vmul.f32 1.442695, %v1271_v2  ;;  %v2097_v7 = vpop.eup %2096  ;;  %2098 = vpow2.f32 %v1281_v46  ;;  %v1263_v33 = vmul.f32 1.442695, %v1259_v15 }
 0x368   : > { %v1305_v9 = vpack.c.bf16 %v2097_v7, %v2097_v7  ;;  %v1293_v11 = vsel %vm1170_vm10, %v2097_v7, 0.0 }
 0x369   : > { %1294 = vadd.xlane.f32.xlu0 %v1293_v11  ;;  %2100 = vpow2.f32 %v1275_v5 }
 0x36a   : > { %1920 = vmatmul.msk.bf16.vlgmr.msra.gmra.mxu1 %vm1170_vm10, %v1305_v9 }
 0x36c   : > { %v1252_v12 = vpop.xlane.xlu1 %1251 }
 0x36d   : > { %v1272_v14 = vsub.f32 %v1205_v53, %v1252_v12  ;;  %v2099_v16 = vpop.eup %2098  ;;  %v1260_v31 = vsub.f32 -inf, %v1252_v12 }
 0x36e   : > { %v1306_v18 = vpack.c.bf16 %v2099_v16, %v2099_v16  ;;  %v1296_v20 = vsel %vm1170_vm10, %v2099_v16, 0.0 }
 0x36f   : > { %v1277_v17 = vmul.f32 1.442695, %v1272_v14  ;;  %v2101_v4 = vpop.eup %2100  ;;  %1297 = vadd.xlane.f32.xlu1 %v1296_v20  ;;  %v1265_v8 = vmul.f32 1.442695, %v1260_v31 }
 0x370   : > { %v1287_v22 = vsel %vm1170_vm10, %v2101_v4, 0.0  ;;  %v1303_v58 = vpack.c.bf16 %v2101_v4, %v2101_v4  ;;  %1921 = vmatmul.msk.bf16.vlgmr.msra.gmra.mxu2 %vm1170_vm10, %v1306_v18 }
 0x371   : > { %2102 = vpow2.f32 %v1277_v17  ;;  %1288 = vadd.xlane.f32.xlu2 %v1287_v22 }
 0x372   : > { %1918 = vmatmul.msk.bf16.vlgmr.msrb.gmra.mxu3 %vm1170_vm10, %v1303_v58  ;;  %2104 = vpow2.f32 %v1267_v30 }
 0x373   : > { %2106 = vpow2.f32 %v1269_v32 }
 0x374   : > { %2108 = vpow2.f32 %v1263_v33 }
 0x375   : > { %2110 = vpow2.f32 %v1265_v8 }
 0x377   : > { %v2103_v23 = vpop.eup %2102 }
 0x378   : > { %v1304_v24 = vpack.c.bf16 %v2103_v23, %v2103_v23  ;;  %v1290_v25 = vsel %vm1170_vm10, %v2103_v23, 0.0  ;;  %v2105_v35 = vpop.eup %2104 }
 0x379   : > { %1291 = vadd.xlane.f32.xlu0 %v1290_v25  ;;  %v2107_v36 = vpop.eup %2106  ;;  %v1285_v13 = vmul.f32 0.0, %v2105_v35 }
 0x37a   : > { %1919 = vmatmul.msk.bf16.vlgmr.msra.gmra.mxu0 %vm1170_vm10, %v1304_v24  ;;  %v2109_v38 = vpop.eup %2108  ;;  %v1286_v19 = vmul.f32 0.0, %v2107_v36 }
 0x37b   : > { %v2111_v40 = vpop.eup %2110  ;;  %v1283_v44 = vmul.f32 0.0, %v2109_v38 }
 0x37c   : > { %v1284_v48 = vmul.f32 0.0, %v2111_v40 }
 0x3dc   : > { %v1295_v34 = vpop.xlane.xlu0 %1294 }
 0x3dd   : > { %v1301_v43 = vadd.f32 %v1295_v34, %v1285_v13 }
 0x3df   : > { %2112 = vrcp.f32 %v1301_v43 }
 0x3e2   : > { %v1298_v39 = vpop.xlane.xlu1 %1297 }
 0x3e3   : > { %v1302_v45 = vadd.f32 %v1298_v39, %v1286_v19 }
 0x3e4   : > { %v1289_v3 = vpop.xlane.xlu2 %1288 }
 0x3e5   : > { %v1299_v49 = vadd.f32 %v1289_v3, %v1283_v44  ;;  %2114 = vrcp.f32 %v1302_v45  ;;  %v2113_v53 = vpop.eup %2112 }
 0x3e7   : > { %v1361_v37 = vpop.f32.mrf.mxu1  ;;  %2116 = vrcp.f32 %v1299_v49 }
 0x3e8   : > { %v1386_v52 = vadd.f32 %v1361_v37, %v1285_v13 }
 0x3ea   : > { %v1394_v42 = vmul.f32 %v2113_v53, %v1386_v52 }
 0x3eb   : > { %v2115_v55 = vpop.eup %2114 }
 0x3ec   : > { %v1292_v47 = vpop.xlane.xlu0 %1291  ;;  %v1396_v27 = vrot.slane %v1394_v42, 4 }
 0x3ed   : > { %v1300_v50 = vadd.f32 %v1292_v47, %v1284_v48  ;;  %v2117_v60 = vpop.eup %2116 }
 0x3ef   : > { %v1363_v51 = vpop.f32.mrf.mxu1  ;;  %2118 = vrcp.f32 %v1300_v50 }
 0x3f3   : > { %v1380_v41 = vpop.f32.mrf.mxu2 }
 0x3f4   : > { %v1387_v54 = vadd.f32 %v1380_v41, %v1286_v19 }
 0x3f5   : > { %v1323_v56 = vpop.f32.mrf.mxu3  ;;  %v2119_v62 = vpop.eup %2118 }
 0x3f6   : > { %v1384_v57 = vadd.f32 %v1323_v56, %v1283_v44  ;;  %v1395_v29 = vmul.f32 %v2115_v55, %v1387_v54 }
 0x3f7   : > { %v1342_v59 = vpop.f32.mrf.mxu0 }
 0x3f8   : > { %v1385_v61 = vadd.f32 %v1342_v59, %v1284_v48  ;;  %v1392_v63 = vmul.f32 %v2117_v60, %v1384_v57  ;;  %v1408_v0 = vrot.slane %v1395_v29, 4 }
 0x3fa   : > { %v1393_v1 = vmul.f32 %v2119_v62, %v1385_v61  ;;  %v1397_v2 = vsel %vm718_vm8, %v1396_v27, %v1392_v63  ;;  %v1398_v46 = vrot.slane %v1392_v63, 4 }
 0x3fb   : > { %v1403_v5 = vperm.slane %v1397_v2, %v2578_v6  ;;  %v1382_v11 = vpop.f32.mrf.mxu2 }
 0x3fc   : > { %v1409_v7 = vsel %vm718_vm8, %v1408_v0, %v1393_v1  ;;  %v1410_v9 = vrot.slane %v1393_v1, 4  ;;  %v1399_v12 = vsel %vm718_vm8, %v1394_v42, %v1398_v46  ;;  %v1969_v46 = vld [vmem:[#allocation9 + $0x8] sm:$0xff] }
 0x3fd   : > { %v1415_v14 = vperm.slane %v1409_v7, %v2578_v6  ;;  %v1407_v16 = vperm.slane %v1399_v12, %v2578_v6  ;;  %v1422_v17 = vrot.slane %v1403_v5, 4  ;;  %v1325_v20 = vpop.f32.mrf.mxu3  ;;  %1553 = vmatpush.bf16.msra.mxu3 %v1969_v46 }
 0x3fe   : > { %v1411_v18 = vsel %vm718_vm8, %v1395_v29, %v1410_v9 }
 0x3ff   : > { %v1419_v4 = vperm.slane %v1411_v18, %v2578_v6  ;;  %v1420_v22 = vrot.slane %v1415_v14, 4  ;;  %v1344_v58 = vpop.f32.mrf.mxu0  ;;  %v1434_v23 = vrot.slane %v1407_v16, 4  ;;  %v1423_v24 = vsel %vm718_vm8, %v1415_v14, %v1422_v17  ;;  %v2085_v17 = vld [vmem:[%s2890_s8] ss:$0 sm:$0xff] }
 0x400   : > { %v1431_v26 = vperm.slane %v1423_v24, %v2588_v21 }
 0x401   : > { %v1421_v25 = vsel %vm718_vm8, %v1420_v22, %v1403_v5  ;;  %v1432_v28 = vrot.slane %v1419_v4, 4  ;;  %v1435_v15 = vsel %vm718_vm8, %v1419_v4, %v1434_v23  ;;  %v1968_v5 = vld [vmem:[#allocation9] sm:$0xff] }
 0x402   : > { %v1427_v30 = vperm.slane %v1421_v25, %v2588_v21  ;;  %v1443_v32 = vperm.slane %v1435_v15, %v2588_v21  ;;  %v1446_v33 = vrot.slane %v1431_v26, 4  ;;  %1554 = vmatpush.bf16.msra.mxu3 %v1968_v5  ;;  %v2124_v4 = vld [vmem:[%s2546_s16] sm:$0xff]  ;;  %v1971_v15 = vld [vmem:[#allocation10 + $0x8] sm:$0xff] }
 0x403   : > { %v1433_v31 = vsel %vm718_vm8, %v1432_v28, %v1407_v16  ;;  %1623 = vmatpush.bf16.msrb.mxu0 %v1971_v15 }
 0x404   : > { %v1439_v8 = vperm.slane %v1433_v31, %v2588_v21  ;;  %v1444_v34 = vrot.slane %v1427_v30, 4  ;;  %v1447_v35 = vsel %vm718_vm8, 0.0, %v1446_v33  ;;  %v1450_v36 = vrot.slane %v1443_v32, 4  ;;  %v1970_v31 = vld [vmem:[#allocation10] sm:$0xff] }
 0x405   : > { %v1452_v37 = vsel %vm718_vm8, %v1446_v33, %v1427_v30  ;;  %v1457_v13 = vrot.slane %v1447_v35, 4 }
 0x406   : > { %v1445_v38 = vsel %vm718_vm8, 0.0, %v1444_v34  ;;  %v1448_v39 = vrot.slane %v1439_v8, 4  ;;  %v1456_v40 = vperm.slane %v1452_v37, %v2578_v6  ;;  %v1451_v43 = vsel %vm718_vm8, 0.0, %v1450_v36 }
 0x407   : > { %v1463_v19 = vsel %vm718_vm8, %v1450_v36, %v1439_v8  ;;  %v1458_v44 = vsel %vm718_vm8, %v1457_v13, %v1445_v38  ;;  %v1468_v47 = vrot.slane %v1451_v43, 4  ;;  %1624 = vmatpush.bf16.msrb.mxu0 %v1970_v31 }
 0x408   : > { %v1449_v3 = vsel %vm718_vm8, 0.0, %v1448_v39  ;;  %v1467_v45 = vperm.slane %v1463_v19, %v2578_v6  ;;  %v1462_v48 = vperm.slane %v1458_v44, %v2578_v6  ;;  %v1476_v49 = vrot.slane %v1456_v40, 4  ;;  %v2086_v39 = vld [vmem:[%s2891_s9] ss:$0 sm:$0xff] }
 0x409   : > { %v1469_v50 = vsel %vm718_vm8, %v1468_v47, %v1449_v3 }
 0x40a   : > { %v1488_v51 = vrot.slane %v1467_v45, 4  ;;  %v1473_v52 = vperm.slane %v1469_v50, %v2578_v6  ;;  %v1477_v53 = vsel %vm718_vm8, %v1462_v48, %v1476_v49  ;;  %v1474_v41 = vrot.slane %v1462_v48, 4 }
 0x40b   : > { %v1485_v42 = vperm.slane %v1477_v53, %v2588_v21  ;;  %v1975_v53 = vld [vmem:[%s2929_s26 + $0x18] sm:$0xff] }
 0x40c   : > { %v1489_v54 = vsel %vm718_vm8, %v1473_v52, %v1488_v51  ;;  %v1475_v55 = vsel %vm718_vm8, %v1474_v41, %v1456_v40  ;;  %v1486_v56 = vrot.slane %v1473_v52, 4  ;;  %1719 = vmatpush.bf16.msrb.mxu1 %v1975_v53 }
 0x40d   : > { %v1497_v57 = vperm.slane %v1489_v54, %v2588_v21  ;;  %v1504_v29 = vrot.slane %v1485_v42, 4  ;;  %v1481_v59 = vperm.slane %v1475_v55, %v2588_v21 }
 0x40e   : > { %v1487_v60 = vsel %vm718_vm8, %v1486_v56, %v1467_v45  ;;  %v2088_v45 = vld [vmem:[%s2894_s12] ss:$0 sm:$0xff]  ;;  %v1974_v56 = vld [vmem:[%s2929_s26 + $0x10] sm:$0xff] }
 0x40f   : > { %v1505_v61 = vsel %vm718_vm8, %v1497_v57, %v1504_v29  ;;  %v1502_v6 = vrot.slane %v1497_v57, 4  ;;  %v1493_v62 = vperm.slane %v1487_v60, %v2588_v21  ;;  %v1500_v27 = vrot.slane %v1481_v59, 4 }
 0x410   : > { %1515 = vrot.lane.b32.xlu0 %v1505_v61, %s2349_s13  ;;  %1720 = vmatpush.bf16.msrb.mxu1 %v1974_v56  ;;  %v1973_v61 = vld [vmem:[%s2929_s26 + $0x8] sm:$0xff]  ;;  %s2259_s13 = sshra.s32 %s1747_s6, 4  ;;  %s2260_s13 = int_to_ptr.hbm [resolvable:$true] %s2259_s13 }
 0x411   : > { %v1503_v63 = vsel %vm718_vm8, %v1502_v6, %v1485_v42  ;;  %v1498_v0 = vrot.slane %v1493_v62, 4  ;;  %v1501_v1 = vsel %vm718_vm8, %v1493_v62, %v1500_v27  ;;  %p2266_p5 = scmp.lt.s32.totalorder %s2260_s13, %s2932_s29 }
 0x412   : > { %1511 = vrot.lane.b32.xlu1 %v1503_v63, %s2350_s14  ;;  %1507 = vrot.lane.b32.xlu2 %v1501_v1, %s2351_s15  ;;  %v1972_v63 = vld [vmem:[%s2929_s26] sm:$0xff]  ;;  %s2930_s15 = sld [smem:[#allocation18_spill]]  ;;  %s2261_s14 = scalar_lea.hbm %s2260_s13, 8 }
 0x413   : > { %v1499_v2 = vsel %vm718_vm8, %v1498_v0, %v1481_v59  ;;  %p2262_p1 = scmp.ne.s32.totalorder %s2260_s13, %s2261_s14 }
 0x414   : > { %1721 = vmatpush.bf16.msrb.mxu1 %v1973_v61 }
 0x415   : > { %p2263_p2 = pnand %p2262_p1, %p2472_p4 }
 0x417   : > { %p2264_p3 = pneg %p2263_p2 }
 0x418   : > { %1722 = vmatpush.bf16.msrb.mxu1 %v1972_v63  ;;  %s585_s19 = sand.u32 1, %s2930_s15  }
 0x419   : > { %s1884_s20 = sshll.u32 %s585_s19, 3  ;;  %s1731_s21 = scalar_lea.sflag [#allocation6], %s585_s19 }
 0x41a   : > { %s587_s23 = scalar_lea.vmem [#allocation12], %s1884_s20  ;;  %s2265_s20 = scalar_lea.hbm %s2932_s29, 16 }
 0x41b   : > { %s1744_s30 = sshll.u32 %s587_s23, 4  ;;  %p2267_p6 = scmp.lt.s32.totalorder %s2265_s20, %s2261_s14  ;;  %s1745_s30 = int_to_ptr.vmem [resolvable:$true] %s1744_s30 }
 0x41d   : > { %p2268_p7 = por %p2267_p6, %p2266_p5 }
 0x41f   : > { %p2269_p9 = pnand %p2268_p7, %p2264_p3 }
 0x46c   : > { %v1508_v21 = vpop.permute.xlu2 %1507 }
 0x46d   : > { %v1518_v7 = vsel %vm1170_vm10, %v1499_v2, %v1508_v21 }
 0x482   : > { %v1516_v11 = vpop.permute.xlu0 %1515 }
 0x484   : > { %v1512_v9 = vpop.permute.xlu1 %1511 }
 0x485   : > { %v1520_v12 = vsel %vm1519_vm12, %v1518_v7, %v1512_v9 }
 0x486   : > { %v1522_v14 = vsel %vm1521_vm13, %v1520_v12, %v1516_v11 }
 0x487   : > { %v1523_v16 = vpack.c.bf16 %v1522_v14, %v1522_v14 }
 0x489   : > { %1930 = vmatmul.msk.bf16.vlgmr.msra.gmra.mxu3 %vm607_vm0, %v1523_v16 }
 0x50c   : > { %v1556_v18 = vpop.f32.mrf.mxu3 }
 0x50d   : > { %v1557_v20 = vadd.f32 %v2085_v17, %v1556_v18 }
 0x50f   : > { %v2810_v22 = vadd.f32 %v2124_v4, %v1557_v20 }
 0x511   : > { %v1563_v58 = vsel %vm607_vm0, %v2810_v22, 0.0 }
 0x512   : > { %1564 = vadd.xlane.f32.xlu2 %v1563_v58 }
 0x514   : > { %v1558_v23 = vpop.f32.mrf.mxu3 }
 0x585   : > { %v1565_v24 = vpop.xlane.xlu2 %1564 }
 0x586   : > { %v1566_v25 = vmul.f32 %v1565_v24, %v2550_v10 }
 0x588   : > { %v1567_v26 = vsub.f32 %v2810_v22, %v1566_v25 }
 0x58a   : > { %v1568_v28 = vmul.f32 %v1567_v26, %v1567_v26 }
 0x58c   : > { %v1569_v30 = vsel %vm607_vm0, %v1568_v28, 0.0 }
 0x58d   : > { %1570 = vadd.xlane.f32.xlu0 %v1569_v30 }
 0x600   : > { %v1571_v32 = vpop.xlane.xlu0 %1570 }
 0x601   : > { %v1572_v33 = vmul.f32 %v1571_v32, %v2550_v10  ;;  %v2087_v10 = vld [vmem:[%s2892_s10] ss:$0 sm:$0xff] }
 0x603   : > { %v1573_v8 = vadd.f32 1e-05, %v1572_v33  ;;  %v2089_v33 = vld [vmem:[%s2931_s17] ss:$0 sm:$0xff] }
 0x605   : > { %2120 = vrsqrt.f32 %v1573_v8  ;;  %vm1580_vm15 = vweird.f32 %v1573_v8 }
 0x60b   : > { %v2121_v34 = vpop.eup %2120 }
 0x60c   : > { %v1575_v35 = vmul.f32 %v2121_v34, %v1573_v8  ;;  %vm1581_vm14 = vweird.f32 %v2121_v34 }
 0x60d   : > { %vm1582_vm1 = vmor %vm1580_vm15, %vm1581_vm14 }
 0x60e   : > { %v1576_v36 = vmul.f32 %v2121_v34, %v1575_v35 }
 0x610   : > { %v1577_v37 = vmul.f32 0.5, %v1576_v36 }
 0x612   : > { %v1578_v13 = vsub.f32 1.5, %v1577_v37 }
 0x614   : > { %v1579_v38 = vmul.f32 %v2121_v34, %v1578_v13 }
 0x616   : > { %v1583_v40 = vsel %vm1582_vm1, %v2121_v34, %v1579_v38 }
 0x617   : > { %v1584_v43 = vmul.f32 %v1583_v40, %v1567_v26 }
 0x619   : > { %v1588_v19 = vmul.f32 %v2086_v39, %v1584_v43 }
 0x61b   : > { %v1592_v3 = vadd.f32 %v2087_v10, %v1588_v19 }
 0x61d   : > { %v1593_v44 = vpack.c.bf16 %v1592_v3, %v1592_v3 }
 0x61f   : > { %1939 = vmatmul.msk.bf16.vlgmr.msrb.gmra.mxu0 %vm607_vm0, %v1593_v44 }
 0x69c   : > { %v1626_v47 = vpop.f32.mrf.mxu0 }
 0x69d   : > { %v1627_v48 = vadd.f32 %v2088_v45, %v1626_v47 }
 0x69f   : > { %v1631_v49 = vmul.f32 0.70710677, %v1627_v48  ;;  %v1630_v30 = vmul.f32 0.5, %v1627_v48 }
 0x6a1   : > { %v1632_v50 = vmul.f32 %v1631_v49, %v1631_v49 }
 0x6a3   : > { %v1633_v51 = vmin.f32 %v1632_v50, 16.0 }
 0x6a4   : > { %v1628_v52 = vpop.f32.mrf.mxu0 }
 0x6a5   : > { %v1634_v41 = vmul.f32 2.1237322e-06, %v1633_v51  ;;  %v1645_v42 = vmul.f32 3.8918573e-05, %v1633_v51 }
 0x6a7   : > { %v1635_v54 = vadd.f32 0.00028619796, %v1634_v41  ;;  %v1646_v55 = vadd.f32 0.001143296, %v1645_v42 }
 0x6a9   : > { %v1636_v57 = vmul.f32 %v1635_v54, %v1633_v51  ;;  %v1647_v29 = vmul.f32 %v1646_v55, %v1633_v51 }
 0x6ab   : > { %v1648_v59 = vadd.f32 0.014752088, %v1647_v29  ;;  %v1637_v60 = vadd.f32 0.0036580483, %v1636_v57 }
 0x6ad   : > { %v1649_v6 = vmul.f32 %v1648_v59, %v1633_v51  ;;  %v1638_v27 = vmul.f32 %v1637_v60, %v1633_v51 }
 0x6af   : > { %v1650_v62 = vadd.f32 0.112945676, %v1649_v6  ;;  %v1639_v2 = vadd.f32 0.05243302, %v1638_v27 }
 0x6b1   : > { %v1651_v0 = vmul.f32 %v1650_v62, %v1633_v51  ;;  %v1640_v21 = vmul.f32 %v1639_v2, %v1633_v51 }
 0x6b3   : > { %v1652_v1 = vadd.f32 0.4994258, %v1651_v0  ;;  %v1641_v7 = vadd.f32 0.18741608, %v1640_v21 }
 0x6b5   : > { %v1653_v46 = vmul.f32 %v1652_v1, %v1633_v51  ;;  %v1642_v11 = vmul.f32 %v1641_v7, %v1633_v51 }
 0x6b7   : > { %v1654_v5 = vadd.f32 1.0, %v1653_v46  ;;  %v1643_v17 = vadd.f32 1.1283791, %v1642_v11 }
 0x6b9   : > { %2122 = vrcp.f32 %v1654_v5  ;;  %v1666_v16 = vand.u32 2147483648, %v1654_v5  ;;  %v1664_v20 = vand.u32 2147483647, %v1654_v5  ;;  %vm1660_vm3 = vweird.f32 %v1654_v5 }
 0x6ba   : > { %v1644_v23 = vmul.f32 %v1643_v17, %v1631_v49 }
 0x6bb   : > { %v1667_v58 = vor.u32 1.1754944e-38, %v1666_v16  ;;  %vm1665_vm5 = vcmp.eq.f32.partialorder %v1664_v20, 8.507059e+37 }
 0x6bf   : > { %v2123_v9 = vpop.eup %2122 }
 0x6c0   : > { %v1656_v12 = vmul.f32 %v2123_v9, %v1654_v5  ;;  %vm1661_vm2 = vweird.f32 %v2123_v9 }
 0x6c1   : > { %vm1662_vm4 = vmor %vm1660_vm3, %vm1661_vm2 }
 0x6c2   : > { %v1657_v14 = vsub.f32 1.0, %v1656_v12 }
 0x6c4   : > { %v1658_v18 = vmul.f32 %v2123_v9, %v1657_v14 }
 0x6c6   : > { %v1659_v4 = vadd.f32 %v2123_v9, %v1658_v18 }
 0x6c8   : > { %v1663_v24 = vsel %vm1662_vm4, %v2123_v9, %v1659_v4 }
 0x6c9   : > { %v1668_v25 = vsel %vm1665_vm5, %v1667_v58, %v1663_v24 }
 0x6ca   : > { %v1669_v26 = vmul.f32 %v1668_v25, %v1644_v23 }
 0x6cc   : > { %v1940_v28 = vclamps-f32 %v1669_v26, 1.0 }
 0x6ce   : > { %v1672_v15 = vadd.f32 1.0, %v1940_v28 }
 0x6d0   : > { %v1673_v31 = vmul.f32 %v1672_v15, %v1630_v30 }
 0x6d2   : > { %v1674_v32 = vpack.c.bf16 %v1673_v31, %v1673_v31 }
 0x6d4   : > { %1957 = vmatmul.msk.bf16.vlgmr.msrb.gmra.mxu1 %vm1711_vm6, %v1674_v32 }
 0x751   : > { %v1724_v8 = vpop.f32.mrf.mxu1 }
 0x752   : > { %v1725_v34 = vadd.f32 %v2089_v33, %v1724_v8 }
 0x754   : > { %v1728_v35 = vadd.f32 %v1725_v34, %v2810_v22 }
 0x756   : > { %1729 = vst.msk [vmem:[%s587_s23] sm:$0xff] %vm607_vm0, %v1728_v35 }
 0x757   : > { %2272 = shalt.err (!%p2269_p9)
}
 0x758   : > { %1992 = dma.vmem_to_hbm [thread:$0]  (%p2472_p4), %s1745_s30, 128, %s1747_s6, %s1731_s21  }
 0x759   : > { %v1726_v22 = vpop.f32.mrf.mxu1 }
 0x75a PF: > { %s2934_s19 = sld [smem:[#allocation21_spill]] }
 0x75b   : > { %s2935_s17 = sld [smem:[#allocation17_spill]] }
 0x760   : > { %p2019_p10 = scmp.ge.s32.totalorder %s2934_s19, 2 }
 0x761   : > { %s1758_s25 = sand.u32 1, %s2935_s17  }
 0x762   : > { %p2008_p11 = pnand %p2019_p10, %p2479_p8  ;;  %s1759_s24 = scalar_lea.sflag [#allocation6], %s1758_s25 }
 0x764   : > { %p2009_p12 = pneg %p2008_p11 }
 0x766   : > { %2310 = dma.done.wait (%p2009_p12), %s1759_s24, 128  }
 0x767   : > { %2312 = vsyncadd (%p2009_p12), %s1759_s24, 4294967168  ;;  %s31_s23 = sadd.s32 1, %s2934_s19   ;;  %s2937_s18 = sld [smem:[#allocation18_spill]] }
 0x768   : > { %p28_p13 = scmp.ge.s32.totalorder %s31_s23, 4   ;;  %s2938_s19 = sld [smem:[#allocation19_spill]] }
 0x769   : > { %s2939_s20 = sld [smem:[#allocation25_spill]] }
 0x76a   : > { %s2940_s21 = sld [smem:[#allocation20_spill]]  ;;  %30 = sbr.rel (!%p28_p13) target bundleno = 12 (0xc), region = 139 }
 0x76b   : > { %s2941_s22 = sld [smem:[#allocation22_spill]] }
 0x76f   :  { %1765 = vsyncpa [#allocation5], 1 }
 0x770   :  { %1767 = vsyncpa [#allocation5 + $0x1], 1 }
 0x771   :  { %1768 = vsyncpa [#allocation8], 1 }
 0x772   :  { %1769 = vsyncpa [#allocation11], 1 }
 0x773   :  { %1770 = vsyncpa [#allocation6], 1 }
 0x774   :  { %1772 = vsyncpa [#allocation6 + $0x1], 1 }

</bundles_post_ra>
